<compile_context>
chip_gen: v5e
topology: v5e:2x2
jax: 0.10.0
libtpu: 0.0.40
codegen_flags: <defaults>
</compile_context>

<pallas_src>
import functools

import jax
import jax.numpy as jnp
from jax import lax
from jax.experimental import pallas as pl
from jax.experimental.pallas import tpu as pltpu

LANE = 128          # TPU lane width — hidden dims are zero-padded to this
NODE_TILE = 1024    # node rows per scatter/node-update grid step ("parallel" axis)
EDGE_TILE = 512     # edges per scatter grid step (the scatter reduction axis)
_MIB = 1024 * 1024


def _round_up(x, m):
    return ((x + m - 1) // m) * m


def _clamp_tile(m, tile):
    return m if m <= tile else tile


@functools.lru_cache(maxsize=None)
def _vmem_limit_bytes():
    """Per-generation scoped-VMEM limit (v5e/v6e: 128 MiB phys, v7x: 64 MiB/TC)."""
    try:
        cap = int(getattr(pltpu.get_tpu_info(), "vmem_capacity_bytes", 0))
    except Exception:
        cap = 0
    if cap >= 100 * _MIB:
        return 104 * _MIB          # v5e / v6e: use most of the 128 MiB part
    if cap > 0:
        return 52 * _MIB           # v7x: 64 MiB per TensorCore, leave headroom
    return 48 * _MIB               # unknown generation: safe everywhere


@functools.lru_cache(maxsize=None)
def _row_tile():
    """Row tile for the HBM-bound row-parallel kernels (bigger on 128-MiB parts)."""
    return 2048 if _vmem_limit_bytes() >= 100 * _MIB else 1024


def _cparams(semantics):
    return pltpu.CompilerParams(
        dimension_semantics=semantics,
        vmem_limit_bytes=_vmem_limit_bytes(),
    )


def _const_specs(arrays):
    # Weights / biases: one full block, resident across the whole grid.
    # TODO(synk): on v7x, pipeline_mode=pl.Buffered(1) would single-buffer these.
    return [pl.BlockSpec(a.shape, lambda *_: (0, 0)) for a in arrays]


# ----------------------------------------------------------------------------
# Kernel bodies
# ----------------------------------------------------------------------------
def _mlp_chain(h, wb_refs):
    """Chain of Linear(+SiLU except after the last) layers kept in vregs/VMEM.
    Weights are bf16, accumulation f32 (preferred_element_type)."""
    n_layers = len(wb_refs) // 2
    for l in range(n_layers):
        w = wb_refs[2 * l][...]                       # bf16
        b = wb_refs[2 * l + 1][...]                   # f32
        h = jnp.dot(h.astype(jnp.bfloat16), w,
                    preferred_element_type=jnp.float32) + b
        if l != n_layers - 1:
            h = h * jax.nn.sigmoid(h)                 # SiLU
    return h


def _fused_mlp_kernel(x_ref, *rest):
    o_ref = rest[-1]
    wb = rest[:-1]
    o_ref[...] = _mlp_chain(x_ref[...], wb).astype(o_ref.dtype)


def _edge_mlp_kernel(ea_ref, xs_ref, xd_ref, w0e_ref, w0s_ref, w0d_ref, b0_ref, *rest):
    """Per-pass edge MLP, fused & concat-free:
         res     = edge_mlp(cat[edge_attr, x_src, x_dest])   (split W0 row blocks)
         ea_new  = edge_attr + res                            (residual)
       res is emitted in bf16 (it is only consumed by the bf16 scatter matmul)."""
    ea_new_ref, res_ref = rest[-2], rest[-1]
    wb = rest[:-2]
    ea = ea_ref[...]
    h = jnp.dot(ea.astype(jnp.bfloat16), w0e_ref[...],
                preferred_element_type=jnp.float32)
    h = h + jnp.dot(xs_ref[...].astype(jnp.bfloat16), w0s_ref[...],
                    preferred_element_type=jnp.float32)
    h = h + jnp.dot(xd_ref[...].astype(jnp.bfloat16), w0d_ref[...],
                    preferred_element_type=jnp.float32)
    h = h + b0_ref[...]
    if len(wb) > 0:
        h = h * jax.nn.sigmoid(h)
        h = _mlp_chain(h, wb)
    ea_new_ref[...] = (ea + h).astype(ea_new_ref.dtype)
    res_ref[...] = h.astype(res_ref.dtype)


def _scatter_node_kernel(res_ref, dest_ref, x_ref, w0x_ref, w0a_ref, b0_ref, *rest,
                         num_edges, tile_n, tile_e):
    """Node-tiled scatter_add + fused node update:
         grid = (node tiles [parallel], edge tiles [arbitrary reduction])
         acc[i]  += onehot(TN,TE) @ res(TE,HP)        (accumulated over edge tiles)
         on the last edge tile:
           x_new[i] = x[i] + node_mlp(cat[x[i], acc[i]])   (split W0, residual)."""
    x_new_ref, acc_ref = rest[-2], rest[-1]
    wb = rest[:-2]
    i = pl.program_id(0)
    j = pl.program_id(1)

    @pl.when(j == 0)
    def _init():
        acc_ref[...] = jnp.zeros_like(acc_ref)

    # Zero (via select, not multiply -> kills NaN/Inf garbage) the rows of a partial
    # trailing edge tile so they contribute nothing to the aggregation.
    evalid = (j * tile_e
              + lax.broadcasted_iota(jnp.int32, (tile_e, 1), 0)) < num_edges
    res = jnp.where(evalid, res_ref[...], jnp.zeros_like(res_ref))

    node_ids = i * tile_n + lax.broadcasted_iota(jnp.int32, (tile_n, 1), 0)
    onehot = (node_ids == dest_ref[...]).astype(jnp.float32).astype(jnp.bfloat16)
    acc_ref[...] += jnp.dot(onehot, res, preferred_element_type=jnp.float32)

    @pl.when(j == pl.num_programs(1) - 1)
    def _epilogue():
        x = x_ref[...]
        h = jnp.dot(x.astype(jnp.bfloat16), w0x_ref[...],
                    preferred_element_type=jnp.float32)
        h = h + jnp.dot(acc_ref[...].astype(jnp.bfloat16), w0a_ref[...],
                        preferred_element_type=jnp.float32)
        h = h + b0_ref[...]
        if len(wb) > 0:
            h = h * jax.nn.sigmoid(h)
            h = _mlp_chain(h, wb)
        x_new_ref[...] = (x + h).astype(x_new_ref.dtype)


# ----------------------------------------------------------------------------
# pallas_call wrappers
# ----------------------------------------------------------------------------
def fused_mlp(x, mlp_pack):
    """Whole MLP in a single pallas_call, row-tiled ("parallel")."""
    M, K = x.shape
    out_dim = mlp_pack[-1][0].shape[1]
    tm = _clamp_tile(M, _row_tile())
    wb_flat = [a for wb in mlp_pack for a in wb]
    return pl.pallas_call(
        _fused_mlp_kernel,
        grid=(pl.cdiv(M, tm),),
        out_shape=jax.ShapeDtypeStruct((M, out_dim), jnp.float32),
        in_specs=[pl.BlockSpec((tm, K), lambda i: (i, 0))] + _const_specs(wb_flat),
        out_specs=pl.BlockSpec((tm, out_dim), lambda i: (i, 0)),
        compiler_params=_cparams(("parallel",)),
    )(x, *wb_flat)


def edge_mlp_apply(pack, edge_attr, x_src, x_dest):
    """Per-pass edge MLP + residual. Edge-tiled, fully "parallel" (megacore)."""
    E, HP = edge_attr.shape
    te = _clamp_tile(E, _row_tile())
    fixed = [pack["w0e"], pack["w0s"], pack["w0d"], pack["b0"]]
    wb_flat = [a for wb in pack["rest"] for a in wb]
    return pl.pallas_call(
        _edge_mlp_kernel,
        grid=(pl.cdiv(E, te),),
        out_shape=(jax.ShapeDtypeStruct((E, HP), jnp.float32),     # ea_new
                   jax.ShapeDtypeStruct((E, HP), jnp.bfloat16)),   # res (bf16 stream)
        in_specs=[pl.BlockSpec((te, HP), lambda i: (i, 0)),
                  pl.BlockSpec((te, HP), lambda i: (i, 0)),
                  pl.BlockSpec((te, HP), lambda i: (i, 0))]
                 + _const_specs(fixed + wb_flat),
        out_specs=(pl.BlockSpec((te, HP), lambda i: (i, 0)),
                   pl.BlockSpec((te, HP), lambda i: (i, 0))),
        input_output_aliases={0: 0},       # edge_attr buffer reused for ea_new
        compiler_params=_cparams(("parallel",)),
    )(edge_attr, x_src, x_dest, *fixed, *wb_flat)


def scatter_node_apply(pack, res, dest_2d, x):
    """Node-tiled scatter_add + fused node MLP/residual (agg never touches HBM)."""
    N, HP = x.shape
    E = res.shape[0]
    tn = _clamp_tile(N, NODE_TILE)
    te = _clamp_tile(E, EDGE_TILE)
    fixed = [pack["w0x"], pack["w0a"], pack["b0"]]
    wb_flat = [a for wb in pack["rest"] for a in wb]
    kernel = functools.partial(_scatter_node_kernel,
                               num_edges=E, tile_n=tn, tile_e=te)
    return pl.pallas_call(
        kernel,
        grid=(pl.cdiv(N, tn), pl.cdiv(E, te)),
        out_shape=jax.ShapeDtypeStruct((N, HP), jnp.float32),
        in_specs=[pl.BlockSpec((te, HP), lambda i, j: (j, 0)),     # res
                  pl.BlockSpec((1, te), lambda i, j: (0, j)),      # dest indices
                  pl.BlockSpec((tn, HP), lambda i, j: (i, 0))]     # x (node tile)
                 + _const_specs(fixed + wb_flat),
        out_specs=pl.BlockSpec((tn, HP), lambda i, j: (i, 0)),     # x_new
        scratch_shapes=[pltpu.VMEM((tn, HP), jnp.float32)],        # agg accumulator
        input_output_aliases={2: 0},       # x buffer reused for x_new
        # node-tile axis parallel (both TCs on v7x); edge-tile axis is the reduction
        compiler_params=_cparams(("parallel", "arbitrary")),
    )(res, dest_2d, x, *fixed, *wb_flat)


# ----------------------------------------------------------------------------
# Parameter init (logical, PyTorch-shaped) and one-time kernel packing
# ----------------------------------------------------------------------------
def init_mlp(key, layer_vec):
    params = []
    for k in range(len(layer_vec) - 1):
        key, k1, k2 = jax.random.split(key, 3)
        fan_in = float(layer_vec[k])
        w = jax.random.normal(k1, (layer_vec[k], layer_vec[k + 1]), jnp.float32) / jnp.sqrt(fan_in)
        b = jax.random.normal(k2, (1, layer_vec[k + 1]), jnp.float32) * 0.01
        params.append((w, b))
    return params, key


def init_node_movement_corrector(key, args, dims, fm=False):
    n_hidden = args["n_hidden"]
    dim_hidden = args["dim_hidden"]
    dim_node = dims["n"] + (1 if fm else 0)
    dim_edge = dims["q_0"] + 1

    params = {}
    params["encoder_node"], key = init_mlp(key, [dim_node] + n_hidden * [dim_hidden] + [dim_hidden])
    params["encoder_edge"], key = init_mlp(key, [dim_edge] + n_hidden * [dim_hidden] + [dim_hidden])
    params["processor"] = []
    for _ in range(args["passes"]):
        edge_mlp, key = init_mlp(key, [3 * dim_hidden] + n_hidden * [dim_hidden] + [dim_hidden])
        node_mlp, key = init_mlp(
            key, [2 * dim_hidden + dims["f"]] + n_hidden * [dim_hidden] + [dim_hidden])
        params["processor"].append({"edge_mlp": edge_mlp, "node_mlp": node_mlp})
    params["decoder_node"], key = init_mlp(
        key, [dim_hidden] + n_hidden * [dim_hidden] + [dims["q_0"]])
    return params


def _pad_mat(m, new_r, new_c, dtype):
    r, c = m.shape
    out = jnp.zeros((new_r, new_c), jnp.float32).at[:r, :c].set(m)
    return out.astype(dtype)


def _pad_mlp(mlp_params, first_in):
    """Zero-pad feature dims to LANE multiples (padded hidden units stay identically
    0 through Linear+SiLU, so results are exact). Weights bf16, biases f32."""
    packed = []
    for i, (w, b) in enumerate(mlp_params):
        in_dim, out_dim = w.shape
        new_in = first_in if i == 0 else _round_up(in_dim, LANE)
        new_out = _round_up(out_dim, LANE)
        packed.append((_pad_mat(w, new_in, new_out, jnp.bfloat16),
                       _pad_mat(b, 1, new_out, jnp.float32)))
    return packed


def pack_params(params, dims, dim_hidden):
    """One-time repack into lane-padded, concat-free, bf16 kernel operands."""
    H = dim_hidden
    HP = _round_up(H, LANE)
    geom_w = _round_up(dims["q_0"] + 1, 8)
    assert dims["f"] == 0, "forward() is called without f; dims['f'] must be 0"
    # TODO(synk): support dims['f'] > 0 / global features u (needs extra W0 row blocks).

    packed = {
        "encoder_node": _pad_mlp(params["encoder_node"],
                                 first_in=params["encoder_node"][0][0].shape[0]),
        # edge encoder consumes the single (E, geom_w) packed [u, ||u||] array
        "encoder_edge": _pad_mlp(params["encoder_edge"], first_in=geom_w),
    }

    packed["processor"] = []
    for layer in params["processor"]:
        w0, b0 = layer["edge_mlp"][0]
        nw0, nb0 = layer["node_mlp"][0]
        packed["processor"].append({
            "edge": {
                "w0e": _pad_mat(w0[0 * H:1 * H, :], HP, HP, jnp.bfloat16),
                "w0s": _pad_mat(w0[1 * H:2 * H, :], HP, HP, jnp.bfloat16),
                "w0d": _pad_mat(w0[2 * H:3 * H, :], HP, HP, jnp.bfloat16),
                "b0": _pad_mat(b0, 1, HP, jnp.float32),
                "rest": _pad_mlp(layer["edge_mlp"][1:], first_in=HP),
            },
            "node": {
                "w0x": _pad_mat(nw0[0 * H:1 * H, :], HP, HP, jnp.bfloat16),
                "w0a": _pad_mat(nw0[1 * H:2 * H, :], HP, HP, jnp.bfloat16),
                "b0": _pad_mat(nb0, 1, HP, jnp.float32),
                "rest": _pad_mlp(layer["node_mlp"][1:], first_in=HP),
            },
        })

    packed["decoder_node"] = _pad_mlp(params["decoder_node"], first_in=HP)
    return packed


# ----------------------------------------------------------------------------
# Forward pass
# ----------------------------------------------------------------------------
def node_movement_corrector_forward(packed, n, edge_index, q_0, t=None, *, q0_dim):
    x = n if t is None else jnp.concatenate([n, t], axis=1)
    src = edge_index[0]
    dest = edge_index[1]
    dest_2d = dest.reshape(1, -1).astype(jnp.int32)

    # --- Encode ---
    # Edge geometric features (u, ||u||) packed into ONE 8-lane-padded array so the
    # edge encoder is the generic fused-MLP kernel with a single dense input load.
    # TODO(synk): q_0[src]/q_0[dest] row gathers stay as XLA glue.
    u = jnp.take(q_0, src, axis=0) - jnp.take(q_0, dest, axis=0)
    u_norm = jnp.sqrt(jnp.sum(u * u, axis=1, keepdims=True))
    eg = jnp.concatenate([u, u_norm], axis=1)
    geom_w = _round_up(eg.shape[1], 8)
    eg = jnp.pad(eg, ((0, 0), (0, geom_w - eg.shape[1])))

    edge_attr = fused_mlp(eg, packed["encoder_edge"])
    x = fused_mlp(x, packed["encoder_node"])

    # --- Process ---
    for layer in packed["processor"]:
        # TODO(synk): x[src]/x[dest] gathers could be fused into the edge kernel via
        # scalar-prefetched per-tile DMA gathers; kept as XLA glue for now.
        x_src = jnp.take(x, src, axis=0)
        x_dest = jnp.take(x, dest, axis=0)
        edge_attr, res = edge_mlp_apply(layer["edge"], edge_attr, x_src, x_dest)
        # TODO(synk): pre-sorting edges by dest + scalar-prefetched segment offsets
        # would skip the zero blocks of the one-hot scatter for very large graphs.
        x = scatter_node_apply(layer["node"], res, dest_2d, x)

    # --- Decode ---
    x = fused_mlp(x, packed["decoder_node"])
    return x[:, :q0_dim]          # drop the lane padding of the final layer


# ----------------------------------------------------------------------------
# Plain-JAX reference (PyTorch semantics, f32 HIGHEST precision)
# ----------------------------------------------------------------------------
def _mlp_ref(mlp_params, x):
    n_layers = len(mlp_params)
    for i, (w, b) in enumerate(mlp_params):
        x = jnp.dot(x, w, precision=lax.Precision.HIGHEST) + b
        if i != n_layers - 1:
            x = x * jax.nn.sigmoid(x)
    return x


def forward_reference(params, n, edge_index, q_0, t=None):
    x = n if t is None else jnp.concatenate([n, t], axis=1)
    src, dest = edge_index[0], edge_index[1]
    u = q_0[src] - q_0[dest]
    u_norm = jnp.sqrt(jnp.sum(u * u, axis=1, keepdims=True))
    edge_attr = jnp.concatenate([u, u_norm], axis=1)
    x = _mlp_ref(params["encoder_node"], x)
    edge_attr = _mlp_ref(params["encoder_edge"], edge_attr)
    for layer in params["processor"]:
        e_in = jnp.concatenate([edge_attr, x[src], x[dest]], axis=1)
        e_res = _mlp_ref(layer["edge_mlp"], e_in)
        agg = jnp.zeros((x.shape[0], e_res.shape[1]), jnp.float32).at[dest].add(e_res)
        x_res = _mlp_ref(layer["node_mlp"], jnp.concatenate([x, agg], axis=1))
        x = x + x_res
        edge_attr = edge_attr + e_res
    return _mlp_ref(params["decoder_node"], x)


# ----------------------------------------------------------------------------
if __name__ == "__main__":
    args = {"passes": 2, "n_hidden": 2, "dim_hidden": 32}
    dims = {"z": 8, "n": 4, "q_0": 3, "f": 0}   # f=0 (forward is called with f=None)
    N_NODES, N_EDGES = 64, 128

    key = jax.random.PRNGKey(0)
    kp, kn, kq, ke = jax.random.split(key, 4)

    params = init_node_movement_corrector(kp, args, dims, fm=False)
    packed = pack_params(params, dims, args["dim_hidden"])

    n = jax.random.normal(kn, (N_NODES, dims["n"]), jnp.float32)
    q_0 = jax.random.normal(kq, (N_NODES, dims["q_0"]), jnp.float32)
    edge_index = jax.random.randint(ke, (2, N_EDGES), 0, N_NODES, dtype=jnp.int32)

    fwd = jax.jit(functools.partial(node_movement_corrector_forward, q0_dim=dims["q_0"]))
    out = jax.block_until_ready(fwd(packed, n, edge_index, q_0))
    assert out.shape == (N_NODES, dims["q_0"]) and out.dtype == jnp.float32

    ref = jax.block_until_ready(forward_reference(params, n, edge_index, q_0))
    # Tolerance accounts for bf16 MXU operands (f32 accumulation) vs the f32
    # HIGHEST-precision reference, per the perf-review guidance.
    max_err = float(jnp.max(jnp.abs(out - ref)))
    assert jnp.allclose(out, ref, rtol=7e-2, atol=7e-2), max_err

    print("KERNEL_OK")
</pallas_src>

<mosaic_0001>
module attributes {stable_mosaic.version = 11 : i64} {
  func.func @_fused_mlp_kernel(%arg0: i32, %arg1: memref<128x8xf32, #tpu.memory_space<vmem>>, %arg2: memref<8x128xbf16, #tpu.memory_space<vmem>>, %arg3: memref<1x128xf32, #tpu.memory_space<vmem>>, %arg4: memref<128x128xbf16, #tpu.memory_space<vmem>>, %arg5: memref<1x128xf32, #tpu.memory_space<vmem>>, %arg6: memref<128x128xbf16, #tpu.memory_space<vmem>>, %arg7: memref<1x128xf32, #tpu.memory_space<vmem>>, %arg8: memref<128x128xf32, #tpu.memory_space<vmem>>) attributes {dimension_semantics = [#tpu.dimension_semantics<parallel>], iteration_bounds = array<i64: 1>, scalar_prefetch = 0 : i64, scratch_operands = 0 : i64, tpu.core_type = #tpu.core_type<tc>, window_params = [{transform_indices = @transform_0, window_bounds = array<i64: 128, 8>}, {pipeline_mode = #tpu.pipeline_mode<synchronous>, transform_indices = @transform_1, window_bounds = array<i64: 8, 128>}, {pipeline_mode = #tpu.pipeline_mode<synchronous>, transform_indices = @transform_2, window_bounds = array<i64: 1, 128>}, {pipeline_mode = #tpu.pipeline_mode<synchronous>, transform_indices = @transform_3, window_bounds = array<i64: 128, 128>}, {pipeline_mode = #tpu.pipeline_mode<synchronous>, transform_indices = @transform_4, window_bounds = array<i64: 1, 128>}, {pipeline_mode = #tpu.pipeline_mode<synchronous>, transform_indices = @transform_5, window_bounds = array<i64: 128, 128>}, {pipeline_mode = #tpu.pipeline_mode<synchronous>, transform_indices = @transform_6, window_bounds = array<i64: 1, 128>}, {transform_indices = @transform_7, window_bounds = array<i64: 128, 128>}]} {
    %c0 = arith.constant 0 : index
    %c0_0 = arith.constant 0 : index
    %0 = vector.load %arg1[%c0, %c0_0] : memref<128x8xf32, #tpu.memory_space<vmem>>, vector<128x8xf32>
    %c0_1 = arith.constant 0 : index
    %c0_2 = arith.constant 0 : index
    %1 = vector.load %arg2[%c0_1, %c0_2] : memref<8x128xbf16, #tpu.memory_space<vmem>>, vector<8x128xbf16>
    %c0_3 = arith.constant 0 : index
    %c0_4 = arith.constant 0 : index
    %2 = vector.load %arg3[%c0_3, %c0_4] : memref<1x128xf32, #tpu.memory_space<vmem>>, vector<1x128xf32>
    %3 = arith.truncf %0 : vector<128x8xf32> to vector<128x8xbf16>
    %cst = arith.constant dense<0.000000e+00> : vector<128x128xf32>
    %4 = tpu.matmul %3, %1, %cst {dimension_numbers = #tpu.dot_dimension_numbers<[1], [0], [0], [1], [0, 0, 1, 1], [], []>} : vector<128x8xbf16>, vector<8x128xbf16>, vector<128x128xf32> -> vector<128x128xf32>
    %5 = vector.broadcast %2 : vector<1x128xf32> to vector<128x128xf32>
    %6 = arith.addf %4, %5 : vector<128x128xf32>
    %7 = arith.negf %6 : vector<128x128xf32>
    %8 = math.exp %7 : vector<128x128xf32>
    %cst_5 = arith.constant 1.000000e+00 : f32
    %9 = vector.broadcast %cst_5 : f32 to vector<128x128xf32>
    %10 = arith.addf %9, %8 : vector<128x128xf32>
    %11 = arith.divf %9, %10 : vector<128x128xf32>
    %12 = arith.mulf %6, %11 : vector<128x128xf32>
    %c0_6 = arith.constant 0 : index
    %c0_7 = arith.constant 0 : index
    %13 = vector.load %arg4[%c0_6, %c0_7] : memref<128x128xbf16, #tpu.memory_space<vmem>>, vector<128x128xbf16>
    %c0_8 = arith.constant 0 : index
    %c0_9 = arith.constant 0 : index
    %14 = vector.load %arg5[%c0_8, %c0_9] : memref<1x128xf32, #tpu.memory_space<vmem>>, vector<1x128xf32>
    %15 = arith.truncf %12 : vector<128x128xf32> to vector<128x128xbf16>
    %cst_10 = arith.constant dense<0.000000e+00> : vector<128x128xf32>
    %16 = tpu.matmul %15, %13, %cst_10 {dimension_numbers = #tpu.dot_dimension_numbers<[1], [0], [0], [1], [0, 0, 1, 1], [], []>} : vector<128x128xbf16>, vector<128x128xbf16>, vector<128x128xf32> -> vector<128x128xf32>
    %17 = vector.broadcast %14 : vector<1x128xf32> to vector<128x128xf32>
    %18 = arith.addf %16, %17 : vector<128x128xf32>
    %19 = arith.negf %18 : vector<128x128xf32>
    %20 = math.exp %19 : vector<128x128xf32>
    %cst_11 = arith.constant 1.000000e+00 : f32
    %21 = vector.broadcast %cst_11 : f32 to vector<128x128xf32>
    %22 = arith.addf %21, %20 : vector<128x128xf32>
    %23 = arith.divf %21, %22 : vector<128x128xf32>
    %24 = arith.mulf %18, %23 : vector<128x128xf32>
    %c0_12 = arith.constant 0 : index
    %c0_13 = arith.constant 0 : index
    %25 = vector.load %arg6[%c0_12, %c0_13] : memref<128x128xbf16, #tpu.memory_space<vmem>>, vector<128x128xbf16>
    %c0_14 = arith.constant 0 : index
    %c0_15 = arith.constant 0 : index
    %26 = vector.load %arg7[%c0_14, %c0_15] : memref<1x128xf32, #tpu.memory_space<vmem>>, vector<1x128xf32>
    %27 = arith.truncf %24 : vector<128x128xf32> to vector<128x128xbf16>
    %cst_16 = arith.constant dense<0.000000e+00> : vector<128x128xf32>
    %28 = tpu.matmul %27, %25, %cst_16 {dimension_numbers = #tpu.dot_dimension_numbers<[1], [0], [0], [1], [0, 0, 1, 1], [], []>} : vector<128x128xbf16>, vector<128x128xbf16>, vector<128x128xf32> -> vector<128x128xf32>
    %29 = vector.broadcast %26 : vector<1x128xf32> to vector<128x128xf32>
    %30 = arith.addf %28, %29 : vector<128x128xf32>
    %c0_17 = arith.constant 0 : index
    %c0_18 = arith.constant 0 : index
    %31 = vector.load %arg8[%c0_17, %c0_18] : memref<128x128xf32, #tpu.memory_space<vmem>>, vector<128x128xf32>
    tpu.vector_store %arg8[%c0_17, %c0_18], %30 {strides = array<i32>} : memref<128x128xf32, #tpu.memory_space<vmem>>, vector<128x128xf32>,
    return
  }
  func.func @transform_0(%arg0: i32) -> (i32, i32) {
    %c0_i32 = arith.constant 0 : i32
    %c0_i32_0 = arith.constant 0 : i32
    return %arg0, %c0_i32 : i32, i32
  }
  func.func @transform_1(%arg0: i32) -> (i32, i32) {
    %c0_i32 = arith.constant 0 : i32
    %c0_i32_0 = arith.constant 0 : i32
    %c0_i32_1 = arith.constant 0 : i32
    return %c0_i32, %c0_i32_0 : i32, i32
  }
  func.func @transform_2(%arg0: i32) -> (i32, i32) {
    %c0_i32 = arith.constant 0 : i32
    %c0_i32_0 = arith.constant 0 : i32
    %c0_i32_1 = arith.constant 0 : i32
    return %c0_i32, %c0_i32_0 : i32, i32
  }
  func.func @transform_3(%arg0: i32) -> (i32, i32) {
    %c0_i32 = arith.constant 0 : i32
    %c0_i32_0 = arith.constant 0 : i32
    %c0_i32_1 = arith.constant 0 : i32
    return %c0_i32, %c0_i32_0 : i32, i32
  }
  func.func @transform_4(%arg0: i32) -> (i32, i32) {
    %c0_i32 = arith.constant 0 : i32
    %c0_i32_0 = arith.constant 0 : i32
    %c0_i32_1 = arith.constant 0 : i32
    return %c0_i32, %c0_i32_0 : i32, i32
  }
  func.func @transform_5(%arg0: i32) -> (i32, i32) {
    %c0_i32 = arith.constant 0 : i32
    %c0_i32_0 = arith.constant 0 : i32
    %c0_i32_1 = arith.constant 0 : i32
    return %c0_i32, %c0_i32_0 : i32, i32
  }
  func.func @transform_6(%arg0: i32) -> (i32, i32) {
    %c0_i32 = arith.constant 0 : i32
    %c0_i32_0 = arith.constant 0 : i32
    %c0_i32_1 = arith.constant 0 : i32
    return %c0_i32, %c0_i32_0 : i32, i32
  }
  func.func @transform_7(%arg0: i32) -> (i32, i32) {
    %c0_i32 = arith.constant 0 : i32
    %c0_i32_0 = arith.constant 0 : i32
    return %arg0, %c0_i32 : i32, i32
  }
}

module attributes {stable_mosaic.version = 11 : i64} {
  func.func @_fused_mlp_kernel(%arg0: i32, %arg1: memref<64x4xf32, #tpu.memory_space<vmem>>, %arg2: memref<4x128xbf16, #tpu.memory_space<vmem>>, %arg3: memref<1x128xf32, #tpu.memory_space<vmem>>, %arg4: memref<128x128xbf16, #tpu.memory_space<vmem>>, %arg5: memref<1x128xf32, #tpu.memory_space<vmem>>, %arg6: memref<128x128xbf16, #tpu.memory_space<vmem>>, %arg7: memref<1x128xf32, #tpu.memory_space<vmem>>, %arg8: memref<64x128xf32, #tpu.memory_space<vmem>>) attributes {dimension_semantics = [#tpu.dimension_semantics<parallel>], iteration_bounds = array<i64: 1>, scalar_prefetch = 0 : i64, scratch_operands = 0 : i64, tpu.core_type = #tpu.core_type<tc>, window_params = [{transform_indices = @transform_0, window_bounds = array<i64: 64, 4>}, {pipeline_mode = #tpu.pipeline_mode<synchronous>, transform_indices = @transform_1, window_bounds = array<i64: 4, 128>}, {pipeline_mode = #tpu.pipeline_mode<synchronous>, transform_indices = @transform_2, window_bounds = array<i64: 1, 128>}, {pipeline_mode = #tpu.pipeline_mode<synchronous>, transform_indices = @transform_3, window_bounds = array<i64: 128, 128>}, {pipeline_mode = #tpu.pipeline_mode<synchronous>, transform_indices = @transform_4, window_bounds = array<i64: 1, 128>}, {pipeline_mode = #tpu.pipeline_mode<synchronous>, transform_indices = @transform_5, window_bounds = array<i64: 128, 128>}, {pipeline_mode = #tpu.pipeline_mode<synchronous>, transform_indices = @transform_6, window_bounds = array<i64: 1, 128>}, {transform_indices = @transform_7, window_bounds = array<i64: 64, 128>}]} {
    %c0 = arith.constant 0 : index
    %c0_0 = arith.constant 0 : index
    %0 = vector.load %arg1[%c0, %c0_0] : memref<64x4xf32, #tpu.memory_space<vmem>>, vector<64x4xf32>
    %c0_1 = arith.constant 0 : index
    %c0_2 = arith.constant 0 : index
    %1 = vector.load %arg2[%c0_1, %c0_2] : memref<4x128xbf16, #tpu.memory_space<vmem>>, vector<4x128xbf16>
    %c0_3 = arith.constant 0 : index
    %c0_4 = arith.constant 0 : index
    %2 = vector.load %arg3[%c0_3, %c0_4] : memref<1x128xf32, #tpu.memory_space<vmem>>, vector<1x128xf32>
    %3 = arith.truncf %0 : vector<64x4xf32> to vector<64x4xbf16>
    %cst = arith.constant dense<0.000000e+00> : vector<64x128xf32>
    %4 = tpu.matmul %3, %1, %cst {dimension_numbers = #tpu.dot_dimension_numbers<[1], [0], [0], [1], [0, 0, 1, 1], [], []>} : vector<64x4xbf16>, vector<4x128xbf16>, vector<64x128xf32> -> vector<64x128xf32>
    %5 = vector.broadcast %2 : vector<1x128xf32> to vector<64x128xf32>
    %6 = arith.addf %4, %5 : vector<64x128xf32>
    %7 = arith.negf %6 : vector<64x128xf32>
    %8 = math.exp %7 : vector<64x128xf32>
    %cst_5 = arith.constant 1.000000e+00 : f32
    %9 = vector.broadcast %cst_5 : f32 to vector<64x128xf32>
    %10 = arith.addf %9, %8 : vector<64x128xf32>
    %11 = arith.divf %9, %10 : vector<64x128xf32>
    %12 = arith.mulf %6, %11 : vector<64x128xf32>
    %c0_6 = arith.constant 0 : index
    %c0_7 = arith.constant 0 : index
    %13 = vector.load %arg4[%c0_6, %c0_7] : memref<128x128xbf16, #tpu.memory_space<vmem>>, vector<128x128xbf16>
    %c0_8 = arith.constant 0 : index
    %c0_9 = arith.constant 0 : index
    %14 = vector.load %arg5[%c0_8, %c0_9] : memref<1x128xf32, #tpu.memory_space<vmem>>, vector<1x128xf32>
    %15 = arith.truncf %12 : vector<64x128xf32> to vector<64x128xbf16>
    %cst_10 = arith.constant dense<0.000000e+00> : vector<64x128xf32>
    %16 = tpu.matmul %15, %13, %cst_10 {dimension_numbers = #tpu.dot_dimension_numbers<[1], [0], [0], [1], [0, 0, 1, 1], [], []>} : vector<64x128xbf16>, vector<128x128xbf16>, vector<64x128xf32> -> vector<64x128xf32>
    %17 = vector.broadcast %14 : vector<1x128xf32> to vector<64x128xf32>
    %18 = arith.addf %16, %17 : vector<64x128xf32>
    %19 = arith.negf %18 : vector<64x128xf32>
    %20 = math.exp %19 : vector<64x128xf32>
    %cst_11 = arith.constant 1.000000e+00 : f32
    %21 = vector.broadcast %cst_11 : f32 to vector<64x128xf32>
    %22 = arith.addf %21, %20 : vector<64x128xf32>
    %23 = arith.divf %21, %22 : vector<64x128xf32>
    %24 = arith.mulf %18, %23 : vector<64x128xf32>
    %c0_12 = arith.constant 0 : index
    %c0_13 = arith.constant 0 : index
    %25 = vector.load %arg6[%c0_12, %c0_13] : memref<128x128xbf16, #tpu.memory_space<vmem>>, vector<128x128xbf16>
    %c0_14 = arith.constant 0 : index
    %c0_15 = arith.constant 0 : index
    %26 = vector.load %arg7[%c0_14, %c0_15] : memref<1x128xf32, #tpu.memory_space<vmem>>, vector<1x128xf32>
    %27 = arith.truncf %24 : vector<64x128xf32> to vector<64x128xbf16>
    %cst_16 = arith.constant dense<0.000000e+00> : vector<64x128xf32>
    %28 = tpu.matmul %27, %25, %cst_16 {dimension_numbers = #tpu.dot_dimension_numbers<[1], [0], [0], [1], [0, 0, 1, 1], [], []>} : vector<64x128xbf16>, vector<128x128xbf16>, vector<64x128xf32> -> vector<64x128xf32>
    %29 = vector.broadcast %26 : vector<1x128xf32> to vector<64x128xf32>
    %30 = arith.addf %28, %29 : vector<64x128xf32>
    %c0_17 = arith.constant 0 : index
    %c0_18 = arith.constant 0 : index
    %31 = vector.load %arg8[%c0_17, %c0_18] : memref<64x128xf32, #tpu.memory_space<vmem>>, vector<64x128xf32>
    tpu.vector_store %arg8[%c0_17, %c0_18], %30 {strides = array<i32>} : memref<64x128xf32, #tpu.memory_space<vmem>>, vector<64x128xf32>,
    return
  }
  func.func @transform_0(%arg0: i32) -> (i32, i32) {
    %c0_i32 = arith.constant 0 : i32
    %c0_i32_0 = arith.constant 0 : i32
    return %arg0, %c0_i32 : i32, i32
  }
  func.func @transform_1(%arg0: i32) -> (i32, i32) {
    %c0_i32 = arith.constant 0 : i32
    %c0_i32_0 = arith.constant 0 : i32
    %c0_i32_1 = arith.constant 0 : i32
    return %c0_i32, %c0_i32_0 : i32, i32
  }
  func.func @transform_2(%arg0: i32) -> (i32, i32) {
    %c0_i32 = arith.constant 0 : i32
    %c0_i32_0 = arith.constant 0 : i32
    %c0_i32_1 = arith.constant 0 : i32
    return %c0_i32, %c0_i32_0 : i32, i32
  }
  func.func @transform_3(%arg0: i32) -> (i32, i32) {
    %c0_i32 = arith.constant 0 : i32
    %c0_i32_0 = arith.constant 0 : i32
    %c0_i32_1 = arith.constant 0 : i32
    return %c0_i32, %c0_i32_0 : i32, i32
  }
  func.func @transform_4(%arg0: i32) -> (i32, i32) {
    %c0_i32 = arith.constant 0 : i32
    %c0_i32_0 = arith.constant 0 : i32
    %c0_i32_1 = arith.constant 0 : i32
    return %c0_i32, %c0_i32_0 : i32, i32
  }
  func.func @transform_5(%arg0: i32) -> (i32, i32) {
    %c0_i32 = arith.constant 0 : i32
    %c0_i32_0 = arith.constant 0 : i32
    %c0_i32_1 = arith.constant 0 : i32
    return %c0_i32, %c0_i32_0 : i32, i32
  }
  func.func @transform_6(%arg0: i32) -> (i32, i32) {
    %c0_i32 = arith.constant 0 : i32
    %c0_i32_0 = arith.constant 0 : i32
    %c0_i32_1 = arith.constant 0 : i32
    return %c0_i32, %c0_i32_0 : i32, i32
  }
  func.func @transform_7(%arg0: i32) -> (i32, i32) {
    %c0_i32 = arith.constant 0 : i32
    %c0_i32_0 = arith.constant 0 : i32
    return %arg0, %c0_i32 : i32, i32
  }
}

module attributes {stable_mosaic.version = 11 : i64} {
  func.func @_edge_mlp_kernel(%arg0: i32, %arg1: memref<128x128xf32, #tpu.memory_space<vmem>>, %arg2: memref<128x128xf32, #tpu.memory_space<vmem>>, %arg3: memref<128x128xf32, #tpu.memory_space<vmem>>, %arg4: memref<128x128xbf16, #tpu.memory_space<vmem>>, %arg5: memref<128x128xbf16, #tpu.memory_space<vmem>>, %arg6: memref<128x128xbf16, #tpu.memory_space<vmem>>, %arg7: memref<1x128xf32, #tpu.memory_space<vmem>>, %arg8: memref<128x128xbf16, #tpu.memory_space<vmem>>, %arg9: memref<1x128xf32, #tpu.memory_space<vmem>>, %arg10: memref<128x128xbf16, #tpu.memory_space<vmem>>, %arg11: memref<1x128xf32, #tpu.memory_space<vmem>>, %arg12: memref<128x128xf32, #tpu.memory_space<vmem>>, %arg13: memref<128x128xbf16, #tpu.memory_space<vmem>>) attributes {dimension_semantics = [#tpu.dimension_semantics<parallel>], iteration_bounds = array<i64: 1>, scalar_prefetch = 0 : i64, scratch_operands = 0 : i64, tpu.core_type = #tpu.core_type<tc>, window_params = [{transform_indices = @transform_0, window_bounds = array<i64: 128, 128>}, {transform_indices = @transform_1, window_bounds = array<i64: 128, 128>}, {transform_indices = @transform_2, window_bounds = array<i64: 128, 128>}, {pipeline_mode = #tpu.pipeline_mode<synchronous>, transform_indices = @transform_3, window_bounds = array<i64: 128, 128>}, {pipeline_mode = #tpu.pipeline_mode<synchronous>, transform_indices = @transform_4, window_bounds = array<i64: 128, 128>}, {pipeline_mode = #tpu.pipeline_mode<synchronous>, transform_indices = @transform_5, window_bounds = array<i64: 128, 128>}, {pipeline_mode = #tpu.pipeline_mode<synchronous>, transform_indices = @transform_6, window_bounds = array<i64: 1, 128>}, {pipeline_mode = #tpu.pipeline_mode<synchronous>, transform_indices = @transform_7, window_bounds = array<i64: 128, 128>}, {pipeline_mode = #tpu.pipeline_mode<synchronous>, transform_indices = @transform_8, window_bounds = array<i64: 1, 128>}, {pipeline_mode = #tpu.pipeline_mode<synchronous>, transform_indices = @transform_9, window_bounds = array<i64: 128, 128>}, {pipeline_mode = #tpu.pipeline_mode<synchronous>, transform_indices = @transform_10, window_bounds = array<i64: 1, 128>}, {transform_indices = @transform_11, window_bounds = array<i64: 128, 128>}, {transform_indices = @transform_12, window_bounds = array<i64: 128, 128>}]} {
    %c0 = arith.constant 0 : index
    %c0_0 = arith.constant 0 : index
    %0 = vector.load %arg1[%c0, %c0_0] : memref<128x128xf32, #tpu.memory_space<vmem>>, vector<128x128xf32>
    %1 = arith.truncf %0 : vector<128x128xf32> to vector<128x128xbf16>
    %c0_1 = arith.constant 0 : index
    %c0_2 = arith.constant 0 : index
    %2 = vector.load %arg4[%c0_1, %c0_2] : memref<128x128xbf16, #tpu.memory_space<vmem>>, vector<128x128xbf16>
    %cst = arith.constant dense<0.000000e+00> : vector<128x128xf32>
    %3 = tpu.matmul %1, %2, %cst {dimension_numbers = #tpu.dot_dimension_numbers<[1], [0], [0], [1], [0, 0, 1, 1], [], []>} : vector<128x128xbf16>, vector<128x128xbf16>, vector<128x128xf32> -> vector<128x128xf32>
    %c0_3 = arith.constant 0 : index
    %c0_4 = arith.constant 0 : index
    %4 = vector.load %arg2[%c0_3, %c0_4] : memref<128x128xf32, #tpu.memory_space<vmem>>, vector<128x128xf32>
    %5 = arith.truncf %4 : vector<128x128xf32> to vector<128x128xbf16>
    %c0_5 = arith.constant 0 : index
    %c0_6 = arith.constant 0 : index
    %6 = vector.load %arg5[%c0_5, %c0_6] : memref<128x128xbf16, #tpu.memory_space<vmem>>, vector<128x128xbf16>
    %cst_7 = arith.constant dense<0.000000e+00> : vector<128x128xf32>
    %7 = tpu.matmul %5, %6, %cst_7 {dimension_numbers = #tpu.dot_dimension_numbers<[1], [0], [0], [1], [0, 0, 1, 1], [], []>} : vector<128x128xbf16>, vector<128x128xbf16>, vector<128x128xf32> -> vector<128x128xf32>
    %8 = arith.addf %3, %7 : vector<128x128xf32>
    %c0_8 = arith.constant 0 : index
    %c0_9 = arith.constant 0 : index
    %9 = vector.load %arg3[%c0_8, %c0_9] : memref<128x128xf32, #tpu.memory_space<vmem>>, vector<128x128xf32>
    %10 = arith.truncf %9 : vector<128x128xf32> to vector<128x128xbf16>
    %c0_10 = arith.constant 0 : index
    %c0_11 = arith.constant 0 : index
    %11 = vector.load %arg6[%c0_10, %c0_11] : memref<128x128xbf16, #tpu.memory_space<vmem>>, vector<128x128xbf16>
    %cst_12 = arith.constant dense<0.000000e+00> : vector<128x128xf32>
    %12 = tpu.matmul %10, %11, %cst_12 {dimension_numbers = #tpu.dot_dimension_numbers<[1], [0], [0], [1], [0, 0, 1, 1], [], []>} : vector<128x128xbf16>, vector<128x128xbf16>, vector<128x128xf32> -> vector<128x128xf32>
    %13 = arith.addf %8, %12 : vector<128x128xf32>
    %c0_13 = arith.constant 0 : index
    %c0_14 = arith.constant 0 : index
    %14 = vector.load %arg7[%c0_13, %c0_14] : memref<1x128xf32, #tpu.memory_space<vmem>>, vector<1x128xf32>
    %15 = vector.broadcast %14 : vector<1x128xf32> to vector<128x128xf32>
    %16 = arith.addf %13, %15 : vector<128x128xf32>
    %17 = arith.negf %16 : vector<128x128xf32>
    %18 = math.exp %17 : vector<128x128xf32>
    %cst_15 = arith.constant 1.000000e+00 : f32
    %19 = vector.broadcast %cst_15 : f32 to vector<128x128xf32>
    %20 = arith.addf %19, %18 : vector<128x128xf32>
    %21 = arith.divf %19, %20 : vector<128x128xf32>
    %22 = arith.mulf %16, %21 : vector<128x128xf32>
    %c0_16 = arith.constant 0 : index
    %c0_17 = arith.constant 0 : index
    %23 = vector.load %arg8[%c0_16, %c0_17] : memref<128x128xbf16, #tpu.memory_space<vmem>>, vector<128x128xbf16>
    %c0_18 = arith.constant 0 : index
    %c0_19 = arith.constant 0 : index
    %24 = vector.load %arg9[%c0_18, %c0_19] : memref<1x128xf32, #tpu.memory_space<vmem>>, vector<1x128xf32>
    %25 = arith.truncf %22 : vector<128x128xf32> to vector<128x128xbf16>
    %cst_20 = arith.constant dense<0.000000e+00> : vector<128x128xf32>
    %26 = tpu.matmul %25, %23, %cst_20 {dimension_numbers = #tpu.dot_dimension_numbers<[1], [0], [0], [1], [0, 0, 1, 1], [], []>} : vector<128x128xbf16>, vector<128x128xbf16>, vector<128x128xf32> -> vector<128x128xf32>
    %27 = vector.broadcast %24 : vector<1x128xf32> to vector<128x128xf32>
    %28 = arith.addf %26, %27 : vector<128x128xf32>
    %29 = arith.negf %28 : vector<128x128xf32>
    %30 = math.exp %29 : vector<128x128xf32>
    %cst_21 = arith.constant 1.000000e+00 : f32
    %31 = vector.broadcast %cst_21 : f32 to vector<128x128xf32>
    %32 = arith.addf %31, %30 : vector<128x128xf32>
    %33 = arith.divf %31, %32 : vector<128x128xf32>
    %34 = arith.mulf %28, %33 : vector<128x128xf32>
    %c0_22 = arith.constant 0 : index
    %c0_23 = arith.constant 0 : index
    %35 = vector.load %arg10[%c0_22, %c0_23] : memref<128x128xbf16, #tpu.memory_space<vmem>>, vector<128x128xbf16>
    %c0_24 = arith.constant 0 : index
    %c0_25 = arith.constant 0 : index
    %36 = vector.load %arg11[%c0_24, %c0_25] : memref<1x128xf32, #tpu.memory_space<vmem>>, vector<1x128xf32>
    %37 = arith.truncf %34 : vector<128x128xf32> to vector<128x128xbf16>
    %cst_26 = arith.constant dense<0.000000e+00> : vector<128x128xf32>
    %38 = tpu.matmul %37, %35, %cst_26 {dimension_numbers = #tpu.dot_dimension_numbers<[1], [0], [0], [1], [0, 0, 1, 1], [], []>} : vector<128x128xbf16>, vector<128x128xbf16>, vector<128x128xf32> -> vector<128x128xf32>
    %39 = vector.broadcast %36 : vector<1x128xf32> to vector<128x128xf32>
    %40 = arith.addf %38, %39 : vector<128x128xf32>
    %41 = arith.addf %0, %40 : vector<128x128xf32>
    %c0_27 = arith.constant 0 : index
    %c0_28 = arith.constant 0 : index
    %42 = vector.load %arg12[%c0_27, %c0_28] : memref<128x128xf32, #tpu.memory_space<vmem>>, vector<128x128xf32>
    tpu.vector_store %arg12[%c0_27, %c0_28], %41 {strides = array<i32>} : memref<128x128xf32, #tpu.memory_space<vmem>>, vector<128x128xf32>,
    %43 = arith.truncf %40 : vector<128x128xf32> to vector<128x128xbf16>
    %c0_29 = arith.constant 0 : index
    %c0_30 = arith.constant 0 : index
    %44 = vector.load %arg13[%c0_29, %c0_30] : memref<128x128xbf16, #tpu.memory_space<vmem>>, vector<128x128xbf16>
    tpu.vector_store %arg13[%c0_29, %c0_30], %43 {strides = array<i32>} : memref<128x128xbf16, #tpu.memory_space<vmem>>, vector<128x128xbf16>,
    return
  }
  func.func @transform_0(%arg0: i32) -> (i32, i32) {
    %c0_i32 = arith.constant 0 : i32
    %c0_i32_0 = arith.constant 0 : i32
    return %arg0, %c0_i32 : i32, i32
  }
  func.func @transform_1(%arg0: i32) -> (i32, i32) {
    %c0_i32 = arith.constant 0 : i32
    %c0_i32_0 = arith.constant 0 : i32
    return %arg0, %c0_i32 : i32, i32
  }
  func.func @transform_2(%arg0: i32) -> (i32, i32) {
    %c0_i32 = arith.constant 0 : i32
    %c0_i32_0 = arith.constant 0 : i32
    return %arg0, %c0_i32 : i32, i32
  }
  func.func @transform_3(%arg0: i32) -> (i32, i32) {
    %c0_i32 = arith.constant 0 : i32
    %c0_i32_0 = arith.constant 0 : i32
    %c0_i32_1 = arith.constant 0 : i32
    return %c0_i32, %c0_i32_0 : i32, i32
  }
  func.func @transform_4(%arg0: i32) -> (i32, i32) {
    %c0_i32 = arith.constant 0 : i32
    %c0_i32_0 = arith.constant 0 : i32
    %c0_i32_1 = arith.constant 0 : i32
    return %c0_i32, %c0_i32_0 : i32, i32
  }
  func.func @transform_5(%arg0: i32) -> (i32, i32) {
    %c0_i32 = arith.constant 0 : i32
    %c0_i32_0 = arith.constant 0 : i32
    %c0_i32_1 = arith.constant 0 : i32
    return %c0_i32, %c0_i32_0 : i32, i32
  }
  func.func @transform_6(%arg0: i32) -> (i32, i32) {
    %c0_i32 = arith.constant 0 : i32
    %c0_i32_0 = arith.constant 0 : i32
    %c0_i32_1 = arith.constant 0 : i32
    return %c0_i32, %c0_i32_0 : i32, i32
  }
  func.func @transform_7(%arg0: i32) -> (i32, i32) {
    %c0_i32 = arith.constant 0 : i32
    %c0_i32_0 = arith.constant 0 : i32
    %c0_i32_1 = arith.constant 0 : i32
    return %c0_i32, %c0_i32_0 : i32, i32
  }
  func.func @transform_8(%arg0: i32) -> (i32, i32) {
    %c0_i32 = arith.constant 0 : i32
    %c0_i32_0 = arith.constant 0 : i32
    %c0_i32_1 = arith.constant 0 : i32
    return %c0_i32, %c0_i32_0 : i32, i32
  }
  func.func @transform_9(%arg0: i32) -> (i32, i32) {
    %c0_i32 = arith.constant 0 : i32
    %c0_i32_0 = arith.constant 0 : i32
    %c0_i32_1 = arith.constant 0 : i32
    return %c0_i32, %c0_i32_0 : i32, i32
  }
  func.func @transform_10(%arg0: i32) -> (i32, i32) {
    %c0_i32 = arith.constant 0 : i32
    %c0_i32_0 = arith.constant 0 : i32
    %c0_i32_1 = arith.constant 0 : i32
    return %c0_i32, %c0_i32_0 : i32, i32
  }
  func.func @transform_11(%arg0: i32) -> (i32, i32) {
    %c0_i32 = arith.constant 0 : i32
    %c0_i32_0 = arith.constant 0 : i32
    return %arg0, %c0_i32 : i32, i32
  }
  func.func @transform_12(%arg0: i32) -> (i32, i32) {
    %c0_i32 = arith.constant 0 : i32
    %c0_i32_0 = arith.constant 0 : i32
    return %arg0, %c0_i32 : i32, i32
  }
}

module attributes {stable_mosaic.version = 11 : i64} {
  func.func @_scatter_node_kernel(%arg0: i32, %arg1: i32, %arg2: memref<128x128xbf16, #tpu.memory_space<vmem>>, %arg3: memref<1x128xi32, #tpu.memory_space<vmem>>, %arg4: memref<64x128xf32, #tpu.memory_space<vmem>>, %arg5: memref<128x128xbf16, #tpu.memory_space<vmem>>, %arg6: memref<128x128xbf16, #tpu.memory_space<vmem>>, %arg7: memref<1x128xf32, #tpu.memory_space<vmem>>, %arg8: memref<128x128xbf16, #tpu.memory_space<vmem>>, %arg9: memref<1x128xf32, #tpu.memory_space<vmem>>, %arg10: memref<128x128xbf16, #tpu.memory_space<vmem>>, %arg11: memref<1x128xf32, #tpu.memory_space<vmem>>, %arg12: memref<64x128xf32, #tpu.memory_space<vmem>>, %arg13: memref<64x128xf32, #tpu.memory_space<vmem>>) attributes {dimension_semantics = [#tpu.dimension_semantics<parallel>, #tpu.dimension_semantics<arbitrary>], iteration_bounds = array<i64: 1, 1>, scalar_prefetch = 0 : i64, scratch_operands = 1 : i64, tpu.core_type = #tpu.core_type<tc>, window_params = [{transform_indices = @transform_0, window_bounds = array<i64: 128, 128>}, {transform_indices = @transform_1, window_bounds = array<i64: 1, 128>}, {transform_indices = @transform_2, window_bounds = array<i64: 64, 128>}, {pipeline_mode = #tpu.pipeline_mode<synchronous>, transform_indices = @transform_3, window_bounds = array<i64: 128, 128>}, {pipeline_mode = #tpu.pipeline_mode<synchronous>, transform_indices = @transform_4, window_bounds = array<i64: 128, 128>}, {pipeline_mode = #tpu.pipeline_mode<synchronous>, transform_indices = @transform_5, window_bounds = array<i64: 1, 128>}, {pipeline_mode = #tpu.pipeline_mode<synchronous>, transform_indices = @transform_6, window_bounds = array<i64: 128, 128>}, {pipeline_mode = #tpu.pipeline_mode<synchronous>, transform_indices = @transform_7, window_bounds = array<i64: 1, 128>}, {pipeline_mode = #tpu.pipeline_mode<synchronous>, transform_indices = @transform_8, window_bounds = array<i64: 128, 128>}, {pipeline_mode = #tpu.pipeline_mode<synchronous>, transform_indices = @transform_9, window_bounds = array<i64: 1, 128>}, {transform_indices = @transform_10, window_bounds = array<i64: 64, 128>}]} {
    %c0_i32 = arith.constant 0 : i32
    %0 = arith.cmpi eq, %arg1, %c0_i32 : i32
    %1 = arith.extui %0 : i1 to i32
    %c0_i32_0 = arith.constant 0 : i32
    %2 = arith.cmpi ne, %1, %c0_i32_0 : i32
    scf.if %2 {
      %cst_12 = arith.constant 0.000000e+00 : f32
      %32 = vector.broadcast %cst_12 : f32 to vector<64x128xf32>
      %c0_13 = arith.constant 0 : index
      %c0_14 = arith.constant 0 : index
      %33 = vector.load %arg13[%c0_13, %c0_14] : memref<64x128xf32, #tpu.memory_space<vmem>>, vector<64x128xf32>
      tpu.vector_store %arg13[%c0_13, %c0_14], %32 {strides = array<i32>} : memref<64x128xf32, #tpu.memory_space<vmem>>, vector<64x128xf32>,
    } else {
    }
    %c128_i32 = arith.constant 128 : i32
    %3 = arith.muli %arg1, %c128_i32 : i32
    %4 = tpu.iota {dimensions = array<i32: 0>} : vector<128x1xi32>
    %5 = vector.broadcast %3 : i32 to vector<128x1xi32>
    %6 = arith.addi %5, %4 : vector<128x1xi32>
    %c128_i32_1 = arith.constant 128 : i32
    %7 = vector.broadcast %c128_i32_1 : i32 to vector<128x1xi32>
    %8 = arith.cmpi slt, %6, %7 : vector<128x1xi32>
    %c0 = arith.constant 0 : index
    %c0_2 = arith.constant 0 : index
    %9 = vector.load %arg2[%c0, %c0_2] : memref<128x128xbf16, #tpu.memory_space<vmem>>, vector<128x128xbf16>
    %cst = arith.constant 0.000000e+00 : bf16
    %10 = vector.broadcast %cst : bf16 to vector<128x128xbf16>
    %11 = vector.shape_cast %8 : vector<128x1xi1> to vector<128x1xi1>
    %12 = vector.broadcast %11 : vector<128x1xi1> to vector<128x128xi1>
    %13 = arith.select %12, %9, %10 : vector<128x128xi1>, vector<128x128xbf16>
    %c64_i32 = arith.constant 64 : i32
    %14 = arith.muli %arg0, %c64_i32 : i32
    %15 = tpu.iota {dimensions = array<i32: 0>} : vector<64x1xi32>
    %16 = vector.broadcast %14 : i32 to vector<64x1xi32>
    %17 = arith.addi %16, %15 : vector<64x1xi32>
    %c0_3 = arith.constant 0 : index
    %c0_4 = arith.constant 0 : index
    %18 = vector.load %arg3[%c0_3, %c0_4] : memref<1x128xi32, #tpu.memory_space<vmem>>, vector<1x128xi32>
    %19 = vector.broadcast %17 : vector<64x1xi32> to vector<64x128xi32>
    %20 = vector.broadcast %18 : vector<1x128xi32> to vector<64x128xi32>
    %21 = arith.cmpi eq, %19, %20 : vector<64x128xi32>
    %22 = arith.extui %21 : vector<64x128xi1> to vector<64x128xi32>
    %23 = arith.sitofp %22 : vector<64x128xi32> to vector<64x128xf32>
    %24 = arith.truncf %23 : vector<64x128xf32> to vector<64x128xbf16>
    %c0_5 = arith.constant 0 : index
    %c0_6 = arith.constant 0 : index
    %25 = vector.load %arg13[%c0_5, %c0_6] : memref<64x128xf32, #tpu.memory_space<vmem>>, vector<64x128xf32>
    %cst_7 = arith.constant dense<0.000000e+00> : vector<64x128xf32>
    %26 = tpu.matmul %24, %13, %cst_7 {dimension_numbers = #tpu.dot_dimension_numbers<[1], [0], [0], [1], [0, 0, 1, 1], [], []>} : vector<64x128xbf16>, vector<128x128xbf16>, vector<64x128xf32> -> vector<64x128xf32>
    %27 = arith.addf %25, %26 : vector<64x128xf32>
    %c0_8 = arith.constant 0 : index
    %c0_9 = arith.constant 0 : index
    %28 = vector.load %arg13[%c0_8, %c0_9] : memref<64x128xf32, #tpu.memory_space<vmem>>, vector<64x128xf32>
    tpu.vector_store %arg13[%c0_8, %c0_9], %27 {strides = array<i32>} : memref<64x128xf32, #tpu.memory_space<vmem>>, vector<64x128xf32>,
    %c0_i32_10 = arith.constant 0 : i32
    %29 = arith.cmpi eq, %arg1, %c0_i32_10 : i32
    %30 = arith.extui %29 : i1 to i32
    %c0_i32_11 = arith.constant 0 : i32
    %31 = arith.cmpi ne, %30, %c0_i32_11 : i32
    scf.if %31 {
      %c0_12 = arith.constant 0 : index
      %c0_13 = arith.constant 0 : index
      %32 = vector.load %arg4[%c0_12, %c0_13] : memref<64x128xf32, #tpu.memory_space<vmem>>, vector<64x128xf32>
      %33 = arith.truncf %32 : vector<64x128xf32> to vector<64x128xbf16>
      %c0_14 = arith.constant 0 : index
      %c0_15 = arith.constant 0 : index
      %34 = vector.load %arg5[%c0_14, %c0_15] : memref<128x128xbf16, #tpu.memory_space<vmem>>, vector<128x128xbf16>
      %cst_16 = arith.constant dense<0.000000e+00> : vector<64x128xf32>
      %35 = tpu.matmul %33, %34, %cst_16 {dimension_numbers = #tpu.dot_dimension_numbers<[1], [0], [0], [1], [0, 0, 1, 1], [], []>} : vector<64x128xbf16>, vector<128x128xbf16>, vector<64x128xf32> -> vector<64x128xf32>
      %c0_17 = arith.constant 0 : index
      %c0_18 = arith.constant 0 : index
      %36 = vector.load %arg13[%c0_17, %c0_18] : memref<64x128xf32, #tpu.memory_space<vmem>>, vector<64x128xf32>
      %37 = arith.truncf %36 : vector<64x128xf32> to vector<64x128xbf16>
      %c0_19 = arith.constant 0 : index
      %c0_20 = arith.constant 0 : index
      %38 = vector.load %arg6[%c0_19, %c0_20] : memref<128x128xbf16, #tpu.memory_space<vmem>>, vector<128x128xbf16>
      %cst_21 = arith.constant dense<0.000000e+00> : vector<64x128xf32>
      %39 = tpu.matmul %37, %38, %cst_21 {dimension_numbers = #tpu.dot_dimension_numbers<[1], [0], [0], [1], [0, 0, 1, 1], [], []>} : vector<64x128xbf16>, vector<128x128xbf16>, vector<64x128xf32> -> vector<64x128xf32>
      %40 = arith.addf %35, %39 : vector<64x128xf32>
      %c0_22 = arith.constant 0 : index
      %c0_23 = arith.constant 0 : index
      %41 = vector.load %arg7[%c0_22, %c0_23] : memref<1x128xf32, #tpu.memory_space<vmem>>, vector<1x128xf32>
      %42 = vector.broadcast %41 : vector<1x128xf32> to vector<64x128xf32>
      %43 = arith.addf %40, %42 : vector<64x128xf32>
      %44 = arith.negf %43 : vector<64x128xf32>
      %45 = math.exp %44 : vector<64x128xf32>
      %cst_24 = arith.constant 1.000000e+00 : f32
      %46 = vector.broadcast %cst_24 : f32 to vector<64x128xf32>
      %47 = arith.addf %46, %45 : vector<64x128xf32>
      %48 = arith.divf %46, %47 : vector<64x128xf32>
      %49 = arith.mulf %43, %48 : vector<64x128xf32>
      %c0_25 = arith.constant 0 : index
      %c0_26 = arith.constant 0 : index
      %50 = vector.load %arg8[%c0_25, %c0_26] : memref<128x128xbf16, #tpu.memory_space<vmem>>, vector<128x128xbf16>
      %c0_27 = arith.constant 0 : index
      %c0_28 = arith.constant 0 : index
      %51 = vector.load %arg9[%c0_27, %c0_28] : memref<1x128xf32, #tpu.memory_space<vmem>>, vector<1x128xf32>
      %52 = arith.truncf %49 : vector<64x128xf32> to vector<64x128xbf16>
      %cst_29 = arith.constant dense<0.000000e+00> : vector<64x128xf32>
      %53 = tpu.matmul %52, %50, %cst_29 {dimension_numbers = #tpu.dot_dimension_numbers<[1], [0], [0], [1], [0, 0, 1, 1], [], []>} : vector<64x128xbf16>, vector<128x128xbf16>, vector<64x128xf32> -> vector<64x128xf32>
      %54 = vector.broadcast %51 : vector<1x128xf32> to vector<64x128xf32>
      %55 = arith.addf %53, %54 : vector<64x128xf32>
      %56 = arith.negf %55 : vector<64x128xf32>
      %57 = math.exp %56 : vector<64x128xf32>
      %cst_30 = arith.constant 1.000000e+00 : f32
      %58 = vector.broadcast %cst_30 : f32 to vector<64x128xf32>
      %59 = arith.addf %58, %57 : vector<64x128xf32>
      %60 = arith.divf %58, %59 : vector<64x128xf32>
      %61 = arith.mulf %55, %60 : vector<64x128xf32>
      %c0_31 = arith.constant 0 : index
      %c0_32 = arith.constant 0 : index
      %62 = vector.load %arg10[%c0_31, %c0_32] : memref<128x128xbf16, #tpu.memory_space<vmem>>, vector<128x128xbf16>
      %c0_33 = arith.constant 0 : index
      %c0_34 = arith.constant 0 : index
      %63 = vector.load %arg11[%c0_33, %c0_34] : memref<1x128xf32, #tpu.memory_space<vmem>>, vector<1x128xf32>
      %64 = arith.truncf %61 : vector<64x128xf32> to vector<64x128xbf16>
      %cst_35 = arith.constant dense<0.000000e+00> : vector<64x128xf32>
      %65 = tpu.matmul %64, %62, %cst_35 {dimension_numbers = #tpu.dot_dimension_numbers<[1], [0], [0], [1], [0, 0, 1, 1], [], []>} : vector<64x128xbf16>, vector<128x128xbf16>, vector<64x128xf32> -> vector<64x128xf32>
      %66 = vector.broadcast %63 : vector<1x128xf32> to vector<64x128xf32>
      %67 = arith.addf %65, %66 : vector<64x128xf32>
      %68 = arith.addf %32, %67 : vector<64x128xf32>
      %c0_36 = arith.constant 0 : index
      %c0_37 = arith.constant 0 : index
      %69 = vector.load %arg12[%c0_36, %c0_37] : memref<64x128xf32, #tpu.memory_space<vmem>>, vector<64x128xf32>
      tpu.vector_store %arg12[%c0_36, %c0_37], %68 {strides = array<i32>} : memref<64x128xf32, #tpu.memory_space<vmem>>, vector<64x128xf32>,
    } else {
    }
    return
  }
  func.func @transform_0(%arg0: i32, %arg1: i32) -> (i32, i32) {
    %c0_i32 = arith.constant 0 : i32
    %c0_i32_0 = arith.constant 0 : i32
    return %arg1, %c0_i32 : i32, i32
  }
  func.func @transform_1(%arg0: i32, %arg1: i32) -> (i32, i32) {
    %c0_i32 = arith.constant 0 : i32
    %c0_i32_0 = arith.constant 0 : i32
    return %c0_i32, %arg1 : i32, i32
  }
  func.func @transform_2(%arg0: i32, %arg1: i32) -> (i32, i32) {
    %c0_i32 = arith.constant 0 : i32
    %c0_i32_0 = arith.constant 0 : i32
    return %arg0, %c0_i32 : i32, i32
  }
  func.func @transform_3(%arg0: i32, %arg1: i32) -> (i32, i32) {
    %c0_i32 = arith.constant 0 : i32
    %c0_i32_0 = arith.constant 0 : i32
    %c0_i32_1 = arith.constant 0 : i32
    return %c0_i32, %c0_i32_0 : i32, i32
  }
  func.func @transform_4(%arg0: i32, %arg1: i32) -> (i32, i32) {
    %c0_i32 = arith.constant 0 : i32
    %c0_i32_0 = arith.constant 0 : i32
    %c0_i32_1 = arith.constant 0 : i32
    return %c0_i32, %c0_i32_0 : i32, i32
  }
  func.func @transform_5(%arg0: i32, %arg1: i32) -> (i32, i32) {
    %c0_i32 = arith.constant 0 : i32
    %c0_i32_0 = arith.constant 0 : i32
    %c0_i32_1 = arith.constant 0 : i32
    return %c0_i32, %c0_i32_0 : i32, i32
  }
  func.func @transform_6(%arg0: i32, %arg1: i32) -> (i32, i32) {
    %c0_i32 = arith.constant 0 : i32
    %c0_i32_0 = arith.constant 0 : i32
    %c0_i32_1 = arith.constant 0 : i32
    return %c0_i32, %c0_i32_0 : i32, i32
  }
  func.func @transform_7(%arg0: i32, %arg1: i32) -> (i32, i32) {
    %c0_i32 = arith.constant 0 : i32
    %c0_i32_0 = arith.constant 0 : i32
    %c0_i32_1 = arith.constant 0 : i32
    return %c0_i32, %c0_i32_0 : i32, i32
  }
  func.func @transform_8(%arg0: i32, %arg1: i32) -> (i32, i32) {
    %c0_i32 = arith.constant 0 : i32
    %c0_i32_0 = arith.constant 0 : i32
    %c0_i32_1 = arith.constant 0 : i32
    return %c0_i32, %c0_i32_0 : i32, i32
  }
  func.func @transform_9(%arg0: i32, %arg1: i32) -> (i32, i32) {
    %c0_i32 = arith.constant 0 : i32
    %c0_i32_0 = arith.constant 0 : i32
    %c0_i32_1 = arith.constant 0 : i32
    return %c0_i32, %c0_i32_0 : i32, i32
  }
  func.func @transform_10(%arg0: i32, %arg1: i32) -> (i32, i32) {
    %c0_i32 = arith.constant 0 : i32
    %c0_i32_0 = arith.constant 0 : i32
    return %arg0, %c0_i32 : i32, i32
  }
}

module attributes {stable_mosaic.version = 11 : i64} {
  func.func @_fused_mlp_kernel(%arg0: i32, %arg1: memref<64x128xf32, #tpu.memory_space<vmem>>, %arg2: memref<128x128xbf16, #tpu.memory_space<vmem>>, %arg3: memref<1x128xf32, #tpu.memory_space<vmem>>, %arg4: memref<128x128xbf16, #tpu.memory_space<vmem>>, %arg5: memref<1x128xf32, #tpu.memory_space<vmem>>, %arg6: memref<128x128xbf16, #tpu.memory_space<vmem>>, %arg7: memref<1x128xf32, #tpu.memory_space<vmem>>, %arg8: memref<64x128xf32, #tpu.memory_space<vmem>>) attributes {dimension_semantics = [#tpu.dimension_semantics<parallel>], iteration_bounds = array<i64: 1>, scalar_prefetch = 0 : i64, scratch_operands = 0 : i64, tpu.core_type = #tpu.core_type<tc>, window_params = [{transform_indices = @transform_0, window_bounds = array<i64: 64, 128>}, {pipeline_mode = #tpu.pipeline_mode<synchronous>, transform_indices = @transform_1, window_bounds = array<i64: 128, 128>}, {pipeline_mode = #tpu.pipeline_mode<synchronous>, transform_indices = @transform_2, window_bounds = array<i64: 1, 128>}, {pipeline_mode = #tpu.pipeline_mode<synchronous>, transform_indices = @transform_3, window_bounds = array<i64: 128, 128>}, {pipeline_mode = #tpu.pipeline_mode<synchronous>, transform_indices = @transform_4, window_bounds = array<i64: 1, 128>}, {pipeline_mode = #tpu.pipeline_mode<synchronous>, transform_indices = @transform_5, window_bounds = array<i64: 128, 128>}, {pipeline_mode = #tpu.pipeline_mode<synchronous>, transform_indices = @transform_6, window_bounds = array<i64: 1, 128>}, {transform_indices = @transform_7, window_bounds = array<i64: 64, 128>}]} {
    %c0 = arith.constant 0 : index
    %c0_0 = arith.constant 0 : index
    %0 = vector.load %arg1[%c0, %c0_0] : memref<64x128xf32, #tpu.memory_space<vmem>>, vector<64x128xf32>
    %c0_1 = arith.constant 0 : index
    %c0_2 = arith.constant 0 : index
    %1 = vector.load %arg2[%c0_1, %c0_2] : memref<128x128xbf16, #tpu.memory_space<vmem>>, vector<128x128xbf16>
    %c0_3 = arith.constant 0 : index
    %c0_4 = arith.constant 0 : index
    %2 = vector.load %arg3[%c0_3, %c0_4] : memref<1x128xf32, #tpu.memory_space<vmem>>, vector<1x128xf32>
    %3 = arith.truncf %0 : vector<64x128xf32> to vector<64x128xbf16>
    %cst = arith.constant dense<0.000000e+00> : vector<64x128xf32>
    %4 = tpu.matmul %3, %1, %cst {dimension_numbers = #tpu.dot_dimension_numbers<[1], [0], [0], [1], [0, 0, 1, 1], [], []>} : vector<64x128xbf16>, vector<128x128xbf16>, vector<64x128xf32> -> vector<64x128xf32>
    %5 = vector.broadcast %2 : vector<1x128xf32> to vector<64x128xf32>
    %6 = arith.addf %4, %5 : vector<64x128xf32>
    %7 = arith.negf %6 : vector<64x128xf32>
    %8 = math.exp %7 : vector<64x128xf32>
    %cst_5 = arith.constant 1.000000e+00 : f32
    %9 = vector.broadcast %cst_5 : f32 to vector<64x128xf32>
    %10 = arith.addf %9, %8 : vector<64x128xf32>
    %11 = arith.divf %9, %10 : vector<64x128xf32>
    %12 = arith.mulf %6, %11 : vector<64x128xf32>
    %c0_6 = arith.constant 0 : index
    %c0_7 = arith.constant 0 : index
    %13 = vector.load %arg4[%c0_6, %c0_7] : memref<128x128xbf16, #tpu.memory_space<vmem>>, vector<128x128xbf16>
    %c0_8 = arith.constant 0 : index
    %c0_9 = arith.constant 0 : index
    %14 = vector.load %arg5[%c0_8, %c0_9] : memref<1x128xf32, #tpu.memory_space<vmem>>, vector<1x128xf32>
    %15 = arith.truncf %12 : vector<64x128xf32> to vector<64x128xbf16>
    %cst_10 = arith.constant dense<0.000000e+00> : vector<64x128xf32>
    %16 = tpu.matmul %15, %13, %cst_10 {dimension_numbers = #tpu.dot_dimension_numbers<[1], [0], [0], [1], [0, 0, 1, 1], [], []>} : vector<64x128xbf16>, vector<128x128xbf16>, vector<64x128xf32> -> vector<64x128xf32>
    %17 = vector.broadcast %14 : vector<1x128xf32> to vector<64x128xf32>
    %18 = arith.addf %16, %17 : vector<64x128xf32>
    %19 = arith.negf %18 : vector<64x128xf32>
    %20 = math.exp %19 : vector<64x128xf32>
    %cst_11 = arith.constant 1.000000e+00 : f32
    %21 = vector.broadcast %cst_11 : f32 to vector<64x128xf32>
    %22 = arith.addf %21, %20 : vector<64x128xf32>
    %23 = arith.divf %21, %22 : vector<64x128xf32>
    %24 = arith.mulf %18, %23 : vector<64x128xf32>
    %c0_12 = arith.constant 0 : index
    %c0_13 = arith.constant 0 : index
    %25 = vector.load %arg6[%c0_12, %c0_13] : memref<128x128xbf16, #tpu.memory_space<vmem>>, vector<128x128xbf16>
    %c0_14 = arith.constant 0 : index
    %c0_15 = arith.constant 0 : index
    %26 = vector.load %arg7[%c0_14, %c0_15] : memref<1x128xf32, #tpu.memory_space<vmem>>, vector<1x128xf32>
    %27 = arith.truncf %24 : vector<64x128xf32> to vector<64x128xbf16>
    %cst_16 = arith.constant dense<0.000000e+00> : vector<64x128xf32>
    %28 = tpu.matmul %27, %25, %cst_16 {dimension_numbers = #tpu.dot_dimension_numbers<[1], [0], [0], [1], [0, 0, 1, 1], [], []>} : vector<64x128xbf16>, vector<128x128xbf16>, vector<64x128xf32> -> vector<64x128xf32>
    %29 = vector.broadcast %26 : vector<1x128xf32> to vector<64x128xf32>
    %30 = arith.addf %28, %29 : vector<64x128xf32>
    %c0_17 = arith.constant 0 : index
    %c0_18 = arith.constant 0 : index
    %31 = vector.load %arg8[%c0_17, %c0_18] : memref<64x128xf32, #tpu.memory_space<vmem>>, vector<64x128xf32>
    tpu.vector_store %arg8[%c0_17, %c0_18], %30 {strides = array<i32>} : memref<64x128xf32, #tpu.memory_space<vmem>>, vector<64x128xf32>,
    return
  }
  func.func @transform_0(%arg0: i32) -> (i32, i32) {
    %c0_i32 = arith.constant 0 : i32
    %c0_i32_0 = arith.constant 0 : i32
    return %arg0, %c0_i32 : i32, i32
  }
  func.func @transform_1(%arg0: i32) -> (i32, i32) {
    %c0_i32 = arith.constant 0 : i32
    %c0_i32_0 = arith.constant 0 : i32
    %c0_i32_1 = arith.constant 0 : i32
    return %c0_i32, %c0_i32_0 : i32, i32
  }
  func.func @transform_2(%arg0: i32) -> (i32, i32) {
    %c0_i32 = arith.constant 0 : i32
    %c0_i32_0 = arith.constant 0 : i32
    %c0_i32_1 = arith.constant 0 : i32
    return %c0_i32, %c0_i32_0 : i32, i32
  }
  func.func @transform_3(%arg0: i32) -> (i32, i32) {
    %c0_i32 = arith.constant 0 : i32
    %c0_i32_0 = arith.constant 0 : i32
    %c0_i32_1 = arith.constant 0 : i32
    return %c0_i32, %c0_i32_0 : i32, i32
  }
  func.func @transform_4(%arg0: i32) -> (i32, i32) {
    %c0_i32 = arith.constant 0 : i32
    %c0_i32_0 = arith.constant 0 : i32
    %c0_i32_1 = arith.constant 0 : i32
    return %c0_i32, %c0_i32_0 : i32, i32
  }
  func.func @transform_5(%arg0: i32) -> (i32, i32) {
    %c0_i32 = arith.constant 0 : i32
    %c0_i32_0 = arith.constant 0 : i32
    %c0_i32_1 = arith.constant 0 : i32
    return %c0_i32, %c0_i32_0 : i32, i32
  }
  func.func @transform_6(%arg0: i32) -> (i32, i32) {
    %c0_i32 = arith.constant 0 : i32
    %c0_i32_0 = arith.constant 0 : i32
    %c0_i32_1 = arith.constant 0 : i32
    return %c0_i32, %c0_i32_0 : i32, i32
  }
  func.func @transform_7(%arg0: i32) -> (i32, i32) {
    %c0_i32 = arith.constant 0 : i32
    %c0_i32_0 = arith.constant 0 : i32
    return %arg0, %c0_i32 : i32, i32
  }
}

</mosaic_0001>

<bundles_post_ra>
// kernel: node_movement_corrector_forward.7
= control target key start
LH: loop header
LB: loop body
LE: loop exit
PB: predicated region body
PF: predicated region fallthrough
CT: control target
= control target key end

     0   :  { %vm81_vm0 = vcmask 1043456   ;;  %vm56_vm1 = vcmask 64512   ;;  %s1801_s1 = inlined_call_operand.vmem [shape: bf16[8,128], index: 1, kind: input, shape index: {}]   ;;  %s1802_s0 = inlined_call_operand.vmem [shape: f32[128,8], index: 0, kind: input, shape index: {}]   ;;  %s1803_s2 = inlined_call_operand.vmem [shape: f32[1,128], index: 2, kind: input, shape index: {}]   ;;  %s1804_s3 = inlined_call_operand.vmem [shape: bf16[128,128], index: 3, kind: input, shape index: {}]   ;;  %s1805_s4 = inlined_call_operand.vmem [shape: f32[1,128], index: 4, kind: input, shape index: {}]   ;;  %s1806_s5 = inlined_call_operand.vmem [shape: bf16[128,128], index: 5, kind: input, shape index: {}]   ;;  %s1807_s6 = inlined_call_operand.vmem [shape: f32[1,128], index: 6, kind: input, shape index: {}]   ;;  %s1808_s7 = inlined_call_operand.vmem [shape: f32[128,128], index: 7, kind: output, shape index: {}]  }
   0x1   :  { %v43_v0 = vld [vmem:[%s1801_s1] sm:$0xf]  ;;  %v28_v2 = vld [vmem:[%s1802_s0 + $0x8] sm:$0xff]  ;;  %v29_v5 = vld [vmem:[%s1802_s0 + $0x10] sm:$0xff] }
   0x2   :  { %v27_v1 = vld [vmem:[%s1802_s0] sm:$0xff]  ;;  %v83_v3 = vsel %vm81_vm0, %v43_v0, 0  ;;  %v30_v6 = vld [vmem:[%s1802_s0 + $0x18] sm:$0xff]  ;;  %v32_v9 = vld [vmem:[%s1802_s0 + $0x28] sm:$0xff] }
   0x3   :  { %v45_v4 = vpack.c.bf16 %v28_v2, %v27_v1  ;;  %92 = vmatpush.bf16.msra.mxu0 %v83_v3  ;;  %v46_v7 = vpack.c.bf16 %v30_v6, %v29_v5  ;;  %v31_v8 = vld [vmem:[%s1802_s0 + $0x20] sm:$0xff]  ;;  %v33_v11 = vld [vmem:[%s1802_s0 + $0x30] sm:$0xff]  ;;  %v34_v12 = vld [vmem:[%s1802_s0 + $0x38] sm:$0xff] }
   0x4   :  { %v47_v10 = vpack.c.bf16 %v32_v9, %v31_v8  ;;  %v48_v13 = vpack.c.bf16 %v34_v12, %v33_v11  ;;  %v35_v14 = vld [vmem:[%s1802_s0 + $0x40] sm:$0xff]  ;;  %v36_v15 = vld [vmem:[%s1802_s0 + $0x48] sm:$0xff]  ;;  %v37_v17 = vld [vmem:[%s1802_s0 + $0x50] sm:$0xff] }
   0x5   :  { %v49_v16 = vpack.c.bf16 %v36_v15, %v35_v14  ;;  %v38_v18 = vld [vmem:[%s1802_s0 + $0x58] sm:$0xff]  ;;  %v39_v20 = vld [vmem:[%s1802_s0 + $0x60] sm:$0xff]  ;;  %v40_v21 = vld [vmem:[%s1802_s0 + $0x68] sm:$0xff] }
   0x6   :  { %1044 = vmatmul.msk.bf16.vlgmr.msra.gmra.mxu0 %vm56_vm1, %v45_v4  ;;  %v50_v19 = vpack.c.bf16 %v38_v18, %v37_v17  ;;  %v51_v22 = vpack.c.bf16 %v40_v21, %v39_v20  ;;  %v1155_v23 = vld [vmem:[%s1804_s3 + $0x38] sm:$0xff]  ;;  %v41_v24 = vld [vmem:[%s1802_s0 + $0x70] sm:$0xff]  ;;  %v1153_v28 = vld [vmem:[%s1804_s3 + $0x28] sm:$0xff] }
   0x7   :  { %v42_v25 = vld [vmem:[%s1802_s0 + $0x78] sm:$0xff]  ;;  %530 = vmatpush.bf16.msra.mxu1 %v1155_v23  ;;  %1164 = vmatpush.bf16.msra.mxu3 %v1155_v23  ;;  %v1154_v27 = vld [vmem:[%s1804_s3 + $0x30] sm:$0xff]  ;;  %v1152_v29 = vld [vmem:[%s1804_s3 + $0x20] sm:$0xff] }
   0x8   :  { %v52_v26 = vpack.c.bf16 %v42_v25, %v41_v24  ;;  %v1151_v30 = vld [vmem:[%s1804_s3 + $0x18] sm:$0xff]  ;;  %v1428_v31 = vld [vmem:[%s1803_s2] ss:$0 sm:$0xff]  ;;  %v1150_v32 = vld [vmem:[%s1804_s3 + $0x10] sm:$0xff] }
   0x9   :  { %v1149_v36 = vld [vmem:[%s1804_s3 + $0x8] sm:$0xff]  ;;  %v1148_v37 = vld [vmem:[%s1804_s3] sm:$0xff] }
   0xb   :  { %531 = vmatpush.bf16.msra.mxu1 %v1154_v27  ;;  %1165 = vmatpush.bf16.msra.mxu3 %v1154_v27 }
   0xf   :  { %532 = vmatpush.bf16.msra.mxu1 %v1153_v28  ;;  %1166 = vmatpush.bf16.msra.mxu3 %v1153_v28 }
  0x13   :  { %533 = vmatpush.bf16.msra.mxu1 %v1152_v29  ;;  %1167 = vmatpush.bf16.msra.mxu3 %v1152_v29 }
  0x16   :  { %1045 = vmatmul.msk.bf16.gmra.mxu0 %vm56_vm1, %v46_v7 }
  0x17   :  { %534 = vmatpush.bf16.msra.mxu1 %v1151_v30  ;;  %1168 = vmatpush.bf16.msra.mxu3 %v1151_v30 }
  0x1b   :  { %535 = vmatpush.bf16.msra.mxu1 %v1150_v32  ;;  %1169 = vmatpush.bf16.msra.mxu3 %v1150_v32 }
  0x1f   :  { %536 = vmatpush.bf16.msra.mxu1 %v1149_v36  ;;  %1170 = vmatpush.bf16.msra.mxu3 %v1149_v36 }
  0x23   :  { %537 = vmatpush.bf16.msra.mxu1 %v1148_v37  ;;  %1171 = vmatpush.bf16.msra.mxu3 %v1148_v37 }
  0x26   :  { %1046 = vmatmul.msk.bf16.gmra.mxu0 %vm56_vm1, %v47_v10 }
  0x36   :  { %1047 = vmatmul.msk.bf16.gmra.mxu0 %vm56_vm1, %v48_v13 }
  0x46   :  { %1048 = vmatmul.msk.bf16.gmra.mxu0 %vm56_vm1, %v49_v16 }
  0x56   :  { %1049 = vmatmul.msk.bf16.gmra.mxu0 %vm56_vm1, %v50_v19 }
  0x66   :  { %1050 = vmatmul.msk.bf16.gmra.mxu0 %vm56_vm1, %v51_v22 }
  0x76   :  { %1051 = vmatmul.msk.bf16.gmra.mxu0 %vm56_vm1, %v52_v26 }
  0x83   :  { %v94_v33 = vpop.f32.mrf.mxu0 }
  0x84   :  { %v1434_v34 = vadd.f32 %v1428_v31, %v94_v33 }
  0x86   :  { %v1052_v35 = vmul.f32 -1.442695, %v1434_v34 }
  0x88   :  { %1183 = vpow2.f32 %v1052_v35 }
  0x8b   :  { %v96_v38 = vpop.f32.mrf.mxu0 }
  0x8c   :  { %v97_v39 = vadd.f32 %v1428_v31, %v96_v38 }
  0x8e   :  { %v1184_v40 = vpop.eup %1183  ;;  %v1053_v41 = vmul.f32 -1.442695, %v97_v39 }
  0x8f   :  { %v182_v42 = vadd.f32 1.0, %v1184_v40 }
  0x90   :  { %1185 = vpow2.f32 %v1053_v41 }
  0x91   :  { %1187 = vrcp.f32 %v182_v42  ;;  %v209_v60 = vand.u32 2147483648, %v182_v42  ;;  %vm203_vm3 = vweird.f32 %v182_v42  ;;  %v207_v61 = vand.u32 2147483647, %v182_v42 }
  0x93   :  { %v99_v43 = vpop.f32.mrf.mxu0  ;;  %v210_v6 = vor.u32 1.1754944e-38, %v209_v60  ;;  %vm208_vm6 = vcmp.eq.f32.partialorder %v207_v61, 8.507059e+37 }
  0x94   :  { %v1445_v44 = vadd.f32 %v1428_v31, %v99_v43 }
  0x96   :  { %v1186_v45 = vpop.eup %1185  ;;  %v1054_v46 = vmul.f32 -1.442695, %v1445_v44 }
  0x97   :  { %v1188_v47 = vpop.eup %1187  ;;  %v183_v48 = vadd.f32 1.0, %v1186_v45 }
  0x98   :  { %v199_v49 = vmul.f32 %v1188_v47, %v182_v42  ;;  %1189 = vpow2.f32 %v1054_v46  ;;  %vm204_vm2 = vweird.f32 %v1188_v47 }
  0x99   :  { %1191 = vrcp.f32 %v183_v48  ;;  %vm1455_vm4 = vmor %vm203_vm3, %vm204_vm2  ;;  %v222_v0 = vand.u32 2147483647, %v183_v48  ;;  %v224_v1 = vand.u32 2147483648, %v183_v48  ;;  %vm218_vm7 = vweird.f32 %v183_v48 }
  0x9a   :  { %v200_v50 = vsub.f32 1.0, %v199_v49 }
  0x9b   :  { %v101_v51 = vpop.f32.mrf.mxu0  ;;  %v225_v12 = vor.u32 1.1754944e-38, %v224_v1  ;;  %vm223_vm9 = vcmp.eq.f32.partialorder %v222_v0, 8.507059e+37 }
  0x9c   :  { %v201_v52 = vmul.f32 %v1188_v47, %v200_v50  ;;  %v1449_v53 = vadd.f32 %v1428_v31, %v101_v51 }
  0x9e   :  { %v1190_v54 = vpop.eup %1189  ;;  %v1055_v55 = vmul.f32 -1.442695, %v1449_v53  ;;  %v202_v58 = vadd.f32 %v1188_v47, %v201_v52 }
  0x9f   :  { %v1192_v56 = vpop.eup %1191  ;;  %v1452_v57 = vadd.f32 1.0, %v1190_v54 }
  0xa0   :  { %v214_v59 = vmul.f32 %v1192_v56, %v183_v48  ;;  %1193 = vpow2.f32 %v1055_v55  ;;  %v206_v3 = vsel %vm1455_vm4, %v1188_v47, %v202_v58  ;;  %vm219_vm5 = vweird.f32 %v1192_v56 }
  0xa1   :  { %1195 = vrcp.f32 %v1452_v57  ;;  %v211_v11 = vsel %vm208_vm6, %v210_v6, %v206_v3  ;;  %vm220_vm8 = vmor %vm218_vm7, %vm219_vm5  ;;  %v239_v30 = vand.u32 2147483648, %v1452_v57  ;;  %vm233_vm11 = vweird.f32 %v1452_v57 }
  0xa2   :  { %v215_v62 = vsub.f32 1.0, %v214_v59  ;;  %v438_v17 = vmul.f32 %v211_v11, %v1434_v34  ;;  %v237_v32 = vand.u32 2147483647, %v1452_v57 }
  0xa3   :  { %v104_v2 = vpop.f32.mrf.mxu0  ;;  %v240_v41 = vor.u32 1.1754944e-38, %v239_v30 }
  0xa4   :  { %v216_v4 = vmul.f32 %v1192_v56, %v215_v62  ;;  %v1462_v5 = vadd.f32 %v1428_v31, %v104_v2  ;;  %vm238_vm14 = vcmp.eq.f32.partialorder %v237_v32, 8.507059e+37 }
  0xa6   :  { %v1194_v7 = vpop.eup %1193  ;;  %v217_v8 = vadd.f32 %v1192_v56, %v216_v4  ;;  %v1056_v9 = vmul.f32 -1.442695, %v1462_v5 }
  0xa7   :  { %v1196_v10 = vpop.eup %1195  ;;  %v185_v13 = vadd.f32 1.0, %v1194_v7 }
  0xa8   :  { %v221_v14 = vsel %vm220_vm8, %v1192_v56, %v217_v8  ;;  %v229_v15 = vmul.f32 %v1196_v10, %v1452_v57  ;;  %1197 = vpow2.f32 %v1056_v9  ;;  %vm234_vm10 = vweird.f32 %v1196_v10 }
  0xa9   :  { %v226_v16 = vsel %vm223_vm9, %v225_v12, %v221_v14  ;;  %1199 = vrcp.f32 %v185_v13  ;;  %vm1477_vm12 = vmor %vm233_vm11, %vm234_vm10  ;;  %v252_v35 = vand.u32 2147483647, %v185_v13  ;;  %v254_v36 = vand.u32 2147483648, %v185_v13 }
  0xaa   :  { %v439_v18 = vmul.f32 %v226_v16, %v97_v39  ;;  %v230_v19 = vsub.f32 1.0, %v229_v15  ;;  %vm248_vm15 = vweird.f32 %v185_v13 }
  0xab   :  { %v106_v20 = vpop.f32.mrf.mxu0  ;;  %v255_v48 = vor.u32 1.1754944e-38, %v254_v36  ;;  %vm253_vm1 = vcmp.eq.f32.partialorder %v252_v35, 8.507059e+37 }
  0xac   :  { %v231_v21 = vmul.f32 %v1196_v10, %v230_v19  ;;  %v1468_v22 = vadd.f32 %v1428_v31, %v106_v20  ;;  %v471_v23 = vpack.c.bf16 %v439_v18, %v438_v17 }
  0xae   :  { %v1198_v24 = vpop.eup %1197  ;;  %v1057_v25 = vmul.f32 -1.442695, %v1468_v22  ;;  %538 = vmatmul.bf16.vlgmr.msra.gmra.mxu1 %v471_v23  ;;  %v232_v28 = vadd.f32 %v1196_v10, %v231_v21 }
  0xaf   :  { %v1200_v26 = vpop.eup %1199  ;;  %v1471_v27 = vadd.f32 1.0, %v1198_v24 }
  0xb0   :  { %v244_v29 = vmul.f32 %v1200_v26, %v185_v13  ;;  %1201 = vpow2.f32 %v1057_v25  ;;  %v236_v38 = vsel %vm1477_vm12, %v1196_v10, %v232_v28  ;;  %vm249_vm13 = vweird.f32 %v1200_v26 }
  0xb1   :  { %1203 = vrcp.f32 %v1471_v27  ;;  %v241_v47 = vsel %vm238_vm14, %v240_v41, %v236_v38  ;;  %vm250_vm0 = vmor %vm248_vm15, %vm249_vm13  ;;  %vm263_vm3 = vweird.f32 %v1471_v27 }
  0xb2   :  { %v245_v33 = vsub.f32 1.0, %v244_v29  ;;  %v440_v54 = vmul.f32 %v241_v47, %v1445_v44  ;;  %v269_v44 = vand.u32 2147483648, %v1471_v27 }
  0xb3   :  { %v109_v37 = vpop.f32.mrf.mxu0 }
  0xb4   :  { %v246_v39 = vmul.f32 %v1200_v26, %v245_v33  ;;  %v1484_v40 = vadd.f32 %v1428_v31, %v109_v37  ;;  %v270_v12 = vor.u32 1.1754944e-38, %v269_v44 }
  0xb6   :  { %v1202_v42 = vpop.eup %1201  ;;  %v247_v43 = vadd.f32 %v1200_v26, %v246_v39  ;;  %v1058_v45 = vmul.f32 -1.442695, %v1484_v40 }
  0xb7   :  { %v1204_v46 = vpop.eup %1203  ;;  %v187_v49 = vadd.f32 1.0, %v1202_v42 }
  0xb8   :  { %v251_v50 = vsel %vm250_vm0, %v1200_v26, %v247_v43  ;;  %v259_v51 = vmul.f32 %v1204_v46, %v1471_v27  ;;  %1205 = vpow2.f32 %v1058_v45  ;;  %vm264_vm2 = vweird.f32 %v1204_v46 }
  0xb9   :  { %v256_v52 = vsel %vm253_vm1, %v255_v48, %v251_v50  ;;  %1207 = vrcp.f32 %v187_v49  ;;  %vm1500_vm4 = vmor %vm263_vm3, %vm264_vm2  ;;  %v282_v6 = vand.u32 2147483647, %v187_v49  ;;  %v284_v7 = vand.u32 2147483648, %v187_v49 }
  0xba   :  { %v441_v55 = vmul.f32 %v256_v52, %v1449_v53  ;;  %v260_v56 = vsub.f32 1.0, %v259_v51  ;;  %v267_v53 = vand.u32 2147483647, %v1471_v27  ;;  %vm278_vm7 = vweird.f32 %v187_v49 }
  0xbb   :  { %v111_v57 = vpop.f32.mrf.mxu0  ;;  %v285_v18 = vor.u32 1.1754944e-38, %v284_v7  ;;  %vm283_vm9 = vcmp.eq.f32.partialorder %v282_v6, 8.507059e+37 }
  0xbc   :  { %v261_v58 = vmul.f32 %v1204_v46, %v260_v56  ;;  %v1491_v59 = vadd.f32 %v1428_v31, %v111_v57  ;;  %v472_v60 = vpack.c.bf16 %v441_v55, %v440_v54  ;;  %vm268_vm6 = vcmp.eq.f32.partialorder %v267_v53, 8.507059e+37 }
  0xbe   :  { %v1206_v61 = vpop.eup %1205  ;;  %v1059_v62 = vmul.f32 -1.442695, %v1491_v59  ;;  %543 = vmatmul.bf16.gmra.mxu1 %v472_v60  ;;  %v262_v1 = vadd.f32 %v1204_v46, %v261_v58 }
  0xbf   :  { %v1208_v63 = vpop.eup %1207  ;;  %v1494_v0 = vadd.f32 1.0, %v1206_v61 }
  0xc0   :  { %v274_v2 = vmul.f32 %v1208_v63, %v187_v49  ;;  %1209 = vpow2.f32 %v1059_v62  ;;  %v266_v9 = vsel %vm1500_vm4, %v1204_v46, %v262_v1  ;;  %vm279_vm5 = vweird.f32 %v1208_v63 }
  0xc1   :  { %1211 = vrcp.f32 %v1494_v0  ;;  %v271_v17 = vsel %vm268_vm6, %v270_v12, %v266_v9  ;;  %vm280_vm8 = vmor %vm278_vm7, %vm279_vm5  ;;  %vm293_vm11 = vweird.f32 %v1494_v0 }
  0xc2   :  { %v275_v3 = vsub.f32 1.0, %v274_v2  ;;  %v442_v24 = vmul.f32 %v271_v17, %v1462_v5  ;;  %v299_v5 = vand.u32 2147483648, %v1494_v0 }
  0xc3   :  { %v114_v8 = vpop.f32.mrf.mxu0 }
  0xc4   :  { %v276_v10 = vmul.f32 %v1208_v63, %v275_v3  ;;  %v1507_v11 = vadd.f32 %v1428_v31, %v114_v8  ;;  %v300_v48 = vor.u32 1.1754944e-38, %v299_v5 }
  0xc6   :  { %v1210_v13 = vpop.eup %1209  ;;  %v277_v14 = vadd.f32 %v1208_v63, %v276_v10  ;;  %v1060_v15 = vmul.f32 -1.442695, %v1507_v11 }
  0xc7   :  { %v1212_v16 = vpop.eup %1211  ;;  %v189_v19 = vadd.f32 1.0, %v1210_v13 }
  0xc8   :  { %v281_v20 = vsel %vm280_vm8, %v1208_v63, %v277_v14  ;;  %v289_v21 = vmul.f32 %v1212_v16, %v1494_v0  ;;  %1213 = vpow2.f32 %v1060_v15  ;;  %vm294_vm10 = vweird.f32 %v1212_v16 }
  0xc9   :  { %v286_v23 = vsel %vm283_vm9, %v285_v18, %v281_v20  ;;  %1215 = vrcp.f32 %v189_v19  ;;  %vm1523_vm12 = vmor %vm293_vm11, %vm294_vm10  ;;  %v312_v41 = vand.u32 2147483647, %v189_v19  ;;  %v314_v42 = vand.u32 2147483648, %v189_v19 }
  0xca   :  { %v443_v25 = vmul.f32 %v286_v23, %v1468_v22  ;;  %v290_v26 = vsub.f32 1.0, %v289_v21  ;;  %v297_v22 = vand.u32 2147483647, %v1494_v0  ;;  %vm308_vm15 = vweird.f32 %v189_v19 }
  0xcb   :  { %v116_v27 = vpop.f32.mrf.mxu0  ;;  %v315_v55 = vor.u32 1.1754944e-38, %v314_v42  ;;  %vm313_vm1 = vcmp.eq.f32.partialorder %v312_v41, 8.507059e+37 }
  0xcc   :  { %v291_v28 = vmul.f32 %v1212_v16, %v290_v26  ;;  %v1514_v29 = vadd.f32 %v1428_v31, %v116_v27  ;;  %v473_v30 = vpack.c.bf16 %v443_v25, %v442_v24  ;;  %vm298_vm14 = vcmp.eq.f32.partialorder %v297_v22, 8.507059e+37 }
  0xce   :  { %v1214_v32 = vpop.eup %1213  ;;  %v1061_v33 = vmul.f32 -1.442695, %v1514_v29  ;;  %548 = vmatmul.bf16.gmra.mxu1 %v473_v30  ;;  %v292_v36 = vadd.f32 %v1212_v16, %v291_v28 }
  0xcf   :  { %v1216_v34 = vpop.eup %1215  ;;  %v1517_v35 = vadd.f32 1.0, %v1214_v32 }
  0xd0   :  { %v304_v37 = vmul.f32 %v1216_v34, %v189_v19  ;;  %1217 = vpow2.f32 %v1061_v33  ;;  %v296_v45 = vsel %vm1523_vm12, %v1212_v16, %v292_v36  ;;  %vm309_vm13 = vweird.f32 %v1216_v34 }
  0xd1   :  { %1219 = vrcp.f32 %v1517_v35  ;;  %v301_v54 = vsel %vm298_vm14, %v300_v48, %v296_v45  ;;  %vm310_vm0 = vmor %vm308_vm15, %vm309_vm13  ;;  %vm323_vm3 = vweird.f32 %v1517_v35 }
  0xd2   :  { %v305_v38 = vsub.f32 1.0, %v304_v37  ;;  %v444_v61 = vmul.f32 %v301_v54, %v1484_v40  ;;  %v329_v40 = vand.u32 2147483648, %v1517_v35 }
  0xd3   :  { %v119_v43 = vpop.f32.mrf.mxu0 }
  0xd4   :  { %v306_v46 = vmul.f32 %v1216_v34, %v305_v38  ;;  %v1530_v47 = vadd.f32 %v1428_v31, %v119_v43  ;;  %v330_v18 = vor.u32 1.1754944e-38, %v329_v40 }
  0xd6   :  { %v1218_v49 = vpop.eup %1217  ;;  %v307_v50 = vadd.f32 %v1216_v34, %v306_v46  ;;  %v1062_v51 = vmul.f32 -1.442695, %v1530_v47 }
  0xd7   :  { %v1220_v52 = vpop.eup %1219  ;;  %v191_v56 = vadd.f32 1.0, %v1218_v49 }
  0xd8   :  { %v311_v57 = vsel %vm310_vm0, %v1216_v34, %v307_v50  ;;  %v319_v58 = vmul.f32 %v1220_v52, %v1517_v35  ;;  %1221 = vpow2.f32 %v1062_v51  ;;  %vm324_vm2 = vweird.f32 %v1220_v52 }
  0xd9   :  { %v316_v60 = vsel %vm313_vm1, %v315_v55, %v311_v57  ;;  %1223 = vrcp.f32 %v191_v56  ;;  %vm1546_vm4 = vmor %vm323_vm3, %vm324_vm2  ;;  %v342_v12 = vand.u32 2147483647, %v191_v56  ;;  %v344_v13 = vand.u32 2147483648, %v191_v56 }
  0xda   :  { %v445_v62 = vmul.f32 %v316_v60, %v1491_v59  ;;  %v320_v63 = vsub.f32 1.0, %v319_v58  ;;  %v327_v59 = vand.u32 2147483647, %v1517_v35  ;;  %vm338_vm7 = vweird.f32 %v191_v56 }
  0xdb   :  { %v121_v0 = vpop.f32.mrf.mxu0  ;;  %v345_v25 = vor.u32 1.1754944e-38, %v344_v13  ;;  %vm343_vm9 = vcmp.eq.f32.partialorder %v342_v12, 8.507059e+37 }
  0xdc   :  { %v321_v1 = vmul.f32 %v1220_v52, %v320_v63  ;;  %v1537_v2 = vadd.f32 %v1428_v31, %v121_v0  ;;  %v474_v44 = vpack.c.bf16 %v445_v62, %v444_v61  ;;  %vm328_vm6 = vcmp.eq.f32.partialorder %v327_v59, 8.507059e+37 }
  0xde   :  { %v1222_v53 = vpop.eup %1221  ;;  %v1063_v3 = vmul.f32 -1.442695, %v1537_v2  ;;  %553 = vmatmul.bf16.gmra.mxu1 %v474_v44  ;;  %v322_v7 = vadd.f32 %v1220_v52, %v321_v1 }
  0xdf   :  { %v1224_v4 = vpop.eup %1223  ;;  %v1540_v6 = vadd.f32 1.0, %v1222_v53 }
  0xe0   :  { %v334_v8 = vmul.f32 %v1224_v4, %v191_v56  ;;  %1225 = vpow2.f32 %v1063_v3  ;;  %v326_v15 = vsel %vm1546_vm4, %v1220_v52, %v322_v7  ;;  %vm339_vm5 = vweird.f32 %v1224_v4 }
  0xe1   :  { %1227 = vrcp.f32 %v1540_v6  ;;  %v331_v24 = vsel %vm328_vm6, %v330_v18, %v326_v15  ;;  %vm340_vm8 = vmor %vm338_vm7, %vm339_vm5  ;;  %vm353_vm11 = vweird.f32 %v1540_v6 }
  0xe2   :  { %v335_v9 = vsub.f32 1.0, %v334_v8  ;;  %v446_v32 = vmul.f32 %v331_v24, %v1507_v11  ;;  %v359_v11 = vand.u32 2147483648, %v1540_v6 }
  0xe3   :  { %v124_v14 = vpop.f32.mrf.mxu0 }
  0xe4   :  { %v336_v16 = vmul.f32 %v1224_v4, %v335_v9  ;;  %v1553_v17 = vadd.f32 %v1428_v31, %v124_v14  ;;  %v360_v55 = vor.u32 1.1754944e-38, %v359_v11 }
  0xe6   :  { %v1226_v19 = vpop.eup %1225  ;;  %v337_v20 = vadd.f32 %v1224_v4, %v336_v16  ;;  %v1064_v21 = vmul.f32 -1.442695, %v1553_v17 }
  0xe7   :  { %v1228_v23 = vpop.eup %1227  ;;  %v193_v26 = vadd.f32 1.0, %v1226_v19 }
  0xe8   :  { %v341_v27 = vsel %vm340_vm8, %v1224_v4, %v337_v20  ;;  %v349_v28 = vmul.f32 %v1228_v23, %v1540_v6  ;;  %1229 = vpow2.f32 %v1064_v21  ;;  %vm354_vm10 = vweird.f32 %v1228_v23 }
  0xe9   :  { %v346_v30 = vsel %vm343_vm9, %v345_v25, %v341_v27  ;;  %1231 = vrcp.f32 %v193_v26  ;;  %vm1569_vm12 = vmor %vm353_vm11, %vm354_vm10  ;;  %v372_v48 = vand.u32 2147483647, %v193_v26  ;;  %v374_v49 = vand.u32 2147483648, %v193_v26 }
  0xea   :  { %v447_v33 = vmul.f32 %v346_v30, %v1514_v29  ;;  %v350_v34 = vsub.f32 1.0, %v349_v28  ;;  %v357_v29 = vand.u32 2147483647, %v1540_v6  ;;  %vm368_vm15 = vweird.f32 %v193_v26 }
  0xeb   :  { %v126_v35 = vpop.f32.mrf.mxu0  ;;  %v375_v62 = vor.u32 1.1754944e-38, %v374_v49  ;;  %vm373_vm1 = vcmp.eq.f32.partialorder %v372_v48, 8.507059e+37  ;;  %v1163_v48 = vld [vmem:[%s1806_s5 + $0x38] sm:$0xff] }
  0xec   :  { %v351_v36 = vmul.f32 %v1228_v23, %v350_v34  ;;  %v1560_v37 = vadd.f32 %v1428_v31, %v126_v35  ;;  %v475_v5 = vpack.c.bf16 %v447_v33, %v446_v32  ;;  %vm358_vm14 = vcmp.eq.f32.partialorder %v357_v29, 8.507059e+37  ;;  %975 = vmatpush.bf16.msra.mxu2 %v1163_v48  ;;  %1172 = vmatpush.bf16.msrb.mxu3 %v1163_v48 }
  0xee   :  { %v1230_v22 = vpop.eup %1229  ;;  %v1065_v38 = vmul.f32 -1.442695, %v1560_v37  ;;  %558 = vmatmul.bf16.gmra.mxu1 %v475_v5  ;;  %v352_v42 = vadd.f32 %v1228_v23, %v351_v36 }
  0xef   :  { %v1232_v39 = vpop.eup %1231  ;;  %v1563_v41 = vadd.f32 1.0, %v1230_v22 }
  0xf0   :  { %v364_v43 = vmul.f32 %v1232_v39, %v193_v26  ;;  %1233 = vpow2.f32 %v1065_v38  ;;  %v356_v51 = vsel %vm1569_vm12, %v1228_v23, %v352_v42  ;;  %vm369_vm13 = vweird.f32 %v1232_v39 }
  0xf1   :  { %1235 = vrcp.f32 %v1563_v41  ;;  %v361_v61 = vsel %vm358_vm14, %v360_v55, %v356_v51  ;;  %vm370_vm0 = vmor %vm368_vm15, %vm369_vm13  ;;  %vm383_vm3 = vweird.f32 %v1563_v41 }
  0xf2   :  { %v365_v45 = vsub.f32 1.0, %v364_v43  ;;  %v448_v53 = vmul.f32 %v361_v61, %v1530_v47  ;;  %v389_v47 = vand.u32 2147483648, %v1563_v41  ;;  %v1159_v61 = vld [vmem:[%s1806_s5 + $0x18] sm:$0xff] }
  0xf3   :  { %v129_v50 = vpop.f32.mrf.mxu0 }
  0xf4   :  { %v366_v52 = vmul.f32 %v1232_v39, %v365_v45  ;;  %v1576_v54 = vadd.f32 %v1428_v31, %v129_v50  ;;  %v390_v20 = vor.u32 1.1754944e-38, %v389_v47 }
  0xf6   :  { %v1234_v56 = vpop.eup %1233  ;;  %v367_v57 = vadd.f32 %v1232_v39, %v366_v52  ;;  %v1066_v58 = vmul.f32 -1.442695, %v1576_v54 }
  0xf7   :  { %v1236_v60 = vpop.eup %1235  ;;  %v195_v63 = vadd.f32 1.0, %v1234_v56 }
  0xf8   :  { %v371_v0 = vsel %vm370_vm0, %v1232_v39, %v367_v57  ;;  %v379_v1 = vmul.f32 %v1236_v60, %v1563_v41  ;;  %1237 = vpow2.f32 %v1066_v58  ;;  %vm384_vm2 = vweird.f32 %v1236_v60  ;;  %v1162_v57 = vld [vmem:[%s1806_s5 + $0x30] sm:$0xff] }
  0xf9   :  { %v376_v44 = vsel %vm373_vm1, %v375_v62, %v371_v0  ;;  %1239 = vrcp.f32 %v195_v63  ;;  %vm385_vm4 = vmor %vm383_vm3, %vm384_vm2  ;;  %v404_v15 = vand.u32 2147483648, %v195_v63  ;;  %v402_v19 = vand.u32 2147483647, %v195_v63  ;;  %976 = vmatpush.bf16.msra.mxu2 %v1162_v57  ;;  %1173 = vmatpush.bf16.msrb.mxu3 %v1162_v57  ;;  %v1611_v62 = vld [vmem:[%s1805_s4] ss:$0 sm:$0xff] }
  0xfa   :  { %v449_v3 = vmul.f32 %v376_v44, %v1537_v2  ;;  %v380_v4 = vsub.f32 1.0, %v379_v1  ;;  %v387_v2 = vand.u32 2147483647, %v1563_v41  ;;  %vm398_vm7 = vweird.f32 %v195_v63 }
  0xfb   :  { %v131_v6 = vpop.f32.mrf.mxu0  ;;  %v405_v26 = vor.u32 1.1754944e-38, %v404_v15  ;;  %vm403_vm9 = vcmp.eq.f32.partialorder %v402_v19, 8.507059e+37 }
  0xfc   :  { %v381_v7 = vmul.f32 %v1236_v60, %v380_v4  ;;  %v1583_v8 = vadd.f32 %v1428_v31, %v131_v6  ;;  %v476_v40 = vpack.c.bf16 %v449_v3, %v448_v53  ;;  %vm388_vm6 = vcmp.eq.f32.partialorder %v387_v2, 8.507059e+37  ;;  %v1157_v53 = vld [vmem:[%s1806_s5 + $0x8] sm:$0xff]  ;;  %v1156_v3 = vld [vmem:[%s1806_s5] sm:$0xff] }
  0xfe   :  { %v1238_v59 = vpop.eup %1237  ;;  %v1067_v9 = vmul.f32 -1.442695, %v1583_v8  ;;  %563 = vmatmul.bf16.gmra.mxu1 %v476_v40  ;;  %v382_v13 = vadd.f32 %v1236_v60, %v381_v7 }
  0xff   :  { %v1240_v10 = vpop.eup %1239  ;;  %v196_v12 = vadd.f32 1.0, %v1238_v59 }
 0x100   :  { %v394_v14 = vmul.f32 %v1240_v10, %v195_v63  ;;  %1241 = vpow2.f32 %v1067_v9  ;;  %v386_v16 = vsel %vm385_vm4, %v1236_v60, %v382_v13  ;;  %vm399_vm5 = vweird.f32 %v1240_v10  ;;  %v1161_v60 = vld [vmem:[%s1806_s5 + $0x28] sm:$0xff]  ;;  %v1158_v63 = vld [vmem:[%s1806_s5 + $0x10] sm:$0xff] }
 0x101   :  { %1243 = vrcp.f32 %v196_v12  ;;  %v391_v25 = vsel %vm388_vm6, %v390_v20, %v386_v16  ;;  %vm400_vm8 = vmor %vm398_vm7, %vm399_vm5  ;;  %v419_v41 = vand.u32 2147483648, %v196_v12  ;;  %vm413_vm11 = vweird.f32 %v196_v12  ;;  %977 = vmatpush.bf16.msra.mxu2 %v1161_v60  ;;  %1174 = vmatpush.bf16.msrb.mxu3 %v1161_v60 }
 0x102   :  { %v395_v31 = vsub.f32 1.0, %v394_v14  ;;  %v450_v33 = vmul.f32 %v391_v25, %v1553_v17  ;;  %v417_v42 = vand.u32 2147483647, %v196_v12 }
 0x103   :  { %v420_v46 = vor.u32 1.1754944e-38, %v419_v41 }
 0x104   :  { %v396_v18 = vmul.f32 %v1240_v10, %v395_v31  ;;  %vm418_vm14 = vcmp.eq.f32.partialorder %v417_v42, 8.507059e+37 }
 0x106   :  { %v1242_v21 = vpop.eup %1241  ;;  %v397_v23 = vadd.f32 %v1240_v10, %v396_v18 }
 0x107   :  { %v1244_v24 = vpop.eup %1243  ;;  %v197_v27 = vadd.f32 1.0, %v1242_v21 }
 0x108   :  { %v401_v28 = vsel %vm400_vm8, %v1240_v10, %v397_v23  ;;  %v409_v30 = vmul.f32 %v1244_v24, %v196_v12  ;;  %vm414_vm10 = vweird.f32 %v1244_v24 }
 0x109   :  { %v406_v32 = vsel %vm403_vm9, %v405_v26, %v401_v28  ;;  %1245 = vrcp.f32 %v197_v27  ;;  %vm415_vm12 = vmor %vm413_vm11, %vm414_vm10  ;;  %v434_v11 = vand.u32 2147483648, %v197_v27  ;;  %v432_v17 = vand.u32 2147483647, %v197_v27 }
 0x10a   :  { %v451_v34 = vmul.f32 %v406_v32, %v1560_v37  ;;  %v410_v35 = vsub.f32 1.0, %v409_v30  ;;  %vm428_vm15 = vweird.f32 %v197_v27 }
 0x10b   :  { %v435_v50 = vor.u32 1.1754944e-38, %v434_v11  ;;  %vm433_vm1 = vcmp.eq.f32.partialorder %v432_v17, 8.507059e+37 }
 0x10c   :  { %v411_v36 = vmul.f32 %v1244_v24, %v410_v35  ;;  %v477_v5 = vpack.c.bf16 %v451_v34, %v450_v33 }
 0x10e   :  { %568 = vmatmul.bf16.vlgmr.msra.gmra.mxu3 %v477_v5  ;;  %v412_v38 = vadd.f32 %v1244_v24, %v411_v36 }
 0x10f   :  { %v1246_v22 = vpop.eup %1245 }
 0x110   :  { %v424_v39 = vmul.f32 %v1246_v22, %v197_v27  ;;  %v416_v29 = vsel %vm415_vm12, %v1244_v24, %v412_v38  ;;  %vm429_vm13 = vweird.f32 %v1246_v22 }
 0x111   :  { %v421_v49 = vsel %vm418_vm14, %v420_v46, %v416_v29  ;;  %vm430_vm0 = vmor %vm428_vm15, %vm429_vm13 }
 0x112   :  { %v425_v43 = vsub.f32 1.0, %v424_v39  ;;  %v452_v55 = vmul.f32 %v421_v49, %v1576_v54  ;;  %v1160_v54 = vld [vmem:[%s1806_s5 + $0x20] sm:$0xff] }
 0x113   :  { %978 = vmatpush.bf16.msra.mxu2 %v1160_v54  ;;  %1175 = vmatpush.bf16.msrb.mxu3 %v1160_v54 }
 0x114   :  { %v426_v45 = vmul.f32 %v1246_v22, %v425_v43 }
 0x116   :  { %v427_v37 = vadd.f32 %v1246_v22, %v426_v45 }
 0x117   :  { %979 = vmatpush.bf16.msra.mxu2 %v1159_v61  ;;  %1176 = vmatpush.bf16.msrb.mxu3 %v1159_v61 }
 0x118   :  { %v431_v51 = vsel %vm430_vm0, %v1246_v22, %v427_v37 }
 0x119   :  { %v436_v52 = vsel %vm433_vm1, %v435_v50, %v431_v51 }
 0x11a   :  { %v453_v56 = vmul.f32 %v436_v52, %v1583_v8 }
 0x11b   :  { %980 = vmatpush.bf16.msra.mxu2 %v1158_v63  ;;  %1177 = vmatpush.bf16.msrb.mxu3 %v1158_v63 }
 0x11c   :  { %v478_v58 = vpack.c.bf16 %v453_v56, %v452_v55 }
 0x11e   :  { %573 = vmatmul.bf16.gmra.mxu3 %v478_v58 }
 0x11f   :  { %981 = vmatpush.bf16.msra.mxu2 %v1157_v53  ;;  %1178 = vmatpush.bf16.msrb.mxu3 %v1157_v53 }
 0x123   :  { %982 = vmatpush.bf16.msra.mxu2 %v1156_v3  ;;  %1179 = vmatpush.bf16.msrb.mxu3 %v1156_v3 }
 0x12b   :  { %v539_v0 = vpop.f32.mrf.mxu1 }
 0x12c   :  { %v1617_v1 = vadd.f32 %v1611_v62, %v539_v0 }
 0x12e   :  { %v1100_v44 = vmul.f32 -1.442695, %v1617_v1 }
 0x130   :  { %1247 = vpow2.f32 %v1100_v44 }
 0x133   :  { %v541_v4 = vpop.f32.mrf.mxu1 }
 0x134   :  { %v542_v6 = vadd.f32 %v1611_v62, %v541_v4 }
 0x136   :  { %v1248_v7 = vpop.eup %1247  ;;  %v1101_v8 = vmul.f32 -1.442695, %v542_v6 }
 0x137   :  { %v627_v40 = vadd.f32 1.0, %v1248_v7 }
 0x138   :  { %1249 = vpow2.f32 %v1101_v8 }
 0x139   :  { %1251 = vrcp.f32 %v627_v40  ;;  %v654_v25 = vand.u32 2147483648, %v627_v40  ;;  %vm648_vm3 = vweird.f32 %v627_v40  ;;  %v652_v26 = vand.u32 2147483647, %v627_v40 }
 0x13b   :  { %v544_v59 = vpop.f32.mrf.mxu1  ;;  %v655_v5 = vor.u32 1.1754944e-38, %v654_v25  ;;  %vm653_vm6 = vcmp.eq.f32.partialorder %v652_v26, 8.507059e+37 }
 0x13c   :  { %v1628_v9 = vadd.f32 %v1611_v62, %v544_v59 }
 0x13e   :  { %v1250_v10 = vpop.eup %1249  ;;  %v1102_v12 = vmul.f32 -1.442695, %v1628_v9 }
 0x13f   :  { %v1252_v13 = vpop.eup %1251  ;;  %v628_v14 = vadd.f32 1.0, %v1250_v10 }
 0x140   :  { %v644_v47 = vmul.f32 %v1252_v13, %v627_v40  ;;  %1253 = vpow2.f32 %v1102_v12  ;;  %vm649_vm2 = vweird.f32 %v1252_v13 }
 0x141   :  { %1255 = vrcp.f32 %v628_v14  ;;  %vm1638_vm4 = vmor %vm648_vm3, %vm649_vm2  ;;  %v667_v30 = vand.u32 2147483647, %v628_v14  ;;  %v669_v32 = vand.u32 2147483648, %v628_v14  ;;  %vm663_vm7 = vweird.f32 %v628_v14 }
 0x142   :  { %v645_v2 = vsub.f32 1.0, %v644_v47 }
 0x143   :  { %v546_v31 = vpop.f32.mrf.mxu1  ;;  %v670_v43 = vor.u32 1.1754944e-38, %v669_v32  ;;  %vm668_vm9 = vcmp.eq.f32.partialorder %v667_v30, 8.507059e+37 }
 0x144   :  { %v646_v15 = vmul.f32 %v1252_v13, %v645_v2  ;;  %v1632_v16 = vadd.f32 %v1611_v62, %v546_v31 }
 0x146   :  { %v1254_v18 = vpop.eup %1253  ;;  %v1103_v19 = vmul.f32 -1.442695, %v1632_v16  ;;  %v647_v23 = vadd.f32 %v1252_v13, %v646_v15 }
 0x147   :  { %v1256_v20 = vpop.eup %1255  ;;  %v1635_v21 = vadd.f32 1.0, %v1254_v18 }
 0x148   :  { %v659_v24 = vmul.f32 %v1256_v20, %v628_v14  ;;  %1257 = vpow2.f32 %v1103_v19  ;;  %v651_v34 = vsel %vm1638_vm4, %v1252_v13, %v647_v23  ;;  %vm664_vm5 = vweird.f32 %v1256_v20 }
 0x149   :  { %1259 = vrcp.f32 %v1635_v21  ;;  %v656_v42 = vsel %vm653_vm6, %v655_v5, %v651_v34  ;;  %vm665_vm8 = vmor %vm663_vm7, %vm664_vm5  ;;  %v684_v61 = vand.u32 2147483648, %v1635_v21  ;;  %vm678_vm11 = vweird.f32 %v1635_v21 }
 0x14a   :  { %v660_v27 = vsub.f32 1.0, %v659_v24  ;;  %v883_v46 = vmul.f32 %v656_v42, %v1617_v1  ;;  %v682_v63 = vand.u32 2147483647, %v1635_v21 }
 0x14b   :  { %v549_v33 = vpop.f32.mrf.mxu1  ;;  %v685_v8 = vor.u32 1.1754944e-38, %v684_v61 }
 0x14c   :  { %v661_v35 = vmul.f32 %v1256_v20, %v660_v27  ;;  %v1645_v36 = vadd.f32 %v1611_v62, %v549_v33  ;;  %vm683_vm14 = vcmp.eq.f32.partialorder %v682_v63, 8.507059e+37 }
 0x14e   :  { %v1258_v22 = vpop.eup %1257  ;;  %v662_v38 = vadd.f32 %v1256_v20, %v661_v35  ;;  %v1104_v39 = vmul.f32 -1.442695, %v1645_v36 }
 0x14f   :  { %v1260_v41 = vpop.eup %1259  ;;  %v630_v11 = vadd.f32 1.0, %v1258_v22 }
 0x150   :  { %v666_v29 = vsel %vm665_vm8, %v1256_v20, %v662_v38  ;;  %v674_v45 = vmul.f32 %v1260_v41, %v1635_v21  ;;  %1261 = vpow2.f32 %v1104_v39  ;;  %vm679_vm10 = vweird.f32 %v1260_v41 }
 0x151   :  { %v671_v17 = vsel %vm668_vm9, %v670_v43, %v666_v29  ;;  %1263 = vrcp.f32 %v630_v11  ;;  %vm1660_vm12 = vmor %vm678_vm11, %vm679_vm10  ;;  %v697_v44 = vand.u32 2147483647, %v630_v11  ;;  %v699_v53 = vand.u32 2147483648, %v630_v11 }
 0x152   :  { %v884_v37 = vmul.f32 %v671_v17, %v542_v6  ;;  %v675_v48 = vsub.f32 1.0, %v674_v45  ;;  %vm693_vm15 = vweird.f32 %v630_v11 }
 0x153   :  { %v551_v49 = vpop.f32.mrf.mxu1  ;;  %v700_v14 = vor.u32 1.1754944e-38, %v699_v53  ;;  %vm698_vm1 = vcmp.eq.f32.partialorder %v697_v44, 8.507059e+37 }
 0x154   :  { %v676_v50 = vmul.f32 %v1260_v41, %v675_v48  ;;  %v1651_v51 = vadd.f32 %v1611_v62, %v551_v49  ;;  %v916_v52 = vpack.c.bf16 %v884_v37, %v883_v46 }
 0x156   :  { %v1262_v55 = vpop.eup %1261  ;;  %v1105_v56 = vmul.f32 -1.442695, %v1651_v51  ;;  %983 = vmatmul.bf16.vlgmr.msra.gmra.mxu2 %v916_v52  ;;  %v677_v60 = vadd.f32 %v1260_v41, %v676_v50 }
 0x157   :  { %v1264_v57 = vpop.eup %1263  ;;  %v1654_v58 = vadd.f32 1.0, %v1262_v55 }
 0x158   :  { %v689_v54 = vmul.f32 %v1264_v57, %v630_v11  ;;  %1265 = vpow2.f32 %v1105_v56  ;;  %v681_v4 = vsel %vm1660_vm12, %v1260_v41, %v677_v60  ;;  %vm694_vm13 = vweird.f32 %v1264_v57 }
 0x159   :  { %1267 = vrcp.f32 %v1654_v58  ;;  %v686_v13 = vsel %vm683_vm14, %v685_v8, %v681_v4  ;;  %vm695_vm0 = vmor %vm693_vm15, %vm694_vm13  ;;  %vm708_vm3 = vweird.f32 %v1654_v58 }
 0x15a   :  { %v690_v0 = vsub.f32 1.0, %v689_v54  ;;  %v885_v18 = vmul.f32 %v686_v13, %v1628_v9  ;;  %v714_v9 = vand.u32 2147483648, %v1654_v58 }
 0x15b   :  { %v554_v3 = vpop.f32.mrf.mxu1 }
 0x15c   :  { %v691_v6 = vmul.f32 %v1264_v57, %v690_v0  ;;  %v1667_v7 = vadd.f32 %v1611_v62, %v554_v3  ;;  %v715_v43 = vor.u32 1.1754944e-38, %v714_v9 }
 0x15e   :  { %v1266_v40 = vpop.eup %1265  ;;  %v692_v59 = vadd.f32 %v1264_v57, %v691_v6  ;;  %v1106_v10 = vmul.f32 -1.442695, %v1667_v7 }
 0x15f   :  { %v1268_v12 = vpop.eup %1267  ;;  %v632_v47 = vadd.f32 1.0, %v1266_v40 }
 0x160   :  { %v696_v2 = vsel %vm695_vm0, %v1264_v57, %v692_v59  ;;  %v704_v31 = vmul.f32 %v1268_v12, %v1654_v58  ;;  %1269 = vpow2.f32 %v1106_v10  ;;  %vm709_vm2 = vweird.f32 %v1268_v12 }
 0x161   :  { %v701_v15 = vsel %vm698_vm1, %v700_v14, %v696_v2  ;;  %1271 = vrcp.f32 %v632_v47  ;;  %vm1683_vm4 = vmor %vm708_vm3, %vm709_vm2  ;;  %v727_v5 = vand.u32 2147483647, %v632_v47  ;;  %v729_v22 = vand.u32 2147483648, %v632_v47 }
 0x162   :  { %v886_v19 = vmul.f32 %v701_v15, %v1632_v16  ;;  %v705_v20 = vsub.f32 1.0, %v704_v31  ;;  %v712_v16 = vand.u32 2147483647, %v1654_v58  ;;  %vm723_vm7 = vweird.f32 %v632_v47 }
 0x163   :  { %v556_v21 = vpop.f32.mrf.mxu1  ;;  %v730_v37 = vor.u32 1.1754944e-38, %v729_v22  ;;  %vm728_vm9 = vcmp.eq.f32.partialorder %v727_v5, 8.507059e+37 }
 0x164   :  { %v706_v23 = vmul.f32 %v1268_v12, %v705_v20  ;;  %v1674_v24 = vadd.f32 %v1611_v62, %v556_v21  ;;  %v917_v25 = vpack.c.bf16 %v886_v19, %v885_v18  ;;  %vm713_vm6 = vcmp.eq.f32.partialorder %v712_v16, 8.507059e+37 }
 0x166   :  { %v1270_v26 = vpop.eup %1269  ;;  %v1107_v27 = vmul.f32 -1.442695, %v1674_v24  ;;  %988 = vmatmul.bf16.gmra.mxu2 %v917_v25  ;;  %v707_v32 = vadd.f32 %v1268_v12, %v706_v23 }
 0x167   :  { %v1272_v28 = vpop.eup %1271  ;;  %v1677_v30 = vadd.f32 1.0, %v1270_v26 }
 0x168   :  { %v719_v33 = vmul.f32 %v1272_v28, %v632_v47  ;;  %1273 = vpow2.f32 %v1107_v27  ;;  %v711_v39 = vsel %vm1683_vm4, %v1268_v12, %v707_v32  ;;  %vm724_vm5 = vweird.f32 %v1272_v28 }
 0x169   :  { %1275 = vrcp.f32 %v1677_v30  ;;  %v716_v46 = vsel %vm713_vm6, %v715_v43, %v711_v39  ;;  %vm725_vm8 = vmor %vm723_vm7, %vm724_vm5  ;;  %vm738_vm11 = vweird.f32 %v1677_v30 }
 0x16a   :  { %v720_v34 = vsub.f32 1.0, %v719_v33  ;;  %v887_v55 = vmul.f32 %v716_v46, %v1645_v36  ;;  %v744_v36 = vand.u32 2147483648, %v1677_v30 }
 0x16b   :  { %v559_v38 = vpop.f32.mrf.mxu1 }
 0x16c   :  { %v721_v41 = vmul.f32 %v1272_v28, %v720_v34  ;;  %v1690_v42 = vadd.f32 %v1611_v62, %v559_v38  ;;  %v745_v14 = vor.u32 1.1754944e-38, %v744_v36 }
 0x16e   :  { %v1274_v11 = vpop.eup %1273  ;;  %v722_v29 = vadd.f32 %v1272_v28, %v721_v41  ;;  %v1108_v45 = vmul.f32 -1.442695, %v1690_v42 }
 0x16f   :  { %v1276_v17 = vpop.eup %1275  ;;  %v634_v48 = vadd.f32 1.0, %v1274_v11 }
 0x170   :  { %v726_v49 = vsel %vm725_vm8, %v1272_v28, %v722_v29  ;;  %v734_v50 = vmul.f32 %v1276_v17, %v1677_v30  ;;  %1277 = vpow2.f32 %v1108_v45  ;;  %vm739_vm10 = vweird.f32 %v1276_v17 }
 0x171   :  { %v731_v52 = vsel %vm728_vm9, %v730_v37, %v726_v49  ;;  %1279 = vrcp.f32 %v634_v48  ;;  %vm1706_vm12 = vmor %vm738_vm11, %vm739_vm10  ;;  %v757_v8 = vand.u32 2147483647, %v634_v48  ;;  %v759_v40 = vand.u32 2147483648, %v634_v48 }
 0x172   :  { %v888_v56 = vmul.f32 %v731_v52, %v1651_v51  ;;  %v735_v57 = vsub.f32 1.0, %v734_v50  ;;  %v742_v51 = vand.u32 2147483647, %v1677_v30  ;;  %vm753_vm15 = vweird.f32 %v634_v48 }
 0x173   :  { %v561_v58 = vpop.f32.mrf.mxu1  ;;  %v760_v19 = vor.u32 1.1754944e-38, %v759_v40  ;;  %vm758_vm1 = vcmp.eq.f32.partialorder %v757_v8, 8.507059e+37 }
 0x174   :  { %v736_v60 = vmul.f32 %v1276_v17, %v735_v57  ;;  %v1697_v54 = vadd.f32 %v1611_v62, %v561_v58  ;;  %v918_v61 = vpack.c.bf16 %v888_v56, %v887_v55  ;;  %vm743_vm14 = vcmp.eq.f32.partialorder %v742_v51, 8.507059e+37 }
 0x176   :  { %v1278_v63 = vpop.eup %1277  ;;  %v1109_v0 = vmul.f32 -1.442695, %v1697_v54  ;;  %993 = vmatmul.bf16.gmra.mxu2 %v918_v61  ;;  %v737_v53 = vadd.f32 %v1276_v17, %v736_v60 }
 0x177   :  { %v1280_v1 = vpop.eup %1279  ;;  %v1700_v44 = vadd.f32 1.0, %v1278_v63 }
 0x178   :  { %v749_v3 = vmul.f32 %v1280_v1, %v634_v48  ;;  %1281 = vpow2.f32 %v1109_v0  ;;  %v741_v10 = vsel %vm1706_vm12, %v1276_v17, %v737_v53  ;;  %vm754_vm13 = vweird.f32 %v1280_v1 }
 0x179   :  { %1283 = vrcp.f32 %v1700_v44  ;;  %v746_v18 = vsel %vm743_vm14, %v745_v14, %v741_v10  ;;  %vm755_vm0 = vmor %vm753_vm15, %vm754_vm13  ;;  %vm768_vm3 = vweird.f32 %v1700_v44 }
 0x17a   :  { %v750_v4 = vsub.f32 1.0, %v749_v3  ;;  %v889_v26 = vmul.f32 %v746_v18, %v1667_v7  ;;  %v774_v7 = vand.u32 2147483648, %v1700_v44 }
 0x17b   :  { %v564_v59 = vpop.f32.mrf.mxu1 }
 0x17c   :  { %v751_v12 = vmul.f32 %v1280_v1, %v750_v4  ;;  %v1713_v13 = vadd.f32 %v1611_v62, %v564_v59  ;;  %v775_v45 = vor.u32 1.1754944e-38, %v774_v7 }
 0x17e   :  { %v1282_v47 = vpop.eup %1281  ;;  %v752_v2 = vadd.f32 %v1280_v1, %v751_v12  ;;  %v1110_v31 = vmul.f32 -1.442695, %v1713_v13 }
 0x17f   :  { %v1284_v15 = vpop.eup %1283  ;;  %v636_v20 = vadd.f32 1.0, %v1282_v47 }
 0x180   :  { %v756_v21 = vsel %vm755_vm0, %v1280_v1, %v752_v2  ;;  %v764_v23 = vmul.f32 %v1284_v15, %v1700_v44  ;;  %1285 = vpow2.f32 %v1110_v31  ;;  %vm769_vm2 = vweird.f32 %v1284_v15 }
 0x181   :  { %v761_v25 = vsel %vm758_vm1, %v760_v19, %v756_v21  ;;  %1287 = vrcp.f32 %v636_v20  ;;  %vm770_vm4 = vmor %vm768_vm3, %vm769_vm2  ;;  %v789_v41 = vand.u32 2147483648, %v636_v20  ;;  %v787_v29 = vand.u32 2147483647, %v636_v20 }
 0x182   :  { %v890_v27 = vmul.f32 %v761_v25, %v1674_v24  ;;  %v765_v28 = vsub.f32 1.0, %v764_v23  ;;  %v772_v24 = vand.u32 2147483647, %v1700_v44  ;;  %vm783_vm7 = vweird.f32 %v636_v20 }
 0x183   :  { %v566_v30 = vpop.f32.mrf.mxu1  ;;  %v790_v49 = vor.u32 1.1754944e-38, %v789_v41  ;;  %vm788_vm9 = vcmp.eq.f32.partialorder %v787_v29, 8.507059e+37 }
 0x184   :  { %v766_v32 = vmul.f32 %v1284_v15, %v765_v28  ;;  %v1720_v33 = vadd.f32 %v1611_v62, %v566_v30  ;;  %v919_v9 = vpack.c.bf16 %v890_v27, %v889_v26  ;;  %vm773_vm6 = vcmp.eq.f32.partialorder %v772_v24, 8.507059e+37 }
 0x186   :  { %v1286_v16 = vpop.eup %1285  ;;  %v1111_v34 = vmul.f32 -1.442695, %v1720_v33  ;;  %998 = vmatmul.bf16.gmra.mxu2 %v919_v9  ;;  %v767_v22 = vadd.f32 %v1284_v15, %v766_v32 }
 0x187   :  { %v1288_v35 = vpop.eup %1287  ;;  %v637_v5 = vadd.f32 1.0, %v1286_v16 }
 0x188   :  { %v779_v38 = vmul.f32 %v1288_v35, %v636_v20  ;;  %1289 = vpow2.f32 %v1111_v34  ;;  %v771_v43 = vsel %vm770_vm4, %v1284_v15, %v767_v22  ;;  %vm784_vm5 = vweird.f32 %v1288_v35 }
 0x189   :  { %1291 = vrcp.f32 %v637_v5  ;;  %v776_v48 = vsel %vm773_vm6, %v775_v45, %v771_v43  ;;  %vm785_vm8 = vmor %vm783_vm7, %vm784_vm5  ;;  %v804_v51 = vand.u32 2147483648, %v637_v5  ;;  %vm798_vm11 = vweird.f32 %v637_v5 }
 0x18a   :  { %v780_v39 = vsub.f32 1.0, %v779_v38  ;;  %v891_v58 = vmul.f32 %v776_v48, %v1690_v42  ;;  %v802_v42 = vand.u32 2147483647, %v637_v5 }
 0x18b   :  { %v805_v47 = vor.u32 1.1754944e-38, %v804_v51 }
 0x18c   :  { %v781_v11 = vmul.f32 %v1288_v35, %v780_v39  ;;  %vm803_vm14 = vcmp.eq.f32.partialorder %v802_v42, 8.507059e+37 }
 0x18e   :  { %v1290_v17 = vpop.eup %1289  ;;  %v782_v46 = vadd.f32 %v1288_v35, %v781_v11 }
 0x18f   :  { %v1292_v37 = vpop.eup %1291  ;;  %v638_v50 = vadd.f32 1.0, %v1290_v17 }
 0x190   :  { %v786_v52 = vsel %vm785_vm8, %v1288_v35, %v782_v46  ;;  %v794_v55 = vmul.f32 %v1292_v37, %v637_v5  ;;  %vm799_vm10 = vweird.f32 %v1292_v37 }
 0x191   :  { %v791_v56 = vsel %vm788_vm9, %v790_v49, %v786_v52  ;;  %1293 = vrcp.f32 %v638_v50  ;;  %v569_v57 = vpop.f32.mrf.mxu3  ;;  %vm800_vm12 = vmor %vm798_vm11, %vm799_vm10  ;;  %v817_v8 = vand.u32 2147483647, %v638_v50  ;;  %v819_v40 = vand.u32 2147483648, %v638_v50 }
 0x192   :  { %v892_v60 = vmul.f32 %v791_v56, %v1697_v54  ;;  %v795_v61 = vsub.f32 1.0, %v794_v55  ;;  %v1729_v63 = vadd.f32 %v1611_v62, %v569_v57  ;;  %vm813_vm15 = vweird.f32 %v638_v50 }
 0x193   :  { %v820_v18 = vor.u32 1.1754944e-38, %v819_v40  ;;  %vm818_vm1 = vcmp.eq.f32.partialorder %v817_v8, 8.507059e+37 }
 0x194   :  { %v796_v0 = vmul.f32 %v1292_v37, %v795_v61  ;;  %v1112_v1 = vmul.f32 -1.442695, %v1729_v63  ;;  %v920_v44 = vpack.c.bf16 %v892_v60, %v891_v58 }
 0x196   :  { %1295 = vpow2.f32 %v1112_v1  ;;  %1003 = vmatmul.bf16.gmra.mxu2 %v920_v44  ;;  %v797_v3 = vadd.f32 %v1292_v37, %v796_v0 }
 0x197   :  { %v1294_v53 = vpop.eup %1293 }
 0x198   :  { %v809_v36 = vmul.f32 %v1294_v53, %v638_v50  ;;  %v801_v10 = vsel %vm800_vm12, %v1292_v37, %v797_v3  ;;  %vm814_vm13 = vweird.f32 %v1294_v53 }
 0x199   :  { %v571_v4 = vpop.f32.mrf.mxu3  ;;  %v806_v15 = vsel %vm803_vm14, %v805_v47, %v801_v10  ;;  %vm815_vm0 = vmor %vm813_vm15, %vm814_vm13 }
 0x19a   :  { %v810_v6 = vsub.f32 1.0, %v809_v36  ;;  %v1733_v54 = vadd.f32 %v1611_v62, %v571_v4  ;;  %v893_v23 = vmul.f32 %v806_v15, %v1713_v13 }
 0x19c   :  { %v1296_v59 = vpop.eup %1295  ;;  %v811_v12 = vmul.f32 %v1294_v53, %v810_v6  ;;  %v1113_v14 = vmul.f32 -1.442695, %v1733_v54 }
 0x19d   :  { %v639_v2 = vadd.f32 1.0, %v1296_v59 }
 0x19e   :  { %v812_v31 = vadd.f32 %v1294_v53, %v811_v12  ;;  %1297 = vpow2.f32 %v1113_v14 }
 0x19f   :  { %1299 = vrcp.f32 %v639_v2  ;;  %v834_v41 = vand.u32 2147483648, %v639_v2  ;;  %vm828_vm3 = vweird.f32 %v639_v2  ;;  %v832_v43 = vand.u32 2147483647, %v639_v2 }
 0x1a0   :  { %v816_v19 = vsel %vm815_vm0, %v1294_v53, %v812_v31 }
 0x1a1   :  { %v821_v20 = vsel %vm818_vm1, %v820_v18, %v816_v19  ;;  %v574_v21 = vpop.f32.mrf.mxu3  ;;  %v835_v46 = vor.u32 1.1754944e-38, %v834_v41  ;;  %vm833_vm6 = vcmp.eq.f32.partialorder %v832_v43, 8.507059e+37  ;;  %v1182_v18 = vld [vmem:[%s1807_s6] ss:$0 sm:$0xff] }
 0x1a2   :  { %v894_v25 = vmul.f32 %v821_v20, %v1720_v33  ;;  %v1739_v26 = vadd.f32 %v1611_v62, %v574_v21 }
 0x1a4   :  { %v1298_v27 = vpop.eup %1297  ;;  %v1114_v28 = vmul.f32 -1.442695, %v1739_v26  ;;  %v921_v30 = vpack.c.bf16 %v894_v25, %v893_v23 }
 0x1a5   :  { %v1300_v32 = vpop.eup %1299  ;;  %v640_v9 = vadd.f32 1.0, %v1298_v27 }
 0x1a6   :  { %v824_v16 = vmul.f32 %v1300_v32, %v639_v2  ;;  %1301 = vpow2.f32 %v1114_v28  ;;  %1008 = vmatmul.bf16.gmra.mxu2 %v921_v30  ;;  %vm829_vm2 = vweird.f32 %v1300_v32 }
 0x1a7   :  { %1303 = vrcp.f32 %v640_v9  ;;  %vm830_vm4 = vmor %vm828_vm3, %vm829_vm2  ;;  %v849_v29 = vand.u32 2147483648, %v640_v9  ;;  %vm843_vm7 = vweird.f32 %v640_v9 }
 0x1a8   :  { %v825_v34 = vsub.f32 1.0, %v824_v16 }
 0x1a9   :  { %v576_v35 = vpop.f32.mrf.mxu3  ;;  %v850_v52 = vor.u32 1.1754944e-38, %v849_v29 }
 0x1aa   :  { %v826_v5 = vmul.f32 %v1300_v32, %v825_v34  ;;  %v1743_v13 = vadd.f32 %v1611_v62, %v576_v35  ;;  %v847_v62 = vand.u32 2147483647, %v640_v9 }
 0x1ac   :  { %v1302_v33 = vpop.eup %1301  ;;  %v1115_v22 = vmul.f32 -1.442695, %v1743_v13  ;;  %v827_v24 = vadd.f32 %v1300_v32, %v826_v5  ;;  %vm848_vm9 = vcmp.eq.f32.partialorder %v847_v62, 8.507059e+37 }
 0x1ad   :  { %v1304_v38 = vpop.eup %1303  ;;  %v641_v7 = vadd.f32 1.0, %v1302_v33 }
 0x1ae   :  { %v839_v39 = vmul.f32 %v1304_v38, %v640_v9  ;;  %1305 = vpow2.f32 %v1115_v22  ;;  %v831_v45 = vsel %vm830_vm4, %v1300_v32, %v827_v24  ;;  %vm844_vm5 = vweird.f32 %v1304_v38 }
 0x1af   :  { %1307 = vrcp.f32 %v641_v7  ;;  %v836_v50 = vsel %vm833_vm6, %v835_v46, %v831_v45  ;;  %vm845_vm8 = vmor %vm843_vm7, %vm844_vm5  ;;  %v864_v51 = vand.u32 2147483648, %v641_v7  ;;  %vm858_vm11 = vweird.f32 %v641_v7 }
 0x1b0   :  { %v840_v11 = vsub.f32 1.0, %v839_v39  ;;  %v895_v60 = vmul.f32 %v836_v50, %v1729_v63  ;;  %v862_v4 = vand.u32 2147483647, %v641_v7 }
 0x1b1   :  { %v865_v59 = vor.u32 1.1754944e-38, %v864_v51 }
 0x1b2   :  { %v841_v17 = vmul.f32 %v1304_v38, %v840_v11  ;;  %vm863_vm14 = vcmp.eq.f32.partialorder %v862_v4, 8.507059e+37 }
 0x1b4   :  { %v1306_v37 = vpop.eup %1305  ;;  %v842_v48 = vadd.f32 %v1304_v38, %v841_v17 }
 0x1b5   :  { %v1308_v49 = vpop.eup %1307  ;;  %v642_v55 = vadd.f32 1.0, %v1306_v37 }
 0x1b6   :  { %v846_v56 = vsel %vm845_vm8, %v1304_v38, %v842_v48  ;;  %v854_v57 = vmul.f32 %v1308_v49, %v641_v7  ;;  %vm859_vm10 = vweird.f32 %v1308_v49 }
 0x1b7   :  { %v851_v58 = vsel %vm848_vm9, %v850_v52, %v846_v56  ;;  %1309 = vrcp.f32 %v642_v55  ;;  %vm860_vm12 = vmor %vm858_vm11, %vm859_vm10  ;;  %v879_v6 = vand.u32 2147483648, %v642_v55  ;;  %v877_v63 = vand.u32 2147483647, %v642_v55 }
 0x1b8   :  { %v896_v61 = vmul.f32 %v851_v58, %v1733_v54  ;;  %v855_v0 = vsub.f32 1.0, %v854_v57  ;;  %vm873_vm15 = vweird.f32 %v642_v55 }
 0x1b9   :  { %v880_v12 = vor.u32 1.1754944e-38, %v879_v6  ;;  %vm878_vm1 = vcmp.eq.f32.partialorder %v877_v63, 8.507059e+37 }
 0x1ba   :  { %v856_v1 = vmul.f32 %v1308_v49, %v855_v0  ;;  %v922_v44 = vpack.c.bf16 %v896_v61, %v895_v60 }
 0x1bc   :  { %1013 = vmatmul.bf16.vlgmr.msrb.gmra.mxu3 %v922_v44  ;;  %v857_v3 = vadd.f32 %v1308_v49, %v856_v1 }
 0x1bd   :  { %v1310_v53 = vpop.eup %1309 }
 0x1be   :  { %v869_v36 = vmul.f32 %v1310_v53, %v642_v55  ;;  %v861_v8 = vsel %vm860_vm12, %v1308_v49, %v857_v3  ;;  %vm874_vm13 = vweird.f32 %v1310_v53 }
 0x1bf   :  { %v866_v10 = vsel %vm863_vm14, %v865_v59, %v861_v8  ;;  %vm875_vm0 = vmor %vm873_vm15, %vm874_vm13 }
 0x1c0   :  { %v870_v42 = vsub.f32 1.0, %v869_v36  ;;  %v897_v2 = vmul.f32 %v866_v10, %v1739_v26 }
 0x1c2   :  { %v871_v40 = vmul.f32 %v1310_v53, %v870_v42 }
 0x1c4   :  { %v872_v54 = vadd.f32 %v1310_v53, %v871_v40 }
 0x1c6   :  { %v876_v14 = vsel %vm875_vm0, %v1310_v53, %v872_v54 }
 0x1c7   :  { %v881_v47 = vsel %vm878_vm1, %v880_v12, %v876_v14 }
 0x1c8   :  { %v898_v31 = vmul.f32 %v881_v47, %v1743_v13 }
 0x1ca   :  { %v923_v15 = vpack.c.bf16 %v898_v31, %v897_v2 }
 0x1cc   :  { %1018 = vmatmul.bf16.gmra.mxu3 %v923_v15 }
 0x1d9   :  { %v984_v19 = vpop.f32.mrf.mxu2 }
 0x1da   :  { %v985_v20 = vadd.f32 %v1182_v18, %v984_v19 }
 0x1dc   :  { %1024 = vst [vmem:[%s1808_s7] sm:$0xff] %v985_v20 }
 0x1e1   :  { %v986_v21 = vpop.f32.mrf.mxu2 }
 0x1e2   :  { %v987_v23 = vadd.f32 %v1182_v18, %v986_v21 }
 0x1e4   :  { %1025 = vst [vmem:[%s1808_s7 + $0x8] sm:$0xff] %v987_v23 }
 0x1e9   :  { %v989_v25 = vpop.f32.mrf.mxu2 }
 0x1ea   :  { %v990_v26 = vadd.f32 %v1182_v18, %v989_v25 }
 0x1ec   :  { %1026 = vst [vmem:[%s1808_s7 + $0x10] sm:$0xff] %v990_v26 }
 0x1f1   :  { %v991_v27 = vpop.f32.mrf.mxu2 }
 0x1f2   :  { %v992_v28 = vadd.f32 %v1182_v18, %v991_v27 }
 0x1f4   :  { %1027 = vst [vmem:[%s1808_s7 + $0x18] sm:$0xff] %v992_v28 }
 0x1f9   :  { %v994_v30 = vpop.f32.mrf.mxu2 }
 0x1fa   :  { %v995_v32 = vadd.f32 %v1182_v18, %v994_v30 }
 0x1fc   :  { %1028 = vst [vmem:[%s1808_s7 + $0x20] sm:$0xff] %v995_v32 }
 0x201   :  { %v996_v9 = vpop.f32.mrf.mxu2 }
 0x202   :  { %v997_v16 = vadd.f32 %v1182_v18, %v996_v9 }
 0x204   :  { %1029 = vst [vmem:[%s1808_s7 + $0x28] sm:$0xff] %v997_v16 }
 0x209   :  { %v999_v34 = vpop.f32.mrf.mxu2 }
 0x20a   :  { %v1000_v35 = vadd.f32 %v1182_v18, %v999_v34 }
 0x20c   :  { %1030 = vst [vmem:[%s1808_s7 + $0x30] sm:$0xff] %v1000_v35 }
 0x211   :  { %v1001_v5 = vpop.f32.mrf.mxu2 }
 0x212   :  { %v1002_v13 = vadd.f32 %v1182_v18, %v1001_v5 }
 0x214   :  { %1031 = vst [vmem:[%s1808_s7 + $0x38] sm:$0xff] %v1002_v13 }
 0x219   :  { %v1004_v33 = vpop.f32.mrf.mxu2 }
 0x21a   :  { %v1005_v22 = vadd.f32 %v1182_v18, %v1004_v33 }
 0x21c   :  { %1032 = vst [vmem:[%s1808_s7 + $0x40] sm:$0xff] %v1005_v22 }
 0x221   :  { %v1006_v38 = vpop.f32.mrf.mxu2 }
 0x222   :  { %v1007_v7 = vadd.f32 %v1182_v18, %v1006_v38 }
 0x224   :  { %1033 = vst [vmem:[%s1808_s7 + $0x48] sm:$0xff] %v1007_v7 }
 0x229   :  { %v1009_v24 = vpop.f32.mrf.mxu2 }
 0x22a   :  { %v1010_v39 = vadd.f32 %v1182_v18, %v1009_v24 }
 0x22c   :  { %1034 = vst [vmem:[%s1808_s7 + $0x50] sm:$0xff] %v1010_v39 }
 0x231   :  { %v1011_v41 = vpop.f32.mrf.mxu2 }
 0x232   :  { %v1012_v43 = vadd.f32 %v1182_v18, %v1011_v41 }
 0x234   :  { %1035 = vst [vmem:[%s1808_s7 + $0x58] sm:$0xff] %v1012_v43 }
 0x23f   :  { %v1014_v11 = vpop.f32.mrf.mxu3 }
 0x240   :  { %v1015_v29 = vadd.f32 %v1182_v18, %v1014_v11 }
 0x242   :  { %1036 = vst [vmem:[%s1808_s7 + $0x60] sm:$0xff] %v1015_v29 }
 0x247   :  { %v1016_v45 = vpop.f32.mrf.mxu3 }
 0x248   :  { %v1017_v17 = vadd.f32 %v1182_v18, %v1016_v45 }
 0x24a   :  { %1037 = vst [vmem:[%s1808_s7 + $0x68] sm:$0xff] %v1017_v17 }
 0x24f   :  { %v1019_v62 = vpop.f32.mrf.mxu3 }
 0x250   :  { %v1020_v46 = vadd.f32 %v1182_v18, %v1019_v62 }
 0x252   :  { %1038 = vst [vmem:[%s1808_s7 + $0x70] sm:$0xff] %v1020_v46 }
 0x257   :  { %v1021_v37 = vpop.f32.mrf.mxu3 }
 0x258   :  { %v1022_v48 = vadd.f32 %v1182_v18, %v1021_v37 }
 0x25a   :  { %1039 = vst [vmem:[%s1808_s7 + $0x78] sm:$0xff] %v1022_v48 }

// kernel: node_movement_corrector_forward.8
= control target key start
LH: loop header
LB: loop body
LE: loop exit
PB: predicated region body
PF: predicated region fallthrough
CT: control target
= control target key end

     0   :  { %vm57_vm0 = vcmask 1041408   ;;  %vm44_vm1 = vcmask 31744   ;;  %s1066_s1 = inlined_call_operand.vmem [shape: bf16[4,128], index: 1, kind: input, shape index: {}]   ;;  %s1067_s0 = inlined_call_operand.vmem [shape: f32[64,4], index: 0, kind: input, shape index: {}]   ;;  %s1068_s2 = inlined_call_operand.vmem [shape: f32[1,128], index: 2, kind: input, shape index: {}]   ;;  %s1069_s4 = inlined_call_operand.vmem [shape: f32[1,128], index: 4, kind: input, shape index: {}]   ;;  %s1070_s3 = inlined_call_operand.vmem [shape: bf16[128,128], index: 3, kind: input, shape index: {}]   ;;  %s1071_s6 = inlined_call_operand.vmem [shape: f32[1,128], index: 6, kind: input, shape index: {}]   ;;  %s1072_s5 = inlined_call_operand.vmem [shape: bf16[128,128], index: 5, kind: input, shape index: {}]   ;;  %s1073_s7 = inlined_call_operand.vmem [shape: f32[64,128], index: 7, kind: output, shape index: {}]  }
   0x1   :  { %v35_v0 = vld [vmem:[%s1066_s1] sm:$0x3]  ;;  %v28_v2 = vld [vmem:[%s1067_s0 + $0x8] sm:$0xff]  ;;  %v29_v5 = vld [vmem:[%s1067_s0 + $0x10] sm:$0xff] }
   0x2   :  { %v27_v1 = vld [vmem:[%s1067_s0] sm:$0xff]  ;;  %v59_v3 = vsel %vm57_vm0, %v35_v0, 0  ;;  %v30_v6 = vld [vmem:[%s1067_s0 + $0x18] sm:$0xff]  ;;  %v32_v9 = vld [vmem:[%s1067_s0 + $0x28] sm:$0xff] }
   0x3   :  { %v37_v4 = vpack.c.bf16 %v28_v2, %v27_v1  ;;  %68 = vmatpush.bf16.msra.mxu0 %v59_v3  ;;  %v38_v7 = vpack.c.bf16 %v30_v6, %v29_v5  ;;  %v31_v8 = vld [vmem:[%s1067_s0 + $0x20] sm:$0xff]  ;;  %v33_v11 = vld [vmem:[%s1067_s0 + $0x30] sm:$0xff]  ;;  %v34_v12 = vld [vmem:[%s1067_s0 + $0x38] sm:$0xff] }
   0x4   :  { %v39_v10 = vpack.c.bf16 %v32_v9, %v31_v8  ;;  %v40_v13 = vpack.c.bf16 %v34_v12, %v33_v11  ;;  %v715_v14 = vld [vmem:[%s1070_s3 + $0x38] sm:$0xff]  ;;  %v714_v15 = vld [vmem:[%s1070_s3 + $0x30] sm:$0xff]  ;;  %v713_v16 = vld [vmem:[%s1070_s3 + $0x28] sm:$0xff] }
   0x5   :  { %322 = vmatpush.bf16.msra.mxu1 %v715_v14  ;;  %724 = vmatpush.bf16.msra.mxu3 %v715_v14  ;;  %v712_v17 = vld [vmem:[%s1070_s3 + $0x20] sm:$0xff]  ;;  %v711_v18 = vld [vmem:[%s1070_s3 + $0x18] sm:$0xff]  ;;  %v710_v20 = vld [vmem:[%s1070_s3 + $0x10] sm:$0xff] }
   0x6   :  { %624 = vmatmul.msk.bf16.vlgmr.msra.gmra.mxu0 %vm44_vm1, %v37_v4  ;;  %v892_v19 = vld [vmem:[%s1068_s2] ss:$0 sm:$0xff]  ;;  %v709_v24 = vld [vmem:[%s1070_s3 + $0x8] sm:$0xff] }
   0x7   :  { %v708_v25 = vld [vmem:[%s1070_s3] sm:$0xff] }
   0x9   :  { %323 = vmatpush.bf16.msra.mxu1 %v714_v15  ;;  %725 = vmatpush.bf16.msra.mxu3 %v714_v15 }
   0xd   :  { %324 = vmatpush.bf16.msra.mxu1 %v713_v16  ;;  %726 = vmatpush.bf16.msra.mxu3 %v713_v16 }
  0x11   :  { %325 = vmatpush.bf16.msra.mxu1 %v712_v17  ;;  %727 = vmatpush.bf16.msra.mxu3 %v712_v17 }
  0x15   :  { %326 = vmatpush.bf16.msra.mxu1 %v711_v18  ;;  %728 = vmatpush.bf16.msra.mxu3 %v711_v18 }
  0x16   :  { %625 = vmatmul.msk.bf16.gmra.mxu0 %vm44_vm1, %v38_v7 }
  0x19   :  { %327 = vmatpush.bf16.msra.mxu1 %v710_v20  ;;  %729 = vmatpush.bf16.msra.mxu3 %v710_v20 }
  0x1d   :  { %328 = vmatpush.bf16.msra.mxu1 %v709_v24  ;;  %730 = vmatpush.bf16.msra.mxu3 %v709_v24 }
  0x21   :  { %329 = vmatpush.bf16.msra.mxu1 %v708_v25  ;;  %731 = vmatpush.bf16.msra.mxu3 %v708_v25 }
  0x26   :  { %626 = vmatmul.msk.bf16.gmra.mxu0 %vm44_vm1, %v39_v10 }
  0x36   :  { %627 = vmatmul.msk.bf16.gmra.mxu0 %vm44_vm1, %v40_v13 }
  0x83   :  { %v70_v21 = vpop.f32.mrf.mxu0 }
  0x84   :  { %v898_v22 = vadd.f32 %v892_v19, %v70_v21 }
  0x86   :  { %v628_v23 = vmul.f32 -1.442695, %v898_v22 }
  0x88   :  { %743 = vpow2.f32 %v628_v23 }
  0x8b   :  { %v72_v26 = vpop.f32.mrf.mxu0 }
  0x8c   :  { %v73_v27 = vadd.f32 %v892_v19, %v72_v26 }
  0x8e   :  { %v744_v28 = vpop.eup %743  ;;  %v629_v29 = vmul.f32 -1.442695, %v73_v27 }
  0x8f   :  { %v114_v30 = vadd.f32 1.0, %v744_v28 }
  0x90   :  { %745 = vpow2.f32 %v629_v29 }
  0x91   :  { %747 = vrcp.f32 %v114_v30  ;;  %v133_v48 = vand.u32 2147483648, %v114_v30  ;;  %vm127_vm3 = vweird.f32 %v114_v30  ;;  %v131_v49 = vand.u32 2147483647, %v114_v30 }
  0x93   :  { %v75_v31 = vpop.f32.mrf.mxu0  ;;  %v134_v58 = vor.u32 1.1754944e-38, %v133_v48  ;;  %vm132_vm6 = vcmp.eq.f32.partialorder %v131_v49, 8.507059e+37 }
  0x94   :  { %v909_v32 = vadd.f32 %v892_v19, %v75_v31 }
  0x96   :  { %v746_v33 = vpop.eup %745  ;;  %v630_v34 = vmul.f32 -1.442695, %v909_v32 }
  0x97   :  { %v748_v35 = vpop.eup %747  ;;  %v115_v36 = vadd.f32 1.0, %v746_v33 }
  0x98   :  { %v123_v37 = vmul.f32 %v748_v35, %v114_v30  ;;  %749 = vpow2.f32 %v630_v34  ;;  %vm128_vm2 = vweird.f32 %v748_v35 }
  0x99   :  { %751 = vrcp.f32 %v115_v36  ;;  %vm919_vm4 = vmor %vm127_vm3, %vm128_vm2  ;;  %v146_v52 = vand.u32 2147483647, %v115_v36  ;;  %v148_v53 = vand.u32 2147483648, %v115_v36  ;;  %vm142_vm7 = vweird.f32 %v115_v36 }
  0x9a   :  { %v124_v38 = vsub.f32 1.0, %v123_v37 }
  0x9b   :  { %v77_v39 = vpop.f32.mrf.mxu0  ;;  %v149_v0 = vor.u32 1.1754944e-38, %v148_v53  ;;  %vm147_vm9 = vcmp.eq.f32.partialorder %v146_v52, 8.507059e+37 }
  0x9c   :  { %v125_v40 = vmul.f32 %v748_v35, %v124_v38  ;;  %v913_v41 = vadd.f32 %v892_v19, %v77_v39 }
  0x9e   :  { %v750_v42 = vpop.eup %749  ;;  %v631_v43 = vmul.f32 -1.442695, %v913_v41  ;;  %v126_v46 = vadd.f32 %v748_v35, %v125_v40 }
  0x9f   :  { %v752_v44 = vpop.eup %751  ;;  %v916_v45 = vadd.f32 1.0, %v750_v42 }
  0xa0   :  { %v138_v47 = vmul.f32 %v752_v44, %v115_v36  ;;  %753 = vpow2.f32 %v631_v43  ;;  %v130_v55 = vsel %vm919_vm4, %v748_v35, %v126_v46  ;;  %vm143_vm5 = vweird.f32 %v752_v44 }
  0xa1   :  { %755 = vrcp.f32 %v916_v45  ;;  %v135_v63 = vsel %vm132_vm6, %v134_v58, %v130_v55  ;;  %vm144_vm8 = vmor %vm142_vm7, %vm143_vm5  ;;  %v163_v18 = vand.u32 2147483648, %v916_v45  ;;  %vm157_vm11 = vweird.f32 %v916_v45 }
  0xa2   :  { %v139_v50 = vsub.f32 1.0, %v138_v47  ;;  %v242_v5 = vmul.f32 %v135_v63, %v898_v22  ;;  %v161_v20 = vand.u32 2147483647, %v916_v45 }
  0xa3   :  { %v80_v54 = vpop.f32.mrf.mxu0  ;;  %v164_v29 = vor.u32 1.1754944e-38, %v163_v18 }
  0xa4   :  { %v140_v56 = vmul.f32 %v752_v44, %v139_v50  ;;  %v926_v57 = vadd.f32 %v892_v19, %v80_v54  ;;  %vm162_vm14 = vcmp.eq.f32.partialorder %v161_v20, 8.507059e+37 }
  0xa6   :  { %v754_v59 = vpop.eup %753  ;;  %v141_v60 = vadd.f32 %v752_v44, %v140_v56  ;;  %v632_v61 = vmul.f32 -1.442695, %v926_v57 }
  0xa7   :  { %v756_v62 = vpop.eup %755  ;;  %v117_v1 = vadd.f32 1.0, %v754_v59 }
  0xa8   :  { %v145_v2 = vsel %vm144_vm8, %v752_v44, %v141_v60  ;;  %v153_v3 = vmul.f32 %v756_v62, %v916_v45  ;;  %757 = vpow2.f32 %v632_v61  ;;  %vm158_vm10 = vweird.f32 %v756_v62 }
  0xa9   :  { %v150_v4 = vsel %vm147_vm9, %v149_v0, %v145_v2  ;;  %759 = vrcp.f32 %v117_v1  ;;  %vm941_vm12 = vmor %vm157_vm11, %vm158_vm10  ;;  %v176_v23 = vand.u32 2147483647, %v117_v1  ;;  %v178_v24 = vand.u32 2147483648, %v117_v1 }
  0xaa   :  { %v243_v6 = vmul.f32 %v150_v4, %v73_v27  ;;  %v154_v7 = vsub.f32 1.0, %v153_v3  ;;  %vm172_vm15 = vweird.f32 %v117_v1 }
  0xab   :  { %v82_v8 = vpop.f32.mrf.mxu0  ;;  %v179_v36 = vor.u32 1.1754944e-38, %v178_v24  ;;  %vm177_vm1 = vcmp.eq.f32.partialorder %v176_v23, 8.507059e+37 }
  0xac   :  { %v155_v9 = vmul.f32 %v756_v62, %v154_v7  ;;  %v932_v10 = vadd.f32 %v892_v19, %v82_v8  ;;  %v267_v11 = vpack.c.bf16 %v243_v6, %v242_v5 }
  0xae   :  { %v758_v12 = vpop.eup %757  ;;  %v633_v13 = vmul.f32 -1.442695, %v932_v10  ;;  %330 = vmatmul.bf16.vlgmr.msra.gmra.mxu1 %v267_v11  ;;  %v156_v16 = vadd.f32 %v756_v62, %v155_v9 }
  0xaf   :  { %v760_v14 = vpop.eup %759  ;;  %v935_v15 = vadd.f32 1.0, %v758_v12 }
  0xb0   :  { %v168_v17 = vmul.f32 %v760_v14, %v117_v1  ;;  %761 = vpow2.f32 %v633_v13  ;;  %v160_v26 = vsel %vm941_vm12, %v756_v62, %v156_v16  ;;  %vm173_vm13 = vweird.f32 %v760_v14 }
  0xb1   :  { %763 = vrcp.f32 %v935_v15  ;;  %v165_v35 = vsel %vm162_vm14, %v164_v29, %v160_v26  ;;  %vm174_vm0 = vmor %vm172_vm15, %vm173_vm13  ;;  %vm187_vm3 = vweird.f32 %v935_v15 }
  0xb2   :  { %v169_v21 = vsub.f32 1.0, %v168_v17  ;;  %v244_v42 = vmul.f32 %v165_v35, %v909_v32  ;;  %v193_v32 = vand.u32 2147483648, %v935_v15  ;;  %v719_v35 = vld [vmem:[%s1072_s5 + $0x18] sm:$0xff] }
  0xb3   :  { %v85_v25 = vpop.f32.mrf.mxu0 }
  0xb4   :  { %v170_v27 = vmul.f32 %v760_v14, %v169_v21  ;;  %v948_v28 = vadd.f32 %v892_v19, %v85_v25  ;;  %v194_v60 = vor.u32 1.1754944e-38, %v193_v32 }
  0xb6   :  { %v762_v30 = vpop.eup %761  ;;  %v171_v31 = vadd.f32 %v760_v14, %v170_v27  ;;  %v634_v33 = vmul.f32 -1.442695, %v948_v28 }
  0xb7   :  { %v764_v34 = vpop.eup %763  ;;  %v119_v37 = vadd.f32 1.0, %v762_v30 }
  0xb8   :  { %v175_v38 = vsel %vm174_vm0, %v760_v14, %v171_v31  ;;  %v183_v39 = vmul.f32 %v764_v34, %v935_v15  ;;  %765 = vpow2.f32 %v634_v33  ;;  %vm188_vm2 = vweird.f32 %v764_v34  ;;  %v723_v31 = vld [vmem:[%s1072_s5 + $0x38] sm:$0xff]  ;;  %v722_v33 = vld [vmem:[%s1072_s5 + $0x30] sm:$0xff] }
  0xb9   :  { %v180_v40 = vsel %vm177_vm1, %v179_v36, %v175_v38  ;;  %767 = vrcp.f32 %v119_v37  ;;  %vm189_vm4 = vmor %vm187_vm3, %vm188_vm2  ;;  %v208_v55 = vand.u32 2147483648, %v119_v37  ;;  %v206_v59 = vand.u32 2147483647, %v119_v37  ;;  %583 = vmatpush.bf16.msrb.mxu1 %v723_v31  ;;  %732 = vmatpush.bf16.msra.mxu2 %v723_v31  ;;  %v983_v36 = vld [vmem:[%s1069_s4] ss:$0 sm:$0xff] }
  0xba   :  { %v245_v43 = vmul.f32 %v180_v40, %v913_v41  ;;  %v184_v44 = vsub.f32 1.0, %v183_v39  ;;  %v191_v41 = vand.u32 2147483647, %v935_v15  ;;  %vm202_vm7 = vweird.f32 %v119_v37 }
  0xbb   :  { %v87_v45 = vpop.f32.mrf.mxu0  ;;  %v209_v1 = vor.u32 1.1754944e-38, %v208_v55  ;;  %vm207_vm9 = vcmp.eq.f32.partialorder %v206_v59, 8.507059e+37 }
  0xbc   :  { %v185_v46 = vmul.f32 %v764_v34, %v184_v44  ;;  %v955_v47 = vadd.f32 %v892_v19, %v87_v45  ;;  %v268_v48 = vpack.c.bf16 %v245_v43, %v244_v42  ;;  %vm192_vm6 = vcmp.eq.f32.partialorder %v191_v41, 8.507059e+37  ;;  %v717_v42 = vld [vmem:[%s1072_s5 + $0x8] sm:$0xff]  ;;  %v716_v43 = vld [vmem:[%s1072_s5] sm:$0xff] }
  0xbd   :  { %584 = vmatpush.bf16.msrb.mxu1 %v722_v33  ;;  %733 = vmatpush.bf16.msra.mxu2 %v722_v33 }
  0xbe   :  { %v766_v49 = vpop.eup %765  ;;  %v635_v50 = vmul.f32 -1.442695, %v955_v47  ;;  %335 = vmatmul.bf16.vlgmr.msra.gmra.mxu3 %v268_v48  ;;  %v186_v53 = vadd.f32 %v764_v34, %v185_v46 }
  0xbf   :  { %v768_v51 = vpop.eup %767  ;;  %v120_v52 = vadd.f32 1.0, %v766_v49 }
  0xc0   :  { %v198_v54 = vmul.f32 %v768_v51, %v119_v37  ;;  %769 = vpow2.f32 %v635_v50  ;;  %v190_v56 = vsel %vm189_vm4, %v764_v34, %v186_v53  ;;  %vm203_vm5 = vweird.f32 %v768_v51  ;;  %v720_v34 = vld [vmem:[%s1072_s5 + $0x20] sm:$0xff]  ;;  %v718_v37 = vld [vmem:[%s1072_s5 + $0x10] sm:$0xff] }
  0xc1   :  { %771 = vrcp.f32 %v120_v52  ;;  %v195_v0 = vsel %vm192_vm6, %v194_v60, %v190_v56  ;;  %vm204_vm8 = vmor %vm202_vm7, %vm203_vm5  ;;  %v223_v15 = vand.u32 2147483648, %v120_v52  ;;  %vm217_vm11 = vweird.f32 %v120_v52 }
  0xc2   :  { %v199_v19 = vsub.f32 1.0, %v198_v54  ;;  %v246_v6 = vmul.f32 %v195_v0, %v926_v57  ;;  %v221_v16 = vand.u32 2147483647, %v120_v52 }
  0xc3   :  { %v224_v22 = vor.u32 1.1754944e-38, %v223_v15 }
  0xc4   :  { %v200_v58 = vmul.f32 %v768_v51, %v199_v19  ;;  %vm222_vm14 = vcmp.eq.f32.partialorder %v221_v16, 8.507059e+37 }
  0xc6   :  { %v770_v61 = vpop.eup %769  ;;  %v201_v62 = vadd.f32 %v768_v51, %v200_v58 }
  0xc7   :  { %v772_v63 = vpop.eup %771  ;;  %v121_v2 = vadd.f32 1.0, %v770_v61 }
  0xc8   :  { %v205_v3 = vsel %vm204_vm8, %v768_v51, %v201_v62  ;;  %v213_v4 = vmul.f32 %v772_v63, %v120_v52  ;;  %vm218_vm10 = vweird.f32 %v772_v63 }
  0xc9   :  { %v210_v5 = vsel %vm207_vm9, %v209_v1, %v205_v3  ;;  %773 = vrcp.f32 %v121_v2  ;;  %vm219_vm12 = vmor %vm217_vm11, %vm218_vm10  ;;  %v238_v18 = vand.u32 2147483648, %v121_v2  ;;  %v236_v57 = vand.u32 2147483647, %v121_v2 }
  0xca   :  { %v247_v7 = vmul.f32 %v210_v5, %v932_v10  ;;  %v214_v8 = vsub.f32 1.0, %v213_v4  ;;  %vm232_vm15 = vweird.f32 %v121_v2 }
  0xcb   :  { %v239_v24 = vor.u32 1.1754944e-38, %v238_v18  ;;  %vm237_vm1 = vcmp.eq.f32.partialorder %v236_v57, 8.507059e+37 }
  0xcc   :  { %v215_v9 = vmul.f32 %v772_v63, %v214_v8  ;;  %v269_v11 = vpack.c.bf16 %v247_v7, %v246_v6 }
  0xce   :  { %340 = vmatmul.bf16.gmra.mxu3 %v269_v11  ;;  %v216_v13 = vadd.f32 %v772_v63, %v215_v9 }
  0xcf   :  { %v774_v12 = vpop.eup %773 }
  0xd0   :  { %v228_v14 = vmul.f32 %v774_v12, %v121_v2  ;;  %v220_v20 = vsel %vm219_vm12, %v772_v63, %v216_v13  ;;  %vm233_vm13 = vweird.f32 %v774_v12 }
  0xd1   :  { %v225_v23 = vsel %vm222_vm14, %v224_v22, %v220_v20  ;;  %vm234_vm0 = vmor %vm232_vm15, %vm233_vm13 }
  0xd2   :  { %v229_v17 = vsub.f32 1.0, %v228_v14  ;;  %v248_v27 = vmul.f32 %v225_v23, %v948_v28  ;;  %v721_v28 = vld [vmem:[%s1072_s5 + $0x28] sm:$0xff] }
  0xd3   :  { %585 = vmatpush.bf16.msrb.mxu1 %v721_v28  ;;  %734 = vmatpush.bf16.msra.mxu2 %v721_v28 }
  0xd4   :  { %v230_v21 = vmul.f32 %v774_v12, %v229_v17 }
  0xd6   :  { %v231_v10 = vadd.f32 %v774_v12, %v230_v21 }
  0xd7   :  { %586 = vmatpush.bf16.msrb.mxu1 %v720_v34  ;;  %735 = vmatpush.bf16.msra.mxu2 %v720_v34 }
  0xd8   :  { %v235_v25 = vsel %vm234_vm0, %v774_v12, %v231_v10 }
  0xd9   :  { %v240_v26 = vsel %vm237_vm1, %v239_v24, %v235_v25 }
  0xda   :  { %v249_v29 = vmul.f32 %v240_v26, %v955_v47 }
  0xdb   :  { %587 = vmatpush.bf16.msrb.mxu1 %v719_v35  ;;  %736 = vmatpush.bf16.msra.mxu2 %v719_v35 }
  0xdc   :  { %v270_v30 = vpack.c.bf16 %v249_v29, %v248_v27 }
  0xde   :  { %345 = vmatmul.bf16.gmra.mxu3 %v270_v30 }
  0xdf   :  { %588 = vmatpush.bf16.msrb.mxu1 %v718_v37  ;;  %737 = vmatpush.bf16.msra.mxu2 %v718_v37 }
  0xe3   :  { %589 = vmatpush.bf16.msrb.mxu1 %v717_v42  ;;  %738 = vmatpush.bf16.msra.mxu2 %v717_v42 }
  0xe7   :  { %590 = vmatpush.bf16.msrb.mxu1 %v716_v43  ;;  %739 = vmatpush.bf16.msra.mxu2 %v716_v43 }
 0x12b   :  { %v331_v38 = vpop.f32.mrf.mxu1 }
 0x12c   :  { %v332_v39 = vadd.f32 %v983_v36, %v331_v38 }
 0x12e   :  { %v668_v40 = vmul.f32 -1.442695, %v332_v39 }
 0x130   :  { %775 = vpow2.f32 %v668_v40 }
 0x133   :  { %v333_v44 = vpop.f32.mrf.mxu1 }
 0x134   :  { %v334_v45 = vadd.f32 %v983_v36, %v333_v44 }
 0x136   :  { %v776_v46 = vpop.eup %775  ;;  %v669_v47 = vmul.f32 -1.442695, %v334_v45 }
 0x137   :  { %v375_v48 = vadd.f32 1.0, %v776_v46 }
 0x138   :  { %777 = vpow2.f32 %v669_v47 }
 0x139   :  { %779 = vrcp.f32 %v375_v48  ;;  %v394_v59 = vand.u32 2147483648, %v375_v48  ;;  %vm388_vm3 = vweird.f32 %v375_v48  ;;  %v392_v61 = vand.u32 2147483647, %v375_v48 }
 0x13b   :  { %v395_v6 = vor.u32 1.1754944e-38, %v394_v59  ;;  %vm393_vm6 = vcmp.eq.f32.partialorder %v392_v61, 8.507059e+37 }
 0x13e   :  { %v778_v49 = vpop.eup %777 }
 0x13f   :  { %v780_v50 = vpop.eup %779  ;;  %v376_v51 = vadd.f32 1.0, %v778_v49 }
 0x140   :  { %v384_v52 = vmul.f32 %v780_v50, %v375_v48  ;;  %vm389_vm2 = vweird.f32 %v780_v50 }
 0x141   :  { %781 = vrcp.f32 %v376_v51  ;;  %v336_v53 = vpop.f32.mrf.mxu3  ;;  %vm390_vm4 = vmor %vm388_vm3, %vm389_vm2  ;;  %v407_v0 = vand.u32 2147483647, %v376_v51  ;;  %v409_v1 = vand.u32 2147483648, %v376_v51  ;;  %vm403_vm7 = vweird.f32 %v376_v51 }
 0x142   :  { %v385_v54 = vsub.f32 1.0, %v384_v52  ;;  %v997_v32 = vadd.f32 %v983_v36, %v336_v53 }
 0x143   :  { %v410_v11 = vor.u32 1.1754944e-38, %v409_v1  ;;  %vm408_vm9 = vcmp.eq.f32.partialorder %v407_v0, 8.507059e+37 }
 0x144   :  { %v386_v41 = vmul.f32 %v780_v50, %v385_v54  ;;  %v670_v19 = vmul.f32 -1.442695, %v997_v32 }
 0x146   :  { %783 = vpow2.f32 %v670_v19  ;;  %v387_v56 = vadd.f32 %v780_v50, %v386_v41 }
 0x147   :  { %v782_v55 = vpop.eup %781 }
 0x148   :  { %v399_v58 = vmul.f32 %v782_v55, %v376_v51  ;;  %v391_v3 = vsel %vm390_vm4, %v780_v50, %v387_v56  ;;  %vm404_vm5 = vweird.f32 %v782_v55 }
 0x149   :  { %v338_v60 = vpop.f32.mrf.mxu3  ;;  %v396_v9 = vsel %vm393_vm6, %v395_v6, %v391_v3  ;;  %vm405_vm8 = vmor %vm403_vm7, %vm404_vm5 }
 0x14a   :  { %v400_v62 = vsub.f32 1.0, %v399_v58  ;;  %v1001_v63 = vadd.f32 %v983_v36, %v338_v60  ;;  %v503_v15 = vmul.f32 %v396_v9, %v332_v39 }
 0x14c   :  { %v784_v2 = vpop.eup %783  ;;  %v401_v4 = vmul.f32 %v782_v55, %v400_v62  ;;  %v671_v5 = vmul.f32 -1.442695, %v1001_v63 }
 0x14d   :  { %v377_v7 = vadd.f32 1.0, %v784_v2 }
 0x14e   :  { %v402_v8 = vadd.f32 %v782_v55, %v401_v4  ;;  %785 = vpow2.f32 %v671_v5 }
 0x14f   :  { %787 = vrcp.f32 %v377_v7  ;;  %v424_v34 = vand.u32 2147483648, %v377_v7  ;;  %vm418_vm11 = vweird.f32 %v377_v7  ;;  %v422_v35 = vand.u32 2147483647, %v377_v7 }
 0x150   :  { %v406_v12 = vsel %vm405_vm8, %v782_v55, %v402_v8 }
 0x151   :  { %v411_v13 = vsel %vm408_vm9, %v410_v11, %v406_v12  ;;  %v341_v14 = vpop.f32.mrf.mxu3  ;;  %v425_v46 = vor.u32 1.1754944e-38, %v424_v34  ;;  %vm423_vm14 = vcmp.eq.f32.partialorder %v422_v35, 8.507059e+37 }
 0x152   :  { %v504_v16 = vmul.f32 %v411_v13, %v334_v45  ;;  %v1005_v17 = vadd.f32 %v983_v36, %v341_v14 }
 0x154   :  { %v786_v18 = vpop.eup %785  ;;  %v672_v20 = vmul.f32 -1.442695, %v1005_v17  ;;  %v528_v21 = vpack.c.bf16 %v504_v16, %v503_v15 }
 0x155   :  { %v788_v57 = vpop.eup %787  ;;  %v378_v22 = vadd.f32 1.0, %v786_v18 }
 0x156   :  { %v414_v10 = vmul.f32 %v788_v57, %v377_v7  ;;  %789 = vpow2.f32 %v672_v20  ;;  %591 = vmatmul.bf16.vlgmr.msrb.gmra.mxu1 %v528_v21  ;;  %vm419_vm10 = vweird.f32 %v788_v57 }
 0x157   :  { %791 = vrcp.f32 %v378_v22  ;;  %vm1015_vm12 = vmor %vm418_vm11, %vm419_vm10  ;;  %v437_v39 = vand.u32 2147483647, %v378_v22  ;;  %v439_v40 = vand.u32 2147483648, %v378_v22  ;;  %vm433_vm15 = vweird.f32 %v378_v22 }
 0x158   :  { %v415_v23 = vsub.f32 1.0, %v414_v10 }
 0x159   :  { %v343_v24 = vpop.f32.mrf.mxu3  ;;  %v440_v52 = vor.u32 1.1754944e-38, %v439_v40  ;;  %vm438_vm1 = vcmp.eq.f32.partialorder %v437_v39, 8.507059e+37 }
 0x15a   :  { %v416_v25 = vmul.f32 %v788_v57, %v415_v23  ;;  %v1009_v26 = vadd.f32 %v983_v36, %v343_v24 }
 0x15c   :  { %v790_v27 = vpop.eup %789  ;;  %v673_v29 = vmul.f32 -1.442695, %v1009_v26  ;;  %v417_v33 = vadd.f32 %v788_v57, %v416_v25 }
 0x15d   :  { %v792_v30 = vpop.eup %791  ;;  %v1012_v31 = vadd.f32 1.0, %v790_v27 }
 0x15e   :  { %v429_v28 = vmul.f32 %v792_v30, %v378_v22  ;;  %793 = vpow2.f32 %v673_v29  ;;  %v421_v43 = vsel %vm1015_vm12, %v788_v57, %v417_v33  ;;  %vm434_vm13 = vweird.f32 %v792_v30 }
 0x15f   :  { %795 = vrcp.f32 %v1012_v31  ;;  %v426_v51 = vsel %vm423_vm14, %v425_v46, %v421_v43  ;;  %vm435_vm0 = vmor %vm433_vm15, %vm434_vm13  ;;  %vm448_vm3 = vweird.f32 %v1012_v31 }
 0x160   :  { %v430_v37 = vsub.f32 1.0, %v429_v28  ;;  %v505_v55 = vmul.f32 %v426_v51, %v997_v32  ;;  %v454_v32 = vand.u32 2147483648, %v1012_v31 }
 0x161   :  { %v346_v42 = vpop.f32.mrf.mxu3 }
 0x162   :  { %v431_v44 = vmul.f32 %v792_v30, %v430_v37  ;;  %v1022_v45 = vadd.f32 %v983_v36, %v346_v42  ;;  %v455_v11 = vor.u32 1.1754944e-38, %v454_v32 }
 0x164   :  { %v794_v47 = vpop.eup %793  ;;  %v432_v48 = vadd.f32 %v792_v30, %v431_v44  ;;  %v674_v49 = vmul.f32 -1.442695, %v1022_v45 }
 0x165   :  { %v796_v50 = vpop.eup %795  ;;  %v380_v53 = vadd.f32 1.0, %v794_v47 }
 0x166   :  { %v436_v54 = vsel %vm435_vm0, %v792_v30, %v432_v48  ;;  %v444_v41 = vmul.f32 %v796_v50, %v1012_v31  ;;  %797 = vpow2.f32 %v674_v49  ;;  %vm449_vm2 = vweird.f32 %v796_v50  ;;  %v742_v48 = vld [vmem:[%s1071_s6] ss:$0 sm:$0xff] }
 0x167   :  { %v441_v19 = vsel %vm438_vm1, %v440_v52, %v436_v54  ;;  %799 = vrcp.f32 %v380_v53  ;;  %vm450_vm4 = vmor %vm448_vm3, %vm449_vm2  ;;  %v469_v6 = vand.u32 2147483648, %v380_v53  ;;  %v467_v9 = vand.u32 2147483647, %v380_v53 }
 0x168   :  { %v506_v56 = vmul.f32 %v441_v19, %v1001_v63  ;;  %v445_v58 = vsub.f32 1.0, %v444_v41  ;;  %v452_v63 = vand.u32 2147483647, %v1012_v31  ;;  %vm463_vm7 = vweird.f32 %v380_v53 }
 0x169   :  { %v348_v59 = vpop.f32.mrf.mxu3  ;;  %v470_v16 = vor.u32 1.1754944e-38, %v469_v6  ;;  %vm468_vm9 = vcmp.eq.f32.partialorder %v467_v9, 8.507059e+37 }
 0x16a   :  { %v446_v60 = vmul.f32 %v796_v50, %v445_v58  ;;  %v1029_v61 = vadd.f32 %v983_v36, %v348_v59  ;;  %v529_v62 = vpack.c.bf16 %v506_v56, %v505_v55  ;;  %vm453_vm6 = vcmp.eq.f32.partialorder %v452_v63, 8.507059e+37 }
 0x16c   :  { %v798_v0 = vpop.eup %797  ;;  %v675_v1 = vmul.f32 -1.442695, %v1029_v61  ;;  %596 = vmatmul.bf16.vlgmr.msra.gmra.mxu2 %v529_v62  ;;  %v447_v4 = vadd.f32 %v796_v50, %v446_v60 }
 0x16d   :  { %v800_v2 = vpop.eup %799  ;;  %v381_v3 = vadd.f32 1.0, %v798_v0 }
 0x16e   :  { %v459_v5 = vmul.f32 %v800_v2, %v380_v53  ;;  %801 = vpow2.f32 %v675_v1  ;;  %v451_v7 = vsel %vm450_vm4, %v796_v50, %v447_v4  ;;  %vm464_vm5 = vweird.f32 %v800_v2 }
 0x16f   :  { %803 = vrcp.f32 %v381_v3  ;;  %v456_v15 = vsel %vm453_vm6, %v455_v11, %v451_v7  ;;  %vm465_vm8 = vmor %vm463_vm7, %vm464_vm5  ;;  %v484_v31 = vand.u32 2147483648, %v381_v3  ;;  %vm478_vm11 = vweird.f32 %v381_v3 }
 0x170   :  { %v460_v36 = vsub.f32 1.0, %v459_v5  ;;  %v507_v22 = vmul.f32 %v456_v15, %v1005_v17  ;;  %v482_v33 = vand.u32 2147483647, %v381_v3 }
 0x171   :  { %v485_v38 = vor.u32 1.1754944e-38, %v484_v31 }
 0x172   :  { %v461_v8 = vmul.f32 %v800_v2, %v460_v36  ;;  %vm483_vm14 = vcmp.eq.f32.partialorder %v482_v33, 8.507059e+37 }
 0x174   :  { %v802_v12 = vpop.eup %801  ;;  %v462_v13 = vadd.f32 %v800_v2, %v461_v8 }
 0x175   :  { %v804_v14 = vpop.eup %803  ;;  %v382_v18 = vadd.f32 1.0, %v802_v12 }
 0x176   :  { %v466_v20 = vsel %vm465_vm8, %v800_v2, %v462_v13  ;;  %v474_v21 = vmul.f32 %v804_v14, %v381_v3  ;;  %vm479_vm10 = vweird.f32 %v804_v14 }
 0x177   :  { %v471_v57 = vsel %vm468_vm9, %v470_v16, %v466_v20  ;;  %805 = vrcp.f32 %v382_v18  ;;  %vm480_vm12 = vmor %vm478_vm11, %vm479_vm10  ;;  %v499_v34 = vand.u32 2147483648, %v382_v18  ;;  %v497_v17 = vand.u32 2147483647, %v382_v18 }
 0x178   :  { %v508_v10 = vmul.f32 %v471_v57, %v1009_v26  ;;  %v475_v23 = vsub.f32 1.0, %v474_v21  ;;  %vm493_vm15 = vweird.f32 %v382_v18 }
 0x179   :  { %v500_v40 = vor.u32 1.1754944e-38, %v499_v34  ;;  %vm498_vm1 = vcmp.eq.f32.partialorder %v497_v17, 8.507059e+37 }
 0x17a   :  { %v476_v24 = vmul.f32 %v804_v14, %v475_v23  ;;  %v530_v25 = vpack.c.bf16 %v508_v10, %v507_v22 }
 0x17c   :  { %601 = vmatmul.bf16.gmra.mxu2 %v530_v25  ;;  %v477_v29 = vadd.f32 %v804_v14, %v476_v24 }
 0x17d   :  { %v806_v27 = vpop.eup %805 }
 0x17e   :  { %v489_v30 = vmul.f32 %v806_v27, %v382_v18  ;;  %v481_v35 = vsel %vm480_vm12, %v804_v14, %v477_v29  ;;  %vm494_vm13 = vweird.f32 %v806_v27 }
 0x17f   :  { %v486_v39 = vsel %vm483_vm14, %v485_v38, %v481_v35  ;;  %vm495_vm0 = vmor %vm493_vm15, %vm494_vm13 }
 0x180   :  { %v490_v28 = vsub.f32 1.0, %v489_v30  ;;  %v509_v44 = vmul.f32 %v486_v39, %v1022_v45 }
 0x182   :  { %v491_v37 = vmul.f32 %v806_v27, %v490_v28 }
 0x184   :  { %v492_v26 = vadd.f32 %v806_v27, %v491_v37 }
 0x186   :  { %v496_v42 = vsel %vm495_vm0, %v806_v27, %v492_v26 }
 0x187   :  { %v501_v43 = vsel %vm498_vm1, %v500_v40, %v496_v42 }
 0x188   :  { %v510_v46 = vmul.f32 %v501_v43, %v1029_v61 }
 0x18a   :  { %v531_v47 = vpack.c.bf16 %v510_v46, %v509_v44 }
 0x18c   :  { %606 = vmatmul.bf16.gmra.mxu2 %v531_v47 }
 0x1d3   :  { %v592_v49 = vpop.f32.mrf.mxu1 }
 0x1d4   :  { %v593_v50 = vadd.f32 %v742_v48, %v592_v49 }
 0x1d6   :  { %612 = vst [vmem:[%s1073_s7] sm:$0xff] %v593_v50 }
 0x1db   :  { %v594_v51 = vpop.f32.mrf.mxu1 }
 0x1dc   :  { %v595_v52 = vadd.f32 %v742_v48, %v594_v51 }
 0x1de   :  { %613 = vst [vmem:[%s1073_s7 + $0x8] sm:$0xff] %v595_v52 }
 0x1ef   :  { %v597_v45 = vpop.f32.mrf.mxu2 }
 0x1f0   :  { %v598_v53 = vadd.f32 %v742_v48, %v597_v45 }
 0x1f2   :  { %614 = vst [vmem:[%s1073_s7 + $0x10] sm:$0xff] %v598_v53 }
 0x1f7   :  { %v599_v54 = vpop.f32.mrf.mxu2 }
 0x1f8   :  { %v600_v41 = vadd.f32 %v742_v48, %v599_v54 }
 0x1fa   :  { %615 = vst [vmem:[%s1073_s7 + $0x18] sm:$0xff] %v600_v41 }
 0x1ff   :  { %v602_v19 = vpop.f32.mrf.mxu2 }
 0x200   :  { %v603_v55 = vadd.f32 %v742_v48, %v602_v19 }
 0x202   :  { %616 = vst [vmem:[%s1073_s7 + $0x20] sm:$0xff] %v603_v55 }
 0x207   :  { %v604_v56 = vpop.f32.mrf.mxu2 }
 0x208   :  { %v605_v58 = vadd.f32 %v742_v48, %v604_v56 }
 0x20a   :  { %617 = vst [vmem:[%s1073_s7 + $0x28] sm:$0xff] %v605_v58 }
 0x20f   :  { %v607_v59 = vpop.f32.mrf.mxu2 }
 0x210   :  { %v608_v60 = vadd.f32 %v742_v48, %v607_v59 }
 0x212   :  { %618 = vst [vmem:[%s1073_s7 + $0x30] sm:$0xff] %v608_v60 }
 0x217   :  { %v609_v61 = vpop.f32.mrf.mxu2 }
 0x218   :  { %v610_v62 = vadd.f32 %v742_v48, %v609_v61 }
 0x21a   :  { %619 = vst [vmem:[%s1073_s7 + $0x38] sm:$0xff] %v610_v62 }

// kernel: node_movement_corrector_forward.9
= control target key start
LH: loop header
LB: loop body
LE: loop exit
PB: predicated region body
PF: predicated region fallthrough
CT: control target
= control target key end

     0   :  { %s2715_s4 = inlined_call_operand.vmem [shape: bf16[128,128], index: 4, kind: input, shape index: {}]   ;;  %s2716_s1 = inlined_call_operand.vmem [shape: f32[128,128], index: 1, kind: input, shape index: {}]   ;;  %s2717_s5 = inlined_call_operand.vmem [shape: bf16[128,128], index: 5, kind: input, shape index: {}]   ;;  %s2718_s3 = inlined_call_operand.vmem [shape: bf16[128,128], index: 3, kind: input, shape index: {}]   ;;  %s2719_s0 = inlined_call_operand.vmem [shape: f32[128,128], index: 0, kind: input, shape index: {}, may-alias: {0,11}]   ;;  %s2720_s2 = inlined_call_operand.vmem [shape: f32[128,128], index: 2, kind: input, shape index: {}]   ;;  %s2721_s6 = inlined_call_operand.vmem [shape: f32[1,128], index: 6, kind: input, shape index: {}]   ;;  %s2722_s7 = inlined_call_operand.vmem [shape: bf16[128,128], index: 7, kind: input, shape index: {}]   ;;  %s2723_s8 = inlined_call_operand.vmem [shape: f32[1,128], index: 8, kind: input, shape index: {}]   ;;  %s2724_s9 = inlined_call_operand.vmem [shape: bf16[128,128], index: 9, kind: input, shape index: {}]   ;;  %s2725_s10 = inlined_call_operand.vmem [shape: f32[1,128], index: 10, kind: input, shape index: {}]   ;;  %s2726_s11 = inlined_call_operand.vmem [shape: f32[128,128], index: 11, kind: output, shape index: {0}, may-alias: {0,11}]   ;;  %s2727_s12 = inlined_call_operand.vmem [shape: bf16[128,128], index: 12, kind: output, shape index: {1}]  }
   0x1   :  { %v1656_v0 = vld [vmem:[%s2715_s4 + $0x38] sm:$0xff]  ;;  %v1655_v1 = vld [vmem:[%s2715_s4 + $0x30] sm:$0xff]  ;;  %v1654_v2 = vld [vmem:[%s2715_s4 + $0x28] sm:$0xff] }
   0x2   :  { %1728 = vmatpush.bf16.msra.mxu1 %v1656_v0  ;;  %1729 = vmatpush.bf16.msra.mxu2 %v1656_v0  ;;  %v1653_v3 = vld [vmem:[%s2715_s4 + $0x20] sm:$0xff]  ;;  %v1652_v4 = vld [vmem:[%s2715_s4 + $0x18] sm:$0xff]  ;;  %v1651_v5 = vld [vmem:[%s2715_s4 + $0x10] sm:$0xff] }
   0x3   :  { %168 = vmatpush.bf16.msra.mxu0 %v1656_v0  ;;  %1730 = vmatpush.bf16.msra.mxu3 %v1656_v0  ;;  %v1650_v6 = vld [vmem:[%s2715_s4 + $0x8] sm:$0xff]  ;;  %v1649_v7 = vld [vmem:[%s2715_s4] sm:$0xff]  ;;  %v1664_v12 = vld [vmem:[%s2717_s5 + $0x38] sm:$0xff] }
   0x4   :  { %v84_v8 = vld [vmem:[%s2716_s1 + $0x20] sm:$0xff]  ;;  %v85_v9 = vld [vmem:[%s2716_s1 + $0x28] sm:$0xff]  ;;  %v1648_v13 = vld [vmem:[%s2718_s3 + $0x38] sm:$0xff] }
   0x5   :  { %v88_v10 = vld [vmem:[%s2716_s1 + $0x40] sm:$0xff]  ;;  %v89_v11 = vld [vmem:[%s2716_s1 + $0x48] sm:$0xff]  ;;  %v98_v14 = vpack.c.bf16 %v85_v9, %v84_v8  ;;  %v1663_v18 = vld [vmem:[%s2717_s5 + $0x30] sm:$0xff] }
   0x6   :  { %1731 = vmatpush.bf16.msra.mxu1 %v1655_v1  ;;  %1732 = vmatpush.bf16.msra.mxu2 %v1655_v1  ;;  %v100_v15 = vpack.c.bf16 %v89_v11, %v88_v10  ;;  %v80_v16 = vld [vmem:[%s2716_s1] sm:$0xff]  ;;  %v81_v17 = vld [vmem:[%s2716_s1 + $0x8] sm:$0xff]  ;;  %v1647_v19 = vld [vmem:[%s2718_s3 + $0x30] sm:$0xff] }
   0x7   :  { %169 = vmatpush.bf16.msra.mxu0 %v1655_v1  ;;  %1733 = vmatpush.bf16.msra.mxu3 %v1655_v1  ;;  %v96_v20 = vpack.c.bf16 %v81_v17, %v80_v16  ;;  %v1662_v21 = vld [vmem:[%s2717_s5 + $0x28] sm:$0xff]  ;;  %v1661_v23 = vld [vmem:[%s2717_s5 + $0x20] sm:$0xff]  ;;  %v86_v25 = vld [vmem:[%s2716_s1 + $0x30] sm:$0xff] }
   0x8   :  { %v1646_v22 = vld [vmem:[%s2718_s3 + $0x28] sm:$0xff]  ;;  %v1645_v24 = vld [vmem:[%s2718_s3 + $0x20] sm:$0xff]  ;;  %v87_v26 = vld [vmem:[%s2716_s1 + $0x38] sm:$0xff] }
   0x9   :  { %v90_v27 = vld [vmem:[%s2716_s1 + $0x50] sm:$0xff]  ;;  %v91_v28 = vld [vmem:[%s2716_s1 + $0x58] sm:$0xff]  ;;  %v99_v31 = vpack.c.bf16 %v87_v26, %v86_v25  ;;  %v1658_v38 = vld [vmem:[%s2717_s5 + $0x8] sm:$0xff] }
   0xa   :  { %1734 = vmatpush.bf16.msra.mxu1 %v1654_v2  ;;  %1735 = vmatpush.bf16.msra.mxu2 %v1654_v2  ;;  %v1660_v29 = vld [vmem:[%s2717_s5 + $0x18] sm:$0xff]  ;;  %v101_v32 = vpack.c.bf16 %v91_v28, %v90_v27  ;;  %v82_v33 = vld [vmem:[%s2716_s1 + $0x10] sm:$0xff]  ;;  %v1642_v39 = vld [vmem:[%s2718_s3 + $0x8] sm:$0xff] }
   0xb   :  { %170 = vmatpush.bf16.msra.mxu0 %v1654_v2  ;;  %1736 = vmatpush.bf16.msra.mxu3 %v1654_v2  ;;  %v1644_v30 = vld [vmem:[%s2718_s3 + $0x18] sm:$0xff]  ;;  %v1659_v35 = vld [vmem:[%s2717_s5 + $0x10] sm:$0xff]  ;;  %v1657_v40 = vld [vmem:[%s2717_s5] sm:$0xff] }
   0xc   :  { %v83_v34 = vld [vmem:[%s2716_s1 + $0x18] sm:$0xff]  ;;  %v1643_v36 = vld [vmem:[%s2718_s3 + $0x10] sm:$0xff]  ;;  %v1641_v41 = vld [vmem:[%s2718_s3] sm:$0xff] }
   0xd   :  { %v97_v37 = vpack.c.bf16 %v83_v34, %v82_v33  ;;  %v40_v42 = vld [vmem:[%s2719_s0] sm:$0xff]  ;;  %v41_v43 = vld [vmem:[%s2719_s0 + $0x8] sm:$0xff]  ;;  %v42_v48 = vld [vmem:[%s2719_s0 + $0x10] sm:$0xff] }
   0xe   :  { %1737 = vmatpush.bf16.msra.mxu1 %v1653_v3  ;;  %1738 = vmatpush.bf16.msra.mxu2 %v1653_v3  ;;  %v314_v44 = vld [vmem:[%s2720_s2] sm:$0xff]  ;;  %v315_v45 = vld [vmem:[%s2720_s2 + $0x8] sm:$0xff]  ;;  %v56_v46 = vpack.c.bf16 %v41_v43, %v40_v42  ;;  %v43_v49 = vld [vmem:[%s2719_s0 + $0x18] sm:$0xff] }
   0xf   :  { %171 = vmatpush.bf16.msra.mxu0 %v1653_v3  ;;  %1739 = vmatpush.bf16.msra.mxu3 %v1653_v3  ;;  %v330_v47 = vpack.c.bf16 %v315_v45, %v314_v44  ;;  %v316_v50 = vld [vmem:[%s2720_s2 + $0x10] sm:$0xff]  ;;  %v317_v51 = vld [vmem:[%s2720_s2 + $0x18] sm:$0xff]  ;;  %v57_v52 = vpack.c.bf16 %v43_v49, %v42_v48  ;;  %v44_v54 = vld [vmem:[%s2719_s0 + $0x20] sm:$0xff] }
  0x10   :  { %v331_v53 = vpack.c.bf16 %v317_v51, %v316_v50  ;;  %v45_v55 = vld [vmem:[%s2719_s0 + $0x28] sm:$0xff]  ;;  %v318_v56 = vld [vmem:[%s2720_s2 + $0x20] sm:$0xff]  ;;  %v46_v60 = vld [vmem:[%s2719_s0 + $0x30] sm:$0xff] }
  0x11   :  { %v319_v57 = vld [vmem:[%s2720_s2 + $0x28] sm:$0xff]  ;;  %v58_v58 = vpack.c.bf16 %v45_v55, %v44_v54  ;;  %v47_v61 = vld [vmem:[%s2719_s0 + $0x38] sm:$0xff]  ;;  %v320_v62 = vld [vmem:[%s2720_s2 + $0x30] sm:$0xff] }
  0x12   :  { %1740 = vmatpush.bf16.msra.mxu1 %v1652_v4  ;;  %1741 = vmatpush.bf16.msra.mxu2 %v1652_v4  ;;  %v332_v59 = vpack.c.bf16 %v319_v57, %v318_v56  ;;  %v321_v63 = vld [vmem:[%s2720_s2 + $0x38] sm:$0xff]  ;;  %v59_v0 = vpack.c.bf16 %v47_v61, %v46_v60  ;;  %v92_v2 = vld [vmem:[%s2716_s1 + $0x60] sm:$0xff]  ;;  %v93_v3 = vld [vmem:[%s2716_s1 + $0x68] sm:$0xff] }
  0x13   :  { %172 = vmatpush.bf16.msra.mxu0 %v1652_v4  ;;  %1742 = vmatpush.bf16.msra.mxu3 %v1652_v4  ;;  %v333_v1 = vpack.c.bf16 %v321_v63, %v320_v62  ;;  %v102_v4 = vpack.c.bf16 %v93_v3, %v92_v2  ;;  %v323_v8 = vld [vmem:[%s2720_s2 + $0x48] sm:$0xff]  ;;  %v94_v11 = vld [vmem:[%s2716_s1 + $0x70] sm:$0xff]  ;;  %v325_v17 = vld [vmem:[%s2720_s2 + $0x58] sm:$0xff] }
  0x14   :  { %v324_v16 = vld [vmem:[%s2720_s2 + $0x50] sm:$0xff]  ;;  %v1669_v44 = vld [vmem:[%s2722_s7 + $0x20] sm:$0xff]  ;;  %v1666_v55 = vld [vmem:[%s2722_s7 + $0x8] sm:$0xff] }
  0x15   :  { %v2214_v48 = vld [vmem:[%s2721_s6] ss:$0 sm:$0xff]  ;;  %v1667_v50 = vld [vmem:[%s2722_s7 + $0x10] sm:$0xff] }
  0x16   :  { %1743 = vmatpush.bf16.msra.mxu1 %v1651_v5  ;;  %1744 = vmatpush.bf16.msra.mxu2 %v1651_v5 }
  0x17   :  { %173 = vmatpush.bf16.msra.mxu0 %v1651_v5  ;;  %1745 = vmatpush.bf16.msra.mxu3 %v1651_v5  ;;  %v48_v5 = vld [vmem:[%s2719_s0 + $0x40] sm:$0xff] }
  0x1a   :  { %1746 = vmatpush.bf16.msra.mxu1 %v1650_v6  ;;  %1747 = vmatpush.bf16.msra.mxu2 %v1650_v6 }
  0x1b   :  { %174 = vmatpush.bf16.msra.mxu0 %v1650_v6  ;;  %1748 = vmatpush.bf16.msra.mxu3 %v1650_v6  ;;  %v49_v6 = vld [vmem:[%s2719_s0 + $0x48] sm:$0xff] }
  0x1c   :  { %v60_v9 = vpack.c.bf16 %v49_v6, %v48_v5 }
  0x1e   :  { %1749 = vmatpush.bf16.msra.mxu1 %v1649_v7  ;;  %1750 = vmatpush.bf16.msra.mxu2 %v1649_v7 }
  0x1f   :  { %175 = vmatpush.bf16.msra.mxu0 %v1649_v7  ;;  %1751 = vmatpush.bf16.msra.mxu3 %v1649_v7  ;;  %v322_v7 = vld [vmem:[%s2720_s2 + $0x40] sm:$0xff] }
  0x20   :  { %v334_v10 = vpack.c.bf16 %v323_v8, %v322_v7 }
  0x21   :  { %186 = vmatmul.bf16.vlgmr.msra.gmra.mxu1 %v98_v14  ;;  %196 = vmatmul.bf16.vlgmr.msra.gmra.mxu2 %v100_v15  ;;  %v50_v14 = vld [vmem:[%s2719_s0 + $0x50] sm:$0xff]  ;;  %v51_v15 = vld [vmem:[%s2719_s0 + $0x58] sm:$0xff] }
  0x22   :  { %402 = vmatpush.bf16.msrb.mxu2 %v1664_v12  ;;  %265 = vmatpush.bf16.msrb.mxu1 %v1648_v13  ;;  %v95_v12 = vld [vmem:[%s2716_s1 + $0x78] sm:$0xff] }
  0x23   :  { %176 = vmatmul.bf16.vlgmr.msra.gmra.mxu0 %v96_v20  ;;  %206 = vmatmul.bf16.vlgmr.msra.gmra.mxu3 %v102_v4  ;;  %v103_v13 = vpack.c.bf16 %v95_v12, %v94_v11  ;;  %v52_v20 = vld [vmem:[%s2719_s0 + $0x60] sm:$0xff] }
  0x26   :  { %403 = vmatpush.bf16.msrb.mxu2 %v1663_v18  ;;  %266 = vmatpush.bf16.msrb.mxu1 %v1647_v19  ;;  %v61_v18 = vpack.c.bf16 %v51_v15, %v50_v14  ;;  %v335_v19 = vpack.c.bf16 %v325_v17, %v324_v16 }
  0x2a   :  { %404 = vmatpush.bf16.msrb.mxu2 %v1662_v21  ;;  %267 = vmatpush.bf16.msrb.mxu1 %v1646_v22  ;;  %v53_v21 = vld [vmem:[%s2719_s0 + $0x68] sm:$0xff]  ;;  %v326_v22 = vld [vmem:[%s2720_s2 + $0x60] sm:$0xff] }
  0x2e   :  { %405 = vmatpush.bf16.msrb.mxu2 %v1661_v23  ;;  %268 = vmatpush.bf16.msrb.mxu1 %v1645_v24  ;;  %v327_v23 = vld [vmem:[%s2720_s2 + $0x68] sm:$0xff]  ;;  %v62_v24 = vpack.c.bf16 %v53_v21, %v52_v20 }
  0x2f   :  { %v336_v25 = vpack.c.bf16 %v327_v23, %v326_v22 }
  0x31   :  { %191 = vmatmul.bf16.gmra.mxu1 %v99_v31  ;;  %201 = vmatmul.bf16.gmra.mxu2 %v101_v32  ;;  %v328_v31 = vld [vmem:[%s2720_s2 + $0x70] sm:$0xff]  ;;  %v329_v32 = vld [vmem:[%s2720_s2 + $0x78] sm:$0xff] }
  0x32   :  { %406 = vmatpush.bf16.msrb.mxu2 %v1660_v29  ;;  %269 = vmatpush.bf16.msrb.mxu1 %v1644_v30  ;;  %v54_v29 = vld [vmem:[%s2719_s0 + $0x70] sm:$0xff]  ;;  %v55_v30 = vld [vmem:[%s2719_s0 + $0x78] sm:$0xff] }
  0x33   :  { %181 = vmatmul.bf16.gmra.mxu0 %v97_v37  ;;  %211 = vmatmul.bf16.gmra.mxu3 %v103_v13  ;;  %v63_v34 = vpack.c.bf16 %v55_v30, %v54_v29  ;;  %v1672_v37 = vld [vmem:[%s2722_s7 + $0x38] sm:$0xff] }
  0x34   :  { %883 = vmatpush.bf16.msrb.mxu3 %v1672_v37 }
  0x36   :  { %407 = vmatpush.bf16.msrb.mxu2 %v1659_v35  ;;  %270 = vmatpush.bf16.msrb.mxu1 %v1643_v36  ;;  %v337_v35 = vpack.c.bf16 %v329_v32, %v328_v31 }
  0x3a   :  { %408 = vmatpush.bf16.msrb.mxu2 %v1658_v38  ;;  %271 = vmatpush.bf16.msrb.mxu1 %v1642_v39  ;;  %v1671_v39 = vld [vmem:[%s2722_s7 + $0x30] sm:$0xff] }
  0x3b   :  { %884 = vmatpush.bf16.msrb.mxu3 %v1671_v39 }
  0x3e   :  { %409 = vmatpush.bf16.msrb.mxu2 %v1657_v40  ;;  %272 = vmatpush.bf16.msrb.mxu1 %v1641_v41  ;;  %v1670_v41 = vld [vmem:[%s2722_s7 + $0x28] sm:$0xff] }
  0x3f   :  { %885 = vmatpush.bf16.msrb.mxu3 %v1670_v41 }
  0x41   :  { %273 = vmatmul.bf16.vlgmr.msrb.gmra.mxu1 %v56_v46  ;;  %410 = vmatmul.bf16.vlgmr.msrb.gmra.mxu2 %v330_v47  ;;  %v1668_v46 = vld [vmem:[%s2722_s7 + $0x18] sm:$0xff] }
  0x43   :  { %886 = vmatpush.bf16.msrb.mxu3 %v1669_v44 }
  0x47   :  { %887 = vmatpush.bf16.msrb.mxu3 %v1668_v46 }
  0x4b   :  { %888 = vmatpush.bf16.msrb.mxu3 %v1667_v50 }
  0x4f   :  { %889 = vmatpush.bf16.msrb.mxu3 %v1666_v55 }
  0x51   :  { %278 = vmatmul.bf16.gmra.mxu1 %v57_v52  ;;  %415 = vmatmul.bf16.gmra.mxu2 %v331_v53 }
  0x61   :  { %283 = vmatmul.bf16.gmra.mxu1 %v58_v58  ;;  %420 = vmatmul.bf16.gmra.mxu2 %v332_v59  ;;  %v1665_v59 = vld [vmem:[%s2722_s7] sm:$0xff] }
  0x62   :  { %890 = vmatpush.bf16.msrb.mxu3 %v1665_v59 }
  0x71   :  { %288 = vmatmul.bf16.gmra.mxu1 %v59_v0  ;;  %425 = vmatmul.bf16.gmra.mxu2 %v333_v1 }
  0x81   :  { %293 = vmatmul.bf16.gmra.mxu1 %v60_v9  ;;  %430 = vmatmul.bf16.gmra.mxu2 %v334_v10 }
  0x91   :  { %298 = vmatmul.bf16.gmra.mxu1 %v61_v18  ;;  %435 = vmatmul.bf16.gmra.mxu2 %v335_v19 }
  0x9e   :  { %v2168_v26 = vpop.f32.mrf.mxu1 }
  0xa0   :  { %v177_v42 = vpop.f32.mrf.mxu0 }
  0xa1   :  { %303 = vmatmul.bf16.gmra.mxu1 %v62_v24  ;;  %440 = vmatmul.bf16.gmra.mxu2 %v336_v25 }
  0xa4   :  { %v2170_v27 = vpop.f32.mrf.mxu2 }
  0xa6   :  { %v2172_v28 = vpop.f32.mrf.mxu1 }
  0xa8   :  { %v179_v52 = vpop.f32.mrf.mxu0 }
  0xac   :  { %v2186_v33 = vpop.f32.mrf.mxu2 }
  0xae   :  { %v2188_v36 = vpop.f32.mrf.mxu1 }
  0xb0   :  { %v182_v63 = vpop.f32.mrf.mxu0 }
  0xb1   :  { %308 = vmatmul.bf16.gmra.mxu1 %v63_v34  ;;  %445 = vmatmul.bf16.gmra.mxu2 %v337_v35 }
  0xb4   :  { %v2193_v38 = vpop.f32.mrf.mxu2 }
  0xb6   :  { %v2198_v40 = vpop.f32.mrf.mxu1 }
  0xb8   :  { %v184_v12 = vpop.f32.mrf.mxu0 }
  0xbc   :  { %v2203_v43 = vpop.f32.mrf.mxu2 }
  0xbe   :  { %v274_v45 = vpop.f32.mrf.mxu1 }
  0xbf   :  { %v275_v47 = vadd.f32 %v274_v45, %v177_v42 }
  0xc4   :  { %v411_v49 = vpop.f32.mrf.mxu2 }
  0xc5   :  { %v451_v51 = vadd.f32 %v411_v49, %v275_v47 }
  0xc6   :  { %v276_v53 = vpop.f32.mrf.mxu1 }
  0xc7   :  { %v2220_v54 = vadd.f32 %v2214_v48, %v451_v51  ;;  %v277_v57 = vadd.f32 %v276_v53, %v179_v52 }
  0xc9   :  { %v1545_v56 = vmul.f32 -1.442695, %v2220_v54 }
  0xcb   :  { %1755 = vpow2.f32 %v1545_v56 }
  0xcc   :  { %v413_v58 = vpop.f32.mrf.mxu2 }
  0xcd   :  { %v452_v60 = vadd.f32 %v413_v58, %v277_v57 }
  0xce   :  { %v279_v61 = vpop.f32.mrf.mxu1 }
  0xcf   :  { %v2230_v62 = vadd.f32 %v2214_v48, %v452_v60  ;;  %v280_v2 = vadd.f32 %v279_v61, %v182_v63 }
  0xd1   :  { %v1756_v0 = vpop.eup %1755  ;;  %v1546_v1 = vmul.f32 -1.442695, %v2230_v62 }
  0xd2   :  { %v535_v3 = vadd.f32 1.0, %v1756_v0 }
  0xd3   :  { %1757 = vpow2.f32 %v1546_v1 }
  0xd4   :  { %1759 = vrcp.f32 %v535_v3  ;;  %v416_v4 = vpop.f32.mrf.mxu2  ;;  %v562_v31 = vand.u32 2147483648, %v535_v3  ;;  %vm556_vm1 = vweird.f32 %v535_v3  ;;  %v560_v34 = vand.u32 2147483647, %v535_v3 }
  0xd5   :  { %v453_v5 = vadd.f32 %v416_v4, %v280_v2 }
  0xd6   :  { %v281_v6 = vpop.f32.mrf.mxu1  ;;  %v563_v47 = vor.u32 1.1754944e-38, %v562_v31  ;;  %vm561_vm4 = vcmp.eq.f32.partialorder %v560_v34, 8.507059e+37 }
  0xd7   :  { %v2234_v7 = vadd.f32 %v2214_v48, %v453_v5  ;;  %v282_v14 = vadd.f32 %v281_v6, %v184_v12 }
  0xd9   :  { %v1758_v8 = vpop.eup %1757  ;;  %v1547_v9 = vmul.f32 -1.442695, %v2234_v7 }
  0xda   :  { %v1760_v10 = vpop.eup %1759  ;;  %v536_v11 = vadd.f32 1.0, %v1758_v8 }
  0xdb   :  { %v552_v13 = vmul.f32 %v1760_v10, %v535_v3  ;;  %1761 = vpow2.f32 %v1547_v9  ;;  %vm557_vm0 = vweird.f32 %v1760_v10 }
  0xdc   :  { %1763 = vrcp.f32 %v536_v11  ;;  %v418_v15 = vpop.f32.mrf.mxu2  ;;  %vm2245_vm2 = vmor %vm556_vm1, %vm557_vm0  ;;  %v575_v41 = vand.u32 2147483647, %v536_v11  ;;  %v577_v42 = vand.u32 2147483648, %v536_v11  ;;  %vm571_vm5 = vweird.f32 %v536_v11 }
  0xdd   :  { %v553_v16 = vsub.f32 1.0, %v552_v13  ;;  %v454_v17 = vadd.f32 %v418_v15, %v282_v14 }
  0xde   :  { %v284_v18 = vpop.f32.mrf.mxu1  ;;  %vm576_vm7 = vcmp.eq.f32.partialorder %v575_v41, 8.507059e+37  ;;  %v578_v55 = vor.u32 1.1754944e-38, %v577_v42 }
  0xdf   :  { %v554_v19 = vmul.f32 %v1760_v10, %v553_v16  ;;  %v2238_v20 = vadd.f32 %v2214_v48, %v454_v17  ;;  %v285_v30 = vadd.f32 %v284_v18, %v2168_v26 }
  0xe1   :  { %v1762_v21 = vpop.eup %1761  ;;  %v1548_v22 = vmul.f32 -1.442695, %v2238_v20  ;;  %v555_v25 = vadd.f32 %v1760_v10, %v554_v19 }
  0xe2   :  { %v1764_v23 = vpop.eup %1763  ;;  %v2241_v24 = vadd.f32 1.0, %v1762_v21 }
  0xe3   :  { %v567_v29 = vmul.f32 %v1764_v23, %v536_v11  ;;  %1765 = vpow2.f32 %v1548_v22  ;;  %v559_v45 = vsel %vm2245_vm2, %v1760_v10, %v555_v25  ;;  %vm572_vm3 = vweird.f32 %v1764_v23 }
  0xe4   :  { %1767 = vrcp.f32 %v2241_v24  ;;  %v421_v32 = vpop.f32.mrf.mxu2  ;;  %v564_v53 = vsel %vm561_vm4, %v563_v47, %v559_v45  ;;  %vm573_vm6 = vmor %vm571_vm5, %vm572_vm3  ;;  %v592_v13 = vand.u32 2147483648, %v2241_v24  ;;  %vm586_vm9 = vweird.f32 %v2241_v24 }
  0xe5   :  { %v568_v35 = vsub.f32 1.0, %v567_v29  ;;  %v455_v37 = vadd.f32 %v421_v32, %v285_v30  ;;  %v791_v63 = vmul.f32 %v564_v53, %v2220_v54  ;;  %v590_v15 = vand.u32 2147483647, %v2241_v24 }
  0xe6   :  { %v286_v44 = vpop.f32.mrf.mxu1  ;;  %v593_v25 = vor.u32 1.1754944e-38, %v592_v13 }
  0xe7   :  { %v569_v46 = vmul.f32 %v1764_v23, %v568_v35  ;;  %v2252_v26 = vadd.f32 %v2214_v48, %v455_v37  ;;  %v287_v58 = vadd.f32 %v286_v44, %v2172_v28  ;;  %vm591_vm12 = vcmp.eq.f32.partialorder %v590_v15, 8.507059e+37 }
  0xe9   :  { %v1766_v49 = vpop.eup %1765  ;;  %v570_v50 = vadd.f32 %v1764_v23, %v569_v46  ;;  %v1549_v51 = vmul.f32 -1.442695, %v2252_v26 }
  0xea   :  { %v1768_v52 = vpop.eup %1767  ;;  %v538_v56 = vadd.f32 1.0, %v1766_v49 }
  0xeb   :  { %v574_v57 = vsel %vm573_vm6, %v1764_v23, %v570_v50  ;;  %1769 = vpow2.f32 %v1549_v51  ;;  %v582_v59 = vmul.f32 %v1768_v52, %v2241_v24  ;;  %vm587_vm8 = vweird.f32 %v1768_v52 }
  0xec   :  { %v579_v60 = vsel %vm576_vm7, %v578_v55, %v574_v57  ;;  %1771 = vrcp.f32 %v538_v56  ;;  %v423_v61 = vpop.f32.mrf.mxu2  ;;  %vm2270_vm10 = vmor %vm586_vm9, %vm587_vm8  ;;  %v605_v19 = vand.u32 2147483647, %v538_v56  ;;  %vm601_vm13 = vweird.f32 %v538_v56 }
  0xed   :  { %v792_v0 = vmul.f32 %v579_v60, %v2230_v62  ;;  %v456_v1 = vadd.f32 %v423_v61, %v287_v58  ;;  %v583_v2 = vsub.f32 1.0, %v582_v59 }
  0xee   :  { %v289_v3 = vpop.f32.mrf.mxu1  ;;  %vm606_vm15 = vcmp.eq.f32.partialorder %v605_v19, 8.507059e+37 }
  0xef   :  { %v2260_v4 = vadd.f32 %v2214_v48, %v456_v1  ;;  %v824_v5 = vpack.c.bf16 %v792_v0, %v791_v63  ;;  %v584_v6 = vmul.f32 %v1768_v52, %v583_v2  ;;  %v290_v54 = vadd.f32 %v289_v3, %v2188_v36 }
  0xf0   :  { %v607_v36 = vand.u32 2147483648, %v538_v56 }
  0xf1   :  { %v1770_v8 = vpop.eup %1769  ;;  %v1550_v28 = vmul.f32 -1.442695, %v2260_v4  ;;  %891 = vmatmul.bf16.vlgmr.msrb.gmra.mxu3 %v824_v5  ;;  %v585_v62 = vadd.f32 %v1768_v52, %v584_v6 }
  0xf2   :  { %v1772_v9 = vpop.eup %1771  ;;  %v2263_v10 = vadd.f32 1.0, %v1770_v8  ;;  %v608_v35 = vor.u32 1.1754944e-38, %v607_v36 }
  0xf3   :  { %1773 = vpow2.f32 %v1550_v28  ;;  %v597_v11 = vmul.f32 %v1772_v9, %v538_v56  ;;  %v589_v22 = vsel %vm2270_vm10, %v1768_v52, %v585_v62  ;;  %vm602_vm11 = vweird.f32 %v1772_v9 }
  0xf4   :  { %1775 = vrcp.f32 %v2263_v10  ;;  %v426_v12 = vpop.f32.mrf.mxu2  ;;  %v594_v34 = vsel %vm591_vm12, %v593_v25, %v589_v22  ;;  %vm603_vm14 = vmor %vm601_vm13, %vm602_vm11  ;;  %v622_v60 = vand.u32 2147483648, %v2263_v10  ;;  %vm616_vm1 = vweird.f32 %v2263_v10 }
  0xf5   :  { %v457_v14 = vadd.f32 %v426_v12, %v290_v54  ;;  %v598_v16 = vsub.f32 1.0, %v597_v11  ;;  %v793_v46 = vmul.f32 %v594_v34, %v2234_v7  ;;  %v620_v63 = vand.u32 2147483647, %v2263_v10 }
  0xf6   :  { %v291_v17 = vpop.f32.mrf.mxu1  ;;  %v623_v28 = vor.u32 1.1754944e-38, %v622_v60 }
  0xf7   :  { %v2275_v21 = vadd.f32 %v2214_v48, %v457_v14  ;;  %v599_v23 = vmul.f32 %v1772_v9, %v598_v16  ;;  %v292_v37 = vadd.f32 %v291_v17, %v2198_v40  ;;  %vm621_vm4 = vcmp.eq.f32.partialorder %v620_v63, 8.507059e+37  ;;  %v207_v63 = vpop.f32.mrf.mxu3 }
  0xf9   :  { %v1774_v29 = vpop.eup %1773  ;;  %v1551_v24 = vmul.f32 -1.442695, %v2275_v21  ;;  %v600_v30 = vadd.f32 %v1772_v9, %v599_v23 }
  0xfa   :  { %v1776_v31 = vpop.eup %1775  ;;  %v540_v32 = vadd.f32 1.0, %v1774_v29 }
  0xfb   :  { %1777 = vpow2.f32 %v1551_v24  ;;  %v604_v39 = vsel %vm603_vm14, %v1772_v9, %v600_v30  ;;  %v612_v41 = vmul.f32 %v1776_v31, %v2263_v10  ;;  %vm617_vm0 = vweird.f32 %v1776_v31 }
  0xfc   :  { %1779 = vrcp.f32 %v540_v32  ;;  %v428_v42 = vpop.f32.mrf.mxu2  ;;  %v609_v44 = vsel %vm606_vm15, %v608_v35, %v604_v39  ;;  %vm2295_vm2 = vmor %vm616_vm1, %vm617_vm0  ;;  %v635_v3 = vand.u32 2147483647, %v540_v32  ;;  %vm631_vm5 = vweird.f32 %v540_v32 }
  0xfd   :  { %v458_v45 = vadd.f32 %v428_v42, %v292_v37  ;;  %v794_v47 = vmul.f32 %v609_v44, %v2238_v20  ;;  %v613_v49 = vsub.f32 1.0, %v612_v41 }
  0xfe   :  { %v294_v50 = vpop.f32.mrf.mxu1  ;;  %vm636_vm7 = vcmp.eq.f32.partialorder %v635_v3, 8.507059e+37 }
  0xff   :  { %v2285_v51 = vadd.f32 %v2214_v48, %v458_v45  ;;  %v825_v52 = vpack.c.bf16 %v794_v47, %v793_v46  ;;  %v614_v53 = vmul.f32 %v1776_v31, %v613_v49  ;;  %v295_v7 = vadd.f32 %v294_v50, %v2170_v27 }
 0x100   :  { %v637_v27 = vand.u32 2147483648, %v540_v32 }
 0x101   :  { %v1778_v55 = vpop.eup %1777  ;;  %v1552_v40 = vmul.f32 -1.442695, %v2285_v51  ;;  %896 = vmatmul.bf16.gmra.mxu3 %v825_v52  ;;  %v615_v58 = vadd.f32 %v1776_v31, %v614_v53 }
 0x102   :  { %v1780_v56 = vpop.eup %1779  ;;  %v2288_v57 = vadd.f32 1.0, %v1778_v55  ;;  %v638_v13 = vor.u32 1.1754944e-38, %v637_v27 }
 0x103   :  { %1781 = vpow2.f32 %v1552_v40  ;;  %v627_v20 = vmul.f32 %v1780_v56, %v540_v32  ;;  %v619_v6 = vsel %vm2295_vm2, %v1776_v31, %v615_v58  ;;  %vm632_vm3 = vweird.f32 %v1780_v56 }
 0x104   :  { %1783 = vrcp.f32 %v2288_v57  ;;  %v431_v59 = vpop.f32.mrf.mxu2  ;;  %v624_v12 = vsel %vm621_vm4, %v623_v28, %v619_v6  ;;  %vm633_vm6 = vmor %vm631_vm5, %vm632_vm3  ;;  %v652_v39 = vand.u32 2147483648, %v2288_v57  ;;  %vm646_vm9 = vweird.f32 %v2288_v57 }
 0x105   :  { %v459_v61 = vadd.f32 %v431_v59, %v295_v7  ;;  %v628_v0 = vsub.f32 1.0, %v627_v20  ;;  %v795_v36 = vmul.f32 %v624_v12, %v2252_v26  ;;  %v650_v42 = vand.u32 2147483647, %v2288_v57 }
 0x106   :  { %v296_v1 = vpop.f32.mrf.mxu1  ;;  %v653_v53 = vor.u32 1.1754944e-38, %v652_v39 }
 0x107   :  { %v2300_v5 = vadd.f32 %v2214_v48, %v459_v61  ;;  %v629_v8 = vmul.f32 %v1780_v56, %v628_v0  ;;  %v297_v14 = vadd.f32 %v296_v1, %v2186_v33  ;;  %vm651_vm12 = vcmp.eq.f32.partialorder %v650_v42, 8.507059e+37 }
 0x109   :  { %v1782_v9 = vpop.eup %1781  ;;  %v1553_v10 = vmul.f32 -1.442695, %v2300_v5  ;;  %v630_v54 = vadd.f32 %v1780_v56, %v629_v8 }
 0x10a   :  { %v1784_v62 = vpop.eup %1783  ;;  %v542_v11 = vadd.f32 1.0, %v1782_v9 }
 0x10b   :  { %1785 = vpow2.f32 %v1553_v10  ;;  %v634_v15 = vsel %vm633_vm6, %v1780_v56, %v630_v54  ;;  %v642_v16 = vmul.f32 %v1784_v62, %v2288_v57  ;;  %vm647_vm8 = vweird.f32 %v1784_v62 }
 0x10c   :  { %1787 = vrcp.f32 %v542_v11  ;;  %v433_v17 = vpop.f32.mrf.mxu2  ;;  %v639_v18 = vsel %vm636_vm7, %v638_v13, %v634_v15  ;;  %vm2320_vm10 = vmor %vm646_vm9, %vm647_vm8  ;;  %v665_v47 = vand.u32 2147483647, %v542_v11  ;;  %vm661_vm13 = vweird.f32 %v542_v11 }
 0x10d   :  { %v460_v19 = vadd.f32 %v433_v17, %v297_v14  ;;  %v796_v22 = vmul.f32 %v639_v18, %v2260_v4  ;;  %v643_v23 = vsub.f32 1.0, %v642_v16  ;;  %v209_v18 = vpop.f32.mrf.mxu3 }
 0x10e   :  { %v299_v25 = vpop.f32.mrf.mxu1  ;;  %vm666_vm15 = vcmp.eq.f32.partialorder %v665_v47, 8.507059e+37 }
 0x10f   :  { %v2310_v29 = vadd.f32 %v2214_v48, %v460_v19  ;;  %v826_v24 = vpack.c.bf16 %v796_v22, %v795_v36  ;;  %v644_v30 = vmul.f32 %v1784_v62, %v643_v23  ;;  %v300_v26 = vadd.f32 %v299_v25, %v2193_v38 }
 0x110   :  { %v667_v38 = vand.u32 2147483648, %v542_v11 }
 0x111   :  { %v1786_v31 = vpop.eup %1785  ;;  %v1554_v33 = vmul.f32 -1.442695, %v2310_v29  ;;  %901 = vmatmul.bf16.gmra.mxu3 %v826_v24  ;;  %v645_v35 = vadd.f32 %v1784_v62, %v644_v30 }
 0x112   :  { %v1788_v32 = vpop.eup %1787  ;;  %v2313_v34 = vadd.f32 1.0, %v1786_v31  ;;  %v668_v20 = vor.u32 1.1754944e-38, %v667_v38 }
 0x113   :  { %1789 = vpow2.f32 %v1554_v33  ;;  %v657_v4 = vmul.f32 %v1788_v32, %v542_v11  ;;  %v649_v50 = vsel %vm2320_vm10, %v1784_v62, %v645_v35  ;;  %vm662_vm11 = vweird.f32 %v1788_v32 }
 0x114   :  { %1791 = vrcp.f32 %v2313_v34  ;;  %v436_v37 = vpop.f32.mrf.mxu2  ;;  %v654_v58 = vsel %vm651_vm12, %v653_v53, %v649_v50  ;;  %vm663_vm14 = vmor %vm661_vm13, %vm662_vm11  ;;  %v682_v14 = vand.u32 2147483648, %v2313_v34  ;;  %vm676_vm1 = vweird.f32 %v2313_v34 }
 0x115   :  { %v461_v41 = vadd.f32 %v436_v37, %v300_v26  ;;  %v658_v44 = vsub.f32 1.0, %v657_v4  ;;  %v797_v3 = vmul.f32 %v654_v58, %v2275_v21  ;;  %v680_v16 = vand.u32 2147483647, %v2313_v34 }
 0x116   :  { %v301_v45 = vpop.f32.mrf.mxu1  ;;  %v683_v31 = vor.u32 1.1754944e-38, %v682_v14 }
 0x117   :  { %v2325_v49 = vadd.f32 %v2214_v48, %v461_v41  ;;  %v659_v52 = vmul.f32 %v1788_v32, %v658_v44  ;;  %v302_v59 = vadd.f32 %v301_v45, %v2203_v43  ;;  %vm681_vm4 = vcmp.eq.f32.partialorder %v680_v16, 8.507059e+37 }
 0x119   :  { %v1790_v55 = vpop.eup %1789  ;;  %v1555_v40 = vmul.f32 -1.442695, %v2325_v49  ;;  %v660_v56 = vadd.f32 %v1788_v32, %v659_v52 }
 0x11a   :  { %v1792_v57 = vpop.eup %1791  ;;  %v544_v7 = vadd.f32 1.0, %v1790_v55 }
 0x11b   :  { %1793 = vpow2.f32 %v1555_v40  ;;  %v664_v60 = vsel %vm663_vm14, %v1788_v32, %v660_v56  ;;  %v672_v61 = vmul.f32 %v1792_v57, %v2313_v34  ;;  %vm677_vm0 = vweird.f32 %v1792_v57  ;;  %v212_v56 = vpop.f32.mrf.mxu3 }
 0x11c   :  { %1795 = vrcp.f32 %v544_v7  ;;  %v438_v0 = vpop.f32.mrf.mxu2  ;;  %v669_v1 = vsel %vm666_vm15, %v668_v20, %v664_v60  ;;  %vm2344_vm2 = vmor %vm676_vm1, %vm677_vm0  ;;  %v695_v22 = vand.u32 2147483647, %v544_v7  ;;  %v697_v23 = vand.u32 2147483648, %v544_v7 }
 0x11d   :  { %v462_v2 = vadd.f32 %v438_v0, %v302_v59  ;;  %v798_v27 = vmul.f32 %v669_v1, %v2285_v51  ;;  %v673_v6 = vsub.f32 1.0, %v672_v61  ;;  %vm691_vm5 = vweird.f32 %v544_v7 }
 0x11e   :  { %v304_v8 = vpop.f32.mrf.mxu1  ;;  %vm696_vm7 = vcmp.eq.f32.partialorder %v695_v22, 8.507059e+37  ;;  %v698_v37 = vor.u32 1.1754944e-38, %v697_v23 }
 0x11f   :  { %v2335_v28 = vadd.f32 %v2214_v48, %v462_v2  ;;  %v827_v9 = vpack.c.bf16 %v798_v27, %v797_v3  ;;  %v674_v10 = vmul.f32 %v1792_v57, %v673_v6  ;;  %v305_v62 = vadd.f32 %v304_v8, %v207_v63 }
 0x121   :  { %v1794_v43 = vpop.eup %1793  ;;  %v1556_v54 = vmul.f32 -1.442695, %v2335_v28  ;;  %906 = vmatmul.bf16.gmra.mxu3 %v827_v9  ;;  %v675_v13 = vadd.f32 %v1792_v57, %v674_v10 }
 0x122   :  { %v1796_v11 = vpop.eup %1795  ;;  %v2338_v12 = vadd.f32 1.0, %v1794_v43 }
 0x123   :  { %1797 = vpow2.f32 %v1556_v54  ;;  %v687_v21 = vmul.f32 %v1796_v11, %v544_v7  ;;  %v679_v24 = vsel %vm2344_vm2, %v1792_v57, %v675_v13  ;;  %vm692_vm3 = vweird.f32 %v1796_v11 }
 0x124   :  { %1799 = vrcp.f32 %v2338_v12  ;;  %v441_v51 = vpop.f32.mrf.mxu2  ;;  %v684_v4 = vsel %vm681_vm4, %v683_v31, %v679_v24  ;;  %vm693_vm6 = vmor %vm691_vm5, %vm692_vm3  ;;  %v712_v61 = vand.u32 2147483648, %v2338_v12  ;;  %vm706_vm9 = vweird.f32 %v2338_v12 }
 0x125   :  { %v463_v15 = vadd.f32 %v441_v51, %v305_v62  ;;  %v688_v17 = vsub.f32 1.0, %v687_v21  ;;  %v799_v47 = vmul.f32 %v684_v4, %v2300_v5  ;;  %v710_v0 = vand.u32 2147483647, %v2338_v12  ;;  %v214_v21 = vpop.f32.mrf.mxu3 }
 0x126   :  { %v306_v19 = vpop.f32.mrf.mxu1  ;;  %v713_v43 = vor.u32 1.1754944e-38, %v712_v61 }
 0x127   :  { %v2349_v25 = vadd.f32 %v2214_v48, %v463_v15  ;;  %v689_v30 = vmul.f32 %v1796_v11, %v688_v17  ;;  %v307_v39 = vadd.f32 %v306_v19, %v209_v18  ;;  %vm711_vm12 = vcmp.eq.f32.partialorder %v710_v0, 8.507059e+37 }
 0x129   :  { %v1798_v33 = vpop.eup %1797  ;;  %v1557_v32 = vmul.f32 -1.442695, %v2349_v25  ;;  %v690_v34 = vadd.f32 %v1796_v11, %v689_v30 }
 0x12a   :  { %v1800_v26 = vpop.eup %1799  ;;  %v546_v35 = vadd.f32 1.0, %v1798_v33 }
 0x12b   :  { %1801 = vpow2.f32 %v1557_v32  ;;  %v694_v41 = vsel %vm693_vm6, %v1796_v11, %v690_v34  ;;  %v702_v42 = vmul.f32 %v1800_v26, %v2338_v12  ;;  %vm707_vm8 = vweird.f32 %v1800_v26 }
 0x12c   :  { %1803 = vrcp.f32 %v546_v35  ;;  %v443_v44 = vpop.f32.mrf.mxu2  ;;  %v699_v45 = vsel %vm696_vm7, %v698_v37, %v694_v41  ;;  %vm2367_vm10 = vmor %vm706_vm9, %vm707_vm8  ;;  %v725_v3 = vand.u32 2147483647, %v546_v35  ;;  %v727_v27 = vand.u32 2147483648, %v546_v35 }
 0x12d   :  { %v464_v46 = vadd.f32 %v443_v44, %v307_v39  ;;  %v800_v38 = vmul.f32 %v699_v45, %v2310_v29  ;;  %v703_v50 = vsub.f32 1.0, %v702_v42  ;;  %vm721_vm13 = vweird.f32 %v546_v35 }
 0x12e   :  { %v309_v52 = vpop.f32.mrf.mxu1  ;;  %vm726_vm15 = vcmp.eq.f32.partialorder %v725_v3, 8.507059e+37  ;;  %v728_v14 = vor.u32 1.1754944e-38, %v727_v27 }
 0x12f   :  { %v2358_v53 = vadd.f32 %v2214_v48, %v464_v46  ;;  %v828_v55 = vpack.c.bf16 %v800_v38, %v799_v47  ;;  %v704_v40 = vmul.f32 %v1800_v26, %v703_v50  ;;  %v310_v58 = vadd.f32 %v309_v52, %v212_v56 }
 0x131   :  { %v1802_v57 = vpop.eup %1801  ;;  %v1558_v7 = vmul.f32 -1.442695, %v2358_v53  ;;  %911 = vmatmul.bf16.gmra.mxu3 %v828_v55  ;;  %v705_v5 = vadd.f32 %v1800_v26, %v704_v40 }
 0x132   :  { %v1804_v20 = vpop.eup %1803  ;;  %v2361_v59 = vadd.f32 1.0, %v1802_v57 }
 0x133   :  { %1805 = vpow2.f32 %v1558_v7  ;;  %v717_v29 = vmul.f32 %v1804_v20, %v546_v35  ;;  %v709_v8 = vsel %vm2367_vm10, %v1800_v26, %v705_v5  ;;  %vm722_vm11 = vweird.f32 %v1804_v20 }
 0x134   :  { %1807 = vrcp.f32 %v2361_v59  ;;  %v446_v60 = vpop.f32.mrf.mxu2  ;;  %v714_v51 = vsel %vm711_vm12, %v713_v43, %v709_v8  ;;  %vm723_vm14 = vmor %vm721_vm13, %vm722_vm11  ;;  %vm736_vm1 = vweird.f32 %v2361_v59 }
 0x135   :  { %v465_v63 = vadd.f32 %v446_v60, %v310_v58  ;;  %v718_v1 = vsub.f32 1.0, %v717_v29  ;;  %v801_v22 = vmul.f32 %v714_v51, %v2325_v49  ;;  %v742_v49 = vand.u32 2147483648, %v2361_v59  ;;  %v1678_v51 = vld [vmem:[%s2724_s9 + $0x28] sm:$0xff] }
 0x136   :  { %v311_v10 = vpop.f32.mrf.mxu1 }
 0x137   :  { %v2372_v6 = vadd.f32 %v2214_v48, %v465_v63  ;;  %v719_v9 = vmul.f32 %v1804_v20, %v718_v1  ;;  %v312_v15 = vadd.f32 %v311_v10, %v214_v21  ;;  %v743_v45 = vor.u32 1.1754944e-38, %v742_v49  ;;  %v1679_v21 = vld [vmem:[%s2724_s9 + $0x30] sm:$0xff] }
 0x139   :  { %v1806_v54 = vpop.eup %1805  ;;  %v1559_v62 = vmul.f32 -1.442695, %v2372_v6  ;;  %v720_v11 = vadd.f32 %v1804_v20, %v719_v9 }
 0x13a   :  { %v1808_v12 = vpop.eup %1807  ;;  %v548_v13 = vadd.f32 1.0, %v1806_v54 }
 0x13b   :  { %1809 = vpow2.f32 %v1559_v62  ;;  %v724_v16 = vsel %vm723_vm14, %v1804_v20, %v720_v11  ;;  %v732_v17 = vmul.f32 %v1808_v12, %v2361_v59  ;;  %vm737_vm0 = vweird.f32 %v1808_v12 }
 0x13c   :  { %1811 = vrcp.f32 %v548_v13  ;;  %v448_v18 = vpop.f32.mrf.mxu2  ;;  %v729_v19 = vsel %vm726_vm15, %v728_v14, %v724_v16  ;;  %vm738_vm2 = vmor %vm736_vm1, %vm737_vm0  ;;  %v757_v39 = vand.u32 2147483648, %v548_v13  ;;  %v755_v44 = vand.u32 2147483647, %v548_v13  ;;  %v1676_v14 = vld [vmem:[%s2724_s9 + $0x18] sm:$0xff] }
 0x13d   :  { %v466_v36 = vadd.f32 %v448_v18, %v312_v15  ;;  %v802_v23 = vmul.f32 %v729_v19, %v2335_v28  ;;  %v733_v24 = vsub.f32 1.0, %v732_v17  ;;  %vm751_vm5 = vweird.f32 %v548_v13  ;;  %v2409_v15 = vld [vmem:[%s2723_s8] ss:$0 sm:$0xff]  ;;  %v1675_v17 = vld [vmem:[%s2724_s9 + $0x10] sm:$0xff] }
 0x13e   :  { %v758_v55 = vor.u32 1.1754944e-38, %v757_v39  ;;  %vm756_vm7 = vcmp.eq.f32.partialorder %v755_v44, 8.507059e+37 }
 0x13f   :  { %v2381_v30 = vadd.f32 %v2214_v48, %v466_v36  ;;  %v829_v31 = vpack.c.bf16 %v802_v23, %v801_v22  ;;  %v734_v33 = vmul.f32 %v1808_v12, %v733_v24  ;;  %v740_v48 = vand.u32 2147483647, %v2361_v59  ;;  %v1674_v36 = vld [vmem:[%s2724_s9 + $0x8] sm:$0xff]  ;;  %v1673_v23 = vld [vmem:[%s2724_s9] sm:$0xff] }
 0x141   :  { %v1810_v32 = vpop.eup %1809  ;;  %v1560_v34 = vmul.f32 -1.442695, %v2381_v30  ;;  %916 = vmatmul.bf16.gmra.mxu3 %v829_v31  ;;  %v735_v4 = vadd.f32 %v1808_v12, %v734_v33  ;;  %vm741_vm4 = vcmp.eq.f32.partialorder %v740_v48, 8.507059e+37 }
 0x142   :  { %v1812_v26 = vpop.eup %1811  ;;  %v549_v35 = vadd.f32 1.0, %v1810_v32 }
 0x143   :  { %1813 = vpow2.f32 %v1560_v34  ;;  %v747_v37 = vmul.f32 %v1812_v26, %v548_v13  ;;  %v739_v41 = vsel %vm738_vm2, %v1808_v12, %v735_v4  ;;  %vm752_vm3 = vweird.f32 %v1812_v26  ;;  %v1680_v13 = vld [vmem:[%s2724_s9 + $0x38] sm:$0xff] }
 0x144   :  { %1815 = vrcp.f32 %v549_v35  ;;  %v744_v52 = vsel %vm741_vm4, %v743_v45, %v739_v41  ;;  %vm753_vm6 = vmor %vm751_vm5, %vm752_vm3  ;;  %v772_v63 = vand.u32 2147483648, %v549_v35  ;;  %vm766_vm9 = vweird.f32 %v549_v35  ;;  %1328 = vmatpush.bf16.msrb.mxu0 %v1680_v13 }
 0x145   :  { %v748_v28 = vsub.f32 1.0, %v747_v37  ;;  %v803_v7 = vmul.f32 %v744_v52, %v2349_v25  ;;  %v770_v0 = vand.u32 2147483647, %v549_v35 }
 0x146   :  { %v773_v8 = vor.u32 1.1754944e-38, %v772_v63 }
 0x147   :  { %v749_v42 = vmul.f32 %v1812_v26, %v748_v28  ;;  %vm771_vm12 = vcmp.eq.f32.partialorder %v770_v0, 8.507059e+37 }
 0x148   :  { %1329 = vmatpush.bf16.msrb.mxu0 %v1679_v21 }
 0x149   :  { %v1814_v46 = vpop.eup %1813  ;;  %v750_v47 = vadd.f32 %v1812_v26, %v749_v42 }
 0x14a   :  { %v1816_v38 = vpop.eup %1815  ;;  %v550_v50 = vadd.f32 1.0, %v1814_v46 }
 0x14b   :  { %v754_v40 = vsel %vm753_vm6, %v1812_v26, %v750_v47  ;;  %v762_v56 = vmul.f32 %v1816_v38, %v549_v35  ;;  %vm767_vm8 = vweird.f32 %v1816_v38 }
 0x14c   :  { %1817 = vrcp.f32 %v550_v50  ;;  %v759_v57 = vsel %vm756_vm7, %v758_v55, %v754_v40  ;;  %vm768_vm10 = vmor %vm766_vm9, %vm767_vm8  ;;  %v787_v2 = vand.u32 2147483648, %v550_v50  ;;  %v785_v25 = vand.u32 2147483647, %v550_v50  ;;  %1330 = vmatpush.bf16.msrb.mxu0 %v1678_v51 }
 0x14d   :  { %v804_v58 = vmul.f32 %v759_v57, %v2358_v53  ;;  %v763_v20 = vsub.f32 1.0, %v762_v56  ;;  %vm781_vm13 = vweird.f32 %v550_v50 }
 0x14e   :  { %v788_v10 = vor.u32 1.1754944e-38, %v787_v2  ;;  %vm786_vm15 = vcmp.eq.f32.partialorder %v785_v25, 8.507059e+37 }
 0x14f   :  { %v830_v59 = vpack.c.bf16 %v804_v58, %v803_v7  ;;  %v764_v5 = vmul.f32 %v1816_v38, %v763_v20 }
 0x151   :  { %921 = vmatmul.bf16.gmra.mxu3 %v830_v59  ;;  %v765_v60 = vadd.f32 %v1816_v38, %v764_v5 }
 0x152   :  { %v1818_v29 = vpop.eup %1817 }
 0x153   :  { %v777_v61 = vmul.f32 %v1818_v29, %v550_v50  ;;  %v769_v3 = vsel %vm768_vm10, %v1816_v38, %v765_v60  ;;  %vm782_vm11 = vweird.f32 %v1818_v29 }
 0x154   :  { %v774_v9 = vsel %vm771_vm12, %v773_v8, %v769_v3  ;;  %vm783_vm14 = vmor %vm781_vm13, %vm782_vm11 }
 0x155   :  { %v778_v1 = vsub.f32 1.0, %v777_v61  ;;  %v805_v62 = vmul.f32 %v774_v9, %v2372_v6  ;;  %v1677_v6 = vld [vmem:[%s2724_s9 + $0x20] sm:$0xff] }
 0x156   :  { %1331 = vmatpush.bf16.msrb.mxu0 %v1677_v6 }
 0x157   :  { %v779_v27 = vmul.f32 %v1818_v29, %v778_v1 }
 0x159   :  { %v780_v53 = vadd.f32 %v1818_v29, %v779_v27 }
 0x15a   :  { %1332 = vmatpush.bf16.msrb.mxu0 %v1676_v14 }
 0x15b   :  { %v784_v43 = vsel %vm783_vm14, %v1818_v29, %v780_v53 }
 0x15c   :  { %v789_v54 = vsel %vm786_vm15, %v788_v10, %v784_v43 }
 0x15d   :  { %v806_v11 = vmul.f32 %v789_v54, %v2381_v30 }
 0x15e   :  { %1333 = vmatpush.bf16.msrb.mxu0 %v1675_v17 }
 0x15f   :  { %v831_v12 = vpack.c.bf16 %v806_v11, %v805_v62 }
 0x161   :  { %926 = vmatmul.bf16.gmra.mxu3 %v831_v12 }
 0x162   :  { %1334 = vmatpush.bf16.msrb.mxu0 %v1674_v36 }
 0x166   :  { %1335 = vmatpush.bf16.msrb.mxu0 %v1673_v23 }
 0x174   :  { %v892_v16 = vpop.f32.mrf.mxu3 }
 0x175   :  { %v2415_v18 = vadd.f32 %v2409_v15, %v892_v16 }
 0x177   :  { %v1593_v19 = vmul.f32 -1.442695, %v2415_v18 }
 0x179   :  { %1819 = vpow2.f32 %v1593_v19 }
 0x17c   :  { %v894_v22 = vpop.f32.mrf.mxu3 }
 0x17d   :  { %v895_v24 = vadd.f32 %v2409_v15, %v894_v22 }
 0x17f   :  { %v1820_v30 = vpop.eup %1819  ;;  %v1594_v31 = vmul.f32 -1.442695, %v895_v24 }
 0x180   :  { %v980_v33 = vadd.f32 1.0, %v1820_v30 }
 0x181   :  { %1821 = vpow2.f32 %v1594_v31 }
 0x182   :  { %1823 = vrcp.f32 %v980_v33  ;;  %v1007_v50 = vand.u32 2147483648, %v980_v33  ;;  %vm1001_vm1 = vweird.f32 %v980_v33  ;;  %v1005_v52 = vand.u32 2147483647, %v980_v33 }
 0x184   :  { %v897_v32 = vpop.f32.mrf.mxu3  ;;  %v1008_v5 = vor.u32 1.1754944e-38, %v1007_v50  ;;  %vm1006_vm4 = vcmp.eq.f32.partialorder %v1005_v52, 8.507059e+37 }
 0x185   :  { %v2426_v34 = vadd.f32 %v2409_v15, %v897_v32 }
 0x187   :  { %v1822_v26 = vpop.eup %1821  ;;  %v1595_v35 = vmul.f32 -1.442695, %v2426_v34 }
 0x188   :  { %v1824_v4 = vpop.eup %1823  ;;  %v981_v37 = vadd.f32 1.0, %v1822_v26 }
 0x189   :  { %v997_v49 = vmul.f32 %v1824_v4, %v980_v33  ;;  %1825 = vpow2.f32 %v1595_v35  ;;  %vm1002_vm0 = vweird.f32 %v1824_v4 }
 0x18a   :  { %1827 = vrcp.f32 %v981_v37  ;;  %vm2436_vm2 = vmor %vm1001_vm1, %vm1002_vm0  ;;  %v1020_v56 = vand.u32 2147483647, %v981_v37  ;;  %v1022_v57 = vand.u32 2147483648, %v981_v37  ;;  %vm1016_vm5 = vweird.f32 %v981_v37 }
 0x18b   :  { %v998_v48 = vsub.f32 1.0, %v997_v49 }
 0x18c   :  { %v899_v28 = vpop.f32.mrf.mxu3  ;;  %v1023_v1 = vor.u32 1.1754944e-38, %v1022_v57  ;;  %vm1021_vm7 = vcmp.eq.f32.partialorder %v1020_v56, 8.507059e+37 }
 0x18d   :  { %v999_v39 = vmul.f32 %v1824_v4, %v998_v48  ;;  %v2430_v41 = vadd.f32 %v2409_v15, %v899_v28 }
 0x18f   :  { %v1826_v42 = vpop.eup %1825  ;;  %v1596_v44 = vmul.f32 -1.442695, %v2430_v41  ;;  %v1000_v47 = vadd.f32 %v1824_v4, %v999_v39 }
 0x190   :  { %v1828_v45 = vpop.eup %1827  ;;  %v2433_v46 = vadd.f32 1.0, %v1826_v42 }
 0x191   :  { %v1012_v38 = vmul.f32 %v1828_v45, %v981_v37  ;;  %1829 = vpow2.f32 %v1596_v44  ;;  %v1004_v58 = vsel %vm2436_vm2, %v1824_v4, %v1000_v47  ;;  %vm1017_vm3 = vweird.f32 %v1828_v45 }
 0x192   :  { %1831 = vrcp.f32 %v2433_v46  ;;  %v1009_v0 = vsel %vm1006_vm4, %v1008_v5, %v1004_v58  ;;  %vm1018_vm6 = vmor %vm1016_vm5, %vm1017_vm3  ;;  %v1037_v14 = vand.u32 2147483648, %v2433_v46  ;;  %vm1031_vm9 = vweird.f32 %v2433_v46 }
 0x193   :  { %v1013_v55 = vsub.f32 1.0, %v1012_v38  ;;  %v1236_v8 = vmul.f32 %v1009_v0, %v2415_v18  ;;  %v1035_v16 = vand.u32 2147483647, %v2433_v46 }
 0x194   :  { %v902_v7 = vpop.f32.mrf.mxu3  ;;  %v1038_v31 = vor.u32 1.1754944e-38, %v1037_v14 }
 0x195   :  { %v1014_v20 = vmul.f32 %v1828_v45, %v1013_v55  ;;  %v2443_v59 = vadd.f32 %v2409_v15, %v902_v7  ;;  %vm1036_vm12 = vcmp.eq.f32.partialorder %v1035_v16, 8.507059e+37 }
 0x197   :  { %v1830_v29 = vpop.eup %1829  ;;  %v1015_v60 = vadd.f32 %v1828_v45, %v1014_v20  ;;  %v1597_v61 = vmul.f32 -1.442695, %v2443_v59 }
 0x198   :  { %v1832_v63 = vpop.eup %1831  ;;  %v983_v2 = vadd.f32 1.0, %v1830_v29 }
 0x199   :  { %v1019_v3 = vsel %vm1018_vm6, %v1828_v45, %v1015_v60  ;;  %v1027_v27 = vmul.f32 %v1832_v63, %v2433_v46  ;;  %1833 = vpow2.f32 %v1597_v61  ;;  %vm1032_vm8 = vweird.f32 %v1832_v63 }
 0x19a   :  { %v1024_v25 = vsel %vm1021_vm7, %v1023_v1, %v1019_v3  ;;  %1835 = vrcp.f32 %v983_v2  ;;  %vm2458_vm10 = vmor %vm1031_vm9, %vm1032_vm8  ;;  %v1050_v19 = vand.u32 2147483647, %v983_v2  ;;  %v1052_v36 = vand.u32 2147483648, %v983_v2 }
 0x19b   :  { %v1237_v53 = vmul.f32 %v1024_v25, %v895_v24  ;;  %v1028_v9 = vsub.f32 1.0, %v1027_v27  ;;  %vm1046_vm13 = vweird.f32 %v983_v2 }
 0x19c   :  { %v904_v10 = vpop.f32.mrf.mxu3  ;;  %v1053_v37 = vor.u32 1.1754944e-38, %v1052_v36  ;;  %vm1051_vm15 = vcmp.eq.f32.partialorder %v1050_v19, 8.507059e+37 }
 0x19d   :  { %v1029_v43 = vmul.f32 %v1832_v63, %v1028_v9  ;;  %v2449_v54 = vadd.f32 %v2409_v15, %v904_v10  ;;  %v1269_v62 = vpack.c.bf16 %v1237_v53, %v1236_v8 }
 0x19f   :  { %v1834_v11 = vpop.eup %1833  ;;  %v1598_v12 = vmul.f32 -1.442695, %v2449_v54  ;;  %1336 = vmatmul.bf16.vlgmr.msrb.gmra.mxu0 %v1269_v62  ;;  %v1030_v51 = vadd.f32 %v1832_v63, %v1029_v43 }
 0x1a0   :  { %v1836_v13 = vpop.eup %1835  ;;  %v2452_v21 = vadd.f32 1.0, %v1834_v11 }
 0x1a1   :  { %v1042_v6 = vmul.f32 %v1836_v13, %v983_v2  ;;  %1837 = vpow2.f32 %v1598_v12  ;;  %v1034_v23 = vsel %vm2458_vm10, %v1832_v63, %v1030_v51  ;;  %vm1047_vm11 = vweird.f32 %v1836_v13 }
 0x1a2   :  { %1839 = vrcp.f32 %v2452_v21  ;;  %v1039_v4 = vsel %vm1036_vm12, %v1038_v31, %v1034_v23  ;;  %vm1048_vm14 = vmor %vm1046_vm13, %vm1047_vm11  ;;  %vm1061_vm1 = vweird.f32 %v2452_v21 }
 0x1a3   :  { %v1043_v17 = vsub.f32 1.0, %v1042_v6  ;;  %v1238_v42 = vmul.f32 %v1039_v4, %v2426_v34  ;;  %v1067_v34 = vand.u32 2147483648, %v2452_v21 }
 0x1a4   :  { %v907_v22 = vpop.f32.mrf.mxu3 }
 0x1a5   :  { %v1044_v24 = vmul.f32 %v1836_v13, %v1043_v17  ;;  %v2465_v30 = vadd.f32 %v2409_v15, %v907_v22  ;;  %v1068_v1 = vor.u32 1.1754944e-38, %v1067_v34 }
 0x1a7   :  { %v1838_v33 = vpop.eup %1837  ;;  %v1045_v32 = vadd.f32 %v1836_v13, %v1044_v24  ;;  %v1599_v26 = vmul.f32 -1.442695, %v2465_v30 }
 0x1a8   :  { %v1840_v35 = vpop.eup %1839  ;;  %v985_v49 = vadd.f32 1.0, %v1838_v33 }
 0x1a9   :  { %v1049_v48 = vsel %vm1048_vm14, %v1836_v13, %v1045_v32  ;;  %v1057_v28 = vmul.f32 %v1840_v35, %v2452_v21  ;;  %1841 = vpow2.f32 %v1599_v26  ;;  %vm1062_vm0 = vweird.f32 %v1840_v35 }
 0x1aa   :  { %v1054_v39 = vsel %vm1051_vm15, %v1053_v37, %v1049_v48  ;;  %1843 = vrcp.f32 %v985_v49  ;;  %vm2481_vm2 = vmor %vm1061_vm1, %vm1062_vm0  ;;  %v1080_v5 = vand.u32 2147483647, %v985_v49  ;;  %v1082_v29 = vand.u32 2147483648, %v985_v49 }
 0x1ab   :  { %v1239_v44 = vmul.f32 %v1054_v39, %v2430_v41  ;;  %v1058_v45 = vsub.f32 1.0, %v1057_v28  ;;  %v1065_v41 = vand.u32 2147483647, %v2452_v21  ;;  %vm1076_vm5 = vweird.f32 %v985_v49 }
 0x1ac   :  { %v909_v46 = vpop.f32.mrf.mxu3  ;;  %v1083_v53 = vor.u32 1.1754944e-38, %v1082_v29  ;;  %vm1081_vm7 = vcmp.eq.f32.partialorder %v1080_v5, 8.507059e+37 }
 0x1ad   :  { %v1059_v47 = vmul.f32 %v1840_v35, %v1058_v45  ;;  %v2472_v38 = vadd.f32 %v2409_v15, %v909_v46  ;;  %v1270_v50 = vpack.c.bf16 %v1239_v44, %v1238_v42  ;;  %vm1066_vm4 = vcmp.eq.f32.partialorder %v1065_v41, 8.507059e+37 }
 0x1af   :  { %v1842_v52 = vpop.eup %1841  ;;  %v1600_v55 = vmul.f32 -1.442695, %v2472_v38  ;;  %1341 = vmatmul.bf16.gmra.mxu0 %v1270_v50  ;;  %v1060_v57 = vadd.f32 %v1840_v35, %v1059_v47 }
 0x1b0   :  { %v1844_v40 = vpop.eup %1843  ;;  %v2475_v56 = vadd.f32 1.0, %v1842_v52 }
 0x1b1   :  { %v1072_v7 = vmul.f32 %v1844_v40, %v985_v49  ;;  %1845 = vpow2.f32 %v1600_v55  ;;  %v1064_v61 = vsel %vm2481_vm2, %v1840_v35, %v1060_v57  ;;  %vm1077_vm3 = vweird.f32 %v1844_v40 }
 0x1b2   :  { %1847 = vrcp.f32 %v2475_v56  ;;  %v1069_v8 = vsel %vm1066_vm4, %v1068_v1, %v1064_v61  ;;  %vm1078_vm6 = vmor %vm1076_vm5, %vm1077_vm3  ;;  %vm1091_vm9 = vweird.f32 %v2475_v56 }
 0x1b3   :  { %v1073_v58 = vsub.f32 1.0, %v1072_v7  ;;  %v1240_v11 = vmul.f32 %v1069_v8, %v2443_v59  ;;  %v1097_v59 = vand.u32 2147483648, %v2475_v56 }
 0x1b4   :  { %v912_v60 = vpop.f32.mrf.mxu3 }
 0x1b5   :  { %v1074_v63 = vmul.f32 %v1844_v40, %v1073_v58  ;;  %v2488_v0 = vadd.f32 %v2409_v15, %v912_v60  ;;  %v1098_v37 = vor.u32 1.1754944e-38, %v1097_v59 }
 0x1b7   :  { %v1846_v2 = vpop.eup %1845  ;;  %v1075_v3 = vadd.f32 %v1844_v40, %v1074_v63  ;;  %v1601_v27 = vmul.f32 -1.442695, %v2488_v0 }
 0x1b8   :  { %v1848_v25 = vpop.eup %1847  ;;  %v987_v9 = vadd.f32 1.0, %v1846_v2 }
 0x1b9   :  { %v1079_v10 = vsel %vm1078_vm6, %v1844_v40, %v1075_v3  ;;  %v1087_v43 = vmul.f32 %v1848_v25, %v2475_v56  ;;  %1849 = vpow2.f32 %v1601_v27  ;;  %vm1092_vm8 = vweird.f32 %v1848_v25 }
 0x1ba   :  { %v1084_v62 = vsel %vm1081_vm7, %v1083_v53, %v1079_v10  ;;  %1851 = vrcp.f32 %v987_v9  ;;  %vm2504_vm10 = vmor %vm1091_vm9, %vm1092_vm8  ;;  %v1110_v31 = vand.u32 2147483647, %v987_v9  ;;  %v1112_v33 = vand.u32 2147483648, %v987_v9 }
 0x1bb   :  { %v1241_v12 = vmul.f32 %v1084_v62, %v2449_v54  ;;  %v1088_v13 = vsub.f32 1.0, %v1087_v43  ;;  %v1095_v54 = vand.u32 2147483647, %v2475_v56  ;;  %vm1106_vm13 = vweird.f32 %v987_v9 }
 0x1bc   :  { %v914_v21 = vpop.f32.mrf.mxu3  ;;  %v1113_v44 = vor.u32 1.1754944e-38, %v1112_v33  ;;  %vm1111_vm15 = vcmp.eq.f32.partialorder %v1110_v31, 8.507059e+37 }
 0x1bd   :  { %v1089_v51 = vmul.f32 %v1848_v25, %v1088_v13  ;;  %v2495_v6 = vadd.f32 %v2409_v15, %v914_v21  ;;  %v1271_v14 = vpack.c.bf16 %v1241_v12, %v1240_v11  ;;  %vm1096_vm12 = vcmp.eq.f32.partialorder %v1095_v54, 8.507059e+37 }
 0x1bf   :  { %v1850_v16 = vpop.eup %1849  ;;  %v1602_v17 = vmul.f32 -1.442695, %v2495_v6  ;;  %1346 = vmatmul.bf16.gmra.mxu0 %v1271_v14  ;;  %v1090_v36 = vadd.f32 %v1848_v25, %v1089_v51 }
 0x1c0   :  { %v1852_v18 = vpop.eup %1851  ;;  %v2498_v19 = vadd.f32 1.0, %v1850_v16 }
 0x1c1   :  { %v1102_v22 = vmul.f32 %v1852_v18, %v987_v9  ;;  %1853 = vpow2.f32 %v1602_v17  ;;  %v1094_v26 = vsel %vm2504_vm10, %v1848_v25, %v1090_v36  ;;  %vm1107_vm11 = vweird.f32 %v1852_v18 }
 0x1c2   :  { %1855 = vrcp.f32 %v2498_v19  ;;  %v1099_v42 = vsel %vm1096_vm12, %v1098_v37, %v1094_v26  ;;  %vm1108_vm14 = vmor %vm1106_vm13, %vm1107_vm11  ;;  %vm1121_vm1 = vweird.f32 %v2498_v19 }
 0x1c3   :  { %v1103_v23 = vsub.f32 1.0, %v1102_v22  ;;  %v1242_v52 = vmul.f32 %v1099_v42, %v2465_v30  ;;  %v1127_v30 = vand.u32 2147483648, %v2498_v19 }
 0x1c4   :  { %v917_v32 = vpop.f32.mrf.mxu3 }
 0x1c5   :  { %v1104_v35 = vmul.f32 %v1852_v18, %v1103_v23  ;;  %v2511_v4 = vadd.f32 %v2409_v15, %v917_v32  ;;  %v1128_v53 = vor.u32 1.1754944e-38, %v1127_v30 }
 0x1c7   :  { %v1854_v49 = vpop.eup %1853  ;;  %v1105_v48 = vadd.f32 %v1852_v18, %v1104_v35  ;;  %v1603_v28 = vmul.f32 -1.442695, %v2511_v4 }
 0x1c8   :  { %v1856_v39 = vpop.eup %1855  ;;  %v989_v45 = vadd.f32 1.0, %v1854_v49 }
 0x1c9   :  { %v1109_v46 = vsel %vm1108_vm14, %v1852_v18, %v1105_v48  ;;  %v1117_v47 = vmul.f32 %v1856_v39, %v2498_v19  ;;  %1857 = vpow2.f32 %v1603_v28  ;;  %vm1122_vm0 = vweird.f32 %v1856_v39 }
 0x1ca   :  { %v1114_v50 = vsel %vm1111_vm15, %v1113_v44, %v1109_v46  ;;  %1859 = vrcp.f32 %v989_v45  ;;  %vm2527_vm2 = vmor %vm1121_vm1, %vm1122_vm0  ;;  %v1140_v1 = vand.u32 2147483647, %v989_v45  ;;  %v1142_v2 = vand.u32 2147483648, %v989_v45 }
 0x1cb   :  { %v1243_v55 = vmul.f32 %v1114_v50, %v2472_v38  ;;  %v1118_v40 = vsub.f32 1.0, %v1117_v47  ;;  %v1125_v38 = vand.u32 2147483647, %v2498_v19  ;;  %vm1136_vm5 = vweird.f32 %v989_v45 }
 0x1cc   :  { %v919_v56 = vpop.f32.mrf.mxu3  ;;  %v1143_v12 = vor.u32 1.1754944e-38, %v1142_v2  ;;  %vm1141_vm7 = vcmp.eq.f32.partialorder %v1140_v1, 8.507059e+37 }
 0x1cd   :  { %v1119_v57 = vmul.f32 %v1856_v39, %v1118_v40  ;;  %v2518_v7 = vadd.f32 %v2409_v15, %v919_v56  ;;  %v1272_v34 = vpack.c.bf16 %v1243_v55, %v1242_v52  ;;  %vm1126_vm4 = vcmp.eq.f32.partialorder %v1125_v38, 8.507059e+37 }
 0x1cf   :  { %v1858_v41 = vpop.eup %1857  ;;  %v1604_v58 = vmul.f32 -1.442695, %v2518_v7  ;;  %1351 = vmatmul.bf16.gmra.mxu0 %v1272_v34  ;;  %v1120_v29 = vadd.f32 %v1856_v39, %v1119_v57 }
 0x1d0   :  { %v1860_v20 = vpop.eup %1859  ;;  %v2521_v5 = vadd.f32 1.0, %v1858_v41 }
 0x1d1   :  { %v1132_v60 = vmul.f32 %v1860_v20, %v989_v45  ;;  %1861 = vpow2.f32 %v1604_v58  ;;  %v1124_v27 = vsel %vm2527_vm2, %v1856_v39, %v1120_v29  ;;  %vm1137_vm3 = vweird.f32 %v1860_v20 }
 0x1d2   :  { %1863 = vrcp.f32 %v2521_v5  ;;  %v1129_v11 = vsel %vm1126_vm4, %v1128_v53, %v1124_v27  ;;  %vm1138_vm6 = vmor %vm1136_vm5, %vm1137_vm3  ;;  %vm1151_vm9 = vweird.f32 %v2521_v5 }
 0x1d3   :  { %v1133_v61 = vsub.f32 1.0, %v1132_v60  ;;  %v1244_v16 = vmul.f32 %v1129_v11, %v2488_v0  ;;  %v1157_v0 = vand.u32 2147483648, %v2521_v5 }
 0x1d4   :  { %v922_v3 = vpop.f32.mrf.mxu3 }
 0x1d5   :  { %v1134_v25 = vmul.f32 %v1860_v20, %v1133_v61  ;;  %v2534_v8 = vadd.f32 %v2409_v15, %v922_v3  ;;  %v1158_v44 = vor.u32 1.1754944e-38, %v1157_v0 }
 0x1d7   :  { %v1862_v9 = vpop.eup %1861  ;;  %v1135_v10 = vadd.f32 %v1860_v20, %v1134_v25  ;;  %v1605_v43 = vmul.f32 -1.442695, %v2534_v8 }
 0x1d8   :  { %v1864_v62 = vpop.eup %1863  ;;  %v991_v13 = vadd.f32 1.0, %v1862_v9 }
 0x1d9   :  { %v1139_v21 = vsel %vm1138_vm6, %v1860_v20, %v1135_v10  ;;  %v1147_v51 = vmul.f32 %v1864_v62, %v2521_v5  ;;  %1865 = vpow2.f32 %v1605_v43  ;;  %vm1152_vm8 = vweird.f32 %v1864_v62 }
 0x1da   :  { %v1144_v14 = vsel %vm1141_vm7, %v1143_v12, %v1139_v21  ;;  %1867 = vrcp.f32 %v991_v13  ;;  %vm2550_vm10 = vmor %vm1151_vm9, %vm1152_vm8  ;;  %v1170_v37 = vand.u32 2147483647, %v991_v13  ;;  %v1172_v49 = vand.u32 2147483648, %v991_v13 }
 0x1db   :  { %v1245_v17 = vmul.f32 %v1144_v14, %v2495_v6  ;;  %v1148_v18 = vsub.f32 1.0, %v1147_v51  ;;  %v1155_v6 = vand.u32 2147483647, %v2521_v5  ;;  %vm1166_vm13 = vweird.f32 %v991_v13 }
 0x1dc   :  { %v924_v19 = vpop.f32.mrf.mxu3  ;;  %v1173_v55 = vor.u32 1.1754944e-38, %v1172_v49  ;;  %vm1171_vm15 = vcmp.eq.f32.partialorder %v1170_v37, 8.507059e+37 }
 0x1dd   :  { %v1149_v36 = vmul.f32 %v1864_v62, %v1148_v18  ;;  %v2541_v22 = vadd.f32 %v2409_v15, %v924_v19  ;;  %v1273_v59 = vpack.c.bf16 %v1245_v17, %v1244_v16  ;;  %vm1156_vm12 = vcmp.eq.f32.partialorder %v1155_v6, 8.507059e+37 }
 0x1df   :  { %v1866_v54 = vpop.eup %1865  ;;  %v1606_v23 = vmul.f32 -1.442695, %v2541_v22  ;;  %1356 = vmatmul.bf16.gmra.mxu0 %v1273_v59  ;;  %v1150_v33 = vadd.f32 %v1864_v62, %v1149_v36 }
 0x1e0   :  { %v1868_v24 = vpop.eup %1867  ;;  %v2544_v31 = vadd.f32 1.0, %v1866_v54 }
 0x1e1   :  { %v1162_v32 = vmul.f32 %v1868_v24, %v991_v13  ;;  %1869 = vpow2.f32 %v1606_v23  ;;  %v1154_v28 = vsel %vm2550_vm10, %v1864_v62, %v1150_v33  ;;  %vm1167_vm11 = vweird.f32 %v1868_v24 }
 0x1e2   :  { %1871 = vrcp.f32 %v2544_v31  ;;  %v1159_v52 = vsel %vm1156_vm12, %v1158_v44, %v1154_v28  ;;  %vm1168_vm14 = vmor %vm1166_vm13, %vm1167_vm11  ;;  %vm1181_vm1 = vweird.f32 %v2544_v31 }
 0x1e3   :  { %v1163_v26 = vsub.f32 1.0, %v1162_v32  ;;  %v1246_v41 = vmul.f32 %v1159_v52, %v2511_v4  ;;  %v1187_v4 = vand.u32 2147483648, %v2544_v31  ;;  %v1883_v52 = vld [vmem:[%s2719_s0] sm:$0xff] }
 0x1e4   :  { %v927_v48 = vpop.f32.mrf.mxu3 }
 0x1e5   :  { %v1164_v39 = vmul.f32 %v1868_v24, %v1163_v26  ;;  %v2557_v42 = vadd.f32 %v2409_v15, %v927_v48  ;;  %v1188_v10 = vor.u32 1.1754944e-38, %v1187_v4 }
 0x1e7   :  { %v1870_v45 = vpop.eup %1869  ;;  %v1165_v46 = vadd.f32 %v1868_v24, %v1164_v39  ;;  %v1607_v47 = vmul.f32 -1.442695, %v2557_v42 }
 0x1e8   :  { %v1872_v50 = vpop.eup %1871  ;;  %v993_v40 = vadd.f32 1.0, %v1870_v45 }
 0x1e9   :  { %v1169_v56 = vsel %vm1168_vm14, %v1868_v24, %v1165_v46  ;;  %v1177_v57 = vmul.f32 %v1872_v50, %v2544_v31  ;;  %1873 = vpow2.f32 %v1607_v47  ;;  %vm1182_vm0 = vweird.f32 %v1872_v50  ;;  %v2577_v46 = vld [vmem:[%s2725_s10] ss:$0 sm:$0xff] }
 0x1ea   :  { %v1174_v34 = vsel %vm1171_vm15, %v1173_v55, %v1169_v56  ;;  %1875 = vrcp.f32 %v993_v40  ;;  %vm1183_vm2 = vmor %vm1181_vm1, %vm1182_vm0  ;;  %v1202_v27 = vand.u32 2147483648, %v993_v40  ;;  %v1200_v9 = vand.u32 2147483647, %v993_v40 }
 0x1eb   :  { %v1247_v58 = vmul.f32 %v1174_v34, %v2518_v7  ;;  %v1178_v20 = vsub.f32 1.0, %v1177_v57  ;;  %v1185_v7 = vand.u32 2147483647, %v2544_v31  ;;  %vm1196_vm5 = vweird.f32 %v993_v40 }
 0x1ec   :  { %v929_v5 = vpop.f32.mrf.mxu3  ;;  %v1203_v13 = vor.u32 1.1754944e-38, %v1202_v27  ;;  %vm1201_vm7 = vcmp.eq.f32.partialorder %v1200_v9, 8.507059e+37 }
 0x1ed   :  { %v1179_v29 = vmul.f32 %v1872_v50, %v1178_v20  ;;  %v2564_v60 = vadd.f32 %v2409_v15, %v929_v5  ;;  %v1274_v30 = vpack.c.bf16 %v1247_v58, %v1246_v41  ;;  %vm1186_vm4 = vcmp.eq.f32.partialorder %v1185_v7, 8.507059e+37 }
 0x1ef   :  { %v1874_v38 = vpop.eup %1873  ;;  %v1608_v61 = vmul.f32 -1.442695, %v2564_v60  ;;  %1361 = vmatmul.bf16.gmra.mxu0 %v1274_v30  ;;  %v1180_v2 = vadd.f32 %v1872_v50, %v1179_v29 }
 0x1f0   :  { %v1876_v63 = vpop.eup %1875  ;;  %v994_v1 = vadd.f32 1.0, %v1874_v38 }
 0x1f1   :  { %v1192_v3 = vmul.f32 %v1876_v63, %v993_v40  ;;  %1877 = vpow2.f32 %v1608_v61  ;;  %v1184_v25 = vsel %vm1183_vm2, %v1872_v50, %v1180_v2  ;;  %vm1197_vm3 = vweird.f32 %v1876_v63 }
 0x1f2   :  { %1879 = vrcp.f32 %v994_v1  ;;  %v1189_v12 = vsel %vm1186_vm4, %v1188_v10, %v1184_v25  ;;  %vm1198_vm6 = vmor %vm1196_vm5, %vm1197_vm3  ;;  %v1217_v31 = vand.u32 2147483648, %v994_v1  ;;  %vm1211_vm9 = vweird.f32 %v994_v1 }
 0x1f3   :  { %v1193_v15 = vsub.f32 1.0, %v1192_v3  ;;  %v1248_v17 = vmul.f32 %v1189_v12, %v2534_v8  ;;  %v1215_v33 = vand.u32 2147483647, %v994_v1 }
 0x1f4   :  { %v1218_v35 = vor.u32 1.1754944e-38, %v1217_v31 }
 0x1f5   :  { %v1194_v53 = vmul.f32 %v1876_v63, %v1193_v15  ;;  %vm1216_vm12 = vcmp.eq.f32.partialorder %v1215_v33, 8.507059e+37 }
 0x1f7   :  { %v1878_v43 = vpop.eup %1877  ;;  %v1195_v62 = vadd.f32 %v1876_v63, %v1194_v53 }
 0x1f8   :  { %v1880_v11 = vpop.eup %1879  ;;  %v995_v21 = vadd.f32 1.0, %v1878_v43 }
 0x1f9   :  { %v1199_v51 = vsel %vm1198_vm6, %v1876_v63, %v1195_v62  ;;  %v1207_v14 = vmul.f32 %v1880_v11, %v994_v1  ;;  %vm1212_vm8 = vweird.f32 %v1880_v11 }
 0x1fa   :  { %v1204_v16 = vsel %vm1201_vm7, %v1203_v13, %v1199_v51  ;;  %1881 = vrcp.f32 %v995_v21  ;;  %vm1213_vm10 = vmor %vm1211_vm9, %vm1212_vm8  ;;  %v1232_v0 = vand.u32 2147483648, %v995_v21  ;;  %v1230_v8 = vand.u32 2147483647, %v995_v21 }
 0x1fb   :  { %v1249_v18 = vmul.f32 %v1204_v16, %v2541_v22  ;;  %v1208_v19 = vsub.f32 1.0, %v1207_v14  ;;  %vm1226_vm13 = vweird.f32 %v995_v21 }
 0x1fc   :  { %v1233_v49 = vor.u32 1.1754944e-38, %v1232_v0  ;;  %vm1231_vm15 = vcmp.eq.f32.partialorder %v1230_v8, 8.507059e+37 }
 0x1fd   :  { %v1209_v36 = vmul.f32 %v1880_v11, %v1208_v19  ;;  %v1275_v59 = vpack.c.bf16 %v1249_v18, %v1248_v17 }
 0x1ff   :  { %1366 = vmatmul.bf16.gmra.mxu0 %v1275_v59  ;;  %v1210_v23 = vadd.f32 %v1880_v11, %v1209_v36 }
 0x200   :  { %v1882_v54 = vpop.eup %1881 }
 0x201   :  { %v1222_v24 = vmul.f32 %v1882_v54, %v995_v21  ;;  %v1214_v6 = vsel %vm1213_vm10, %v1880_v11, %v1210_v23  ;;  %vm1227_vm11 = vweird.f32 %v1882_v54 }
 0x202   :  { %v1219_v37 = vsel %vm1216_vm12, %v1218_v35, %v1214_v6  ;;  %vm1228_vm14 = vmor %vm1226_vm13, %vm1227_vm11 }
 0x203   :  { %v1223_v32 = vsub.f32 1.0, %v1222_v24  ;;  %v1250_v39 = vmul.f32 %v1219_v37, %v2557_v42 }
 0x205   :  { %v1224_v26 = vmul.f32 %v1882_v54, %v1223_v32 }
 0x207   :  { %v1225_v22 = vadd.f32 %v1882_v54, %v1224_v26 }
 0x209   :  { %v1229_v48 = vsel %vm1228_vm14, %v1882_v54, %v1225_v22 }
 0x20a   :  { %v1234_v28 = vsel %vm1231_vm15, %v1233_v49, %v1229_v48 }
 0x20b   :  { %v1251_v44 = vmul.f32 %v1234_v28, %v2564_v60 }
 0x20d   :  { %v1276_v45 = vpack.c.bf16 %v1251_v44, %v1250_v39 }
 0x20f   :  { %1371 = vmatmul.bf16.gmra.mxu0 %v1276_v45 }
 0x21c   :  { %v1337_v47 = vpop.f32.mrf.mxu0 }
 0x21d   :  { %v1338_v50 = vadd.f32 %v2577_v46, %v1337_v47 }
 0x21f   :  { %v1377_v55 = vadd.f32 %v1883_v52, %v1338_v50 }
 0x221   :  { %1393 = vst [vmem:[%s2726_s11] sm:$0xff] %v1377_v55 }
 0x224   :  { %v1339_v42 = vpop.f32.mrf.mxu0 }
 0x225   :  { %v1340_v40 = vadd.f32 %v2577_v46, %v1339_v42 }
 0x227   :  { %v1684_v34 = vpack.c.bf16 %v1340_v40, %v1338_v50 }
 0x228   :  { %v1884_v56 = vld [vmem:[%s2719_s0 + $0x8] sm:$0xff] }
 0x229   :  { %v1378_v57 = vadd.f32 %v1884_v56, %v1340_v40  ;;  %1685 = vst [vmem:[%s2727_s12] sm:$0xff] %v1684_v34  }
 0x22b   :  { %1394 = vst [vmem:[%s2726_s11 + $0x8] sm:$0xff] %v1378_v57 }
 0x22c   :  { %v1342_v41 = vpop.f32.mrf.mxu0 }
 0x22d   :  { %v1343_v58 = vadd.f32 %v2577_v46, %v1342_v41 }
 0x232   :  { %v1885_v20 = vld [vmem:[%s2719_s0 + $0x10] sm:$0xff] }
 0x233   :  { %v1379_v5 = vadd.f32 %v1885_v20, %v1343_v58 }
 0x234   :  { %v1344_v29 = vpop.f32.mrf.mxu0 }
 0x235   :  { %1395 = vst [vmem:[%s2726_s11 + $0x10] sm:$0xff] %v1379_v5  ;;  %v1345_v60 = vadd.f32 %v2577_v46, %v1344_v29 }
 0x237   :  { %v1689_v61 = vpack.c.bf16 %v1345_v60, %v1343_v58 }
 0x239   :  { %1721 = vst [vmem:[%s2727_s12 + $0x8] sm:$0xff] %v1689_v61  }
 0x23c   :  { %v1886_v30 = vld [vmem:[%s2719_s0 + $0x18] sm:$0xff]  ;;  %v1347_v63 = vpop.f32.mrf.mxu0 }
 0x23d   :  { %v1380_v38 = vadd.f32 %v1886_v30, %v1345_v60  ;;  %v1348_v1 = vadd.f32 %v2577_v46, %v1347_v63 }
 0x23f   :  { %1396 = vst [vmem:[%s2726_s11 + $0x18] sm:$0xff] %v1380_v38 }
 0x244   :  { %v1349_v4 = vpop.f32.mrf.mxu0 }
 0x245   :  { %v1350_v7 = vadd.f32 %v2577_v46, %v1349_v4 }
 0x246   :  { %v1887_v2 = vld [vmem:[%s2719_s0 + $0x20] sm:$0xff] }
 0x247   :  { %v1381_v3 = vadd.f32 %v1887_v2, %v1348_v1  ;;  %v1694_v25 = vpack.c.bf16 %v1350_v7, %v1348_v1 }
 0x249   :  { %1397 = vst [vmem:[%s2726_s11 + $0x20] sm:$0xff] %v1381_v3 }
 0x24a   :  { %1722 = vst [vmem:[%s2727_s12 + $0x10] sm:$0xff] %v1694_v25  }
 0x24c   :  { %v1352_v53 = vpop.f32.mrf.mxu0 }
 0x24d   :  { %v1353_v9 = vadd.f32 %v2577_v46, %v1352_v53 }
 0x250   :  { %v1888_v15 = vld [vmem:[%s2719_s0 + $0x28] sm:$0xff] }
 0x251   :  { %v1382_v27 = vadd.f32 %v1888_v15, %v1350_v7 }
 0x253   :  { %1398 = vst [vmem:[%s2726_s11 + $0x28] sm:$0xff] %v1382_v27 }
 0x254   :  { %v1354_v62 = vpop.f32.mrf.mxu0 }
 0x255   :  { %v1355_v11 = vadd.f32 %v2577_v46, %v1354_v62 }
 0x257   :  { %v1699_v21 = vpack.c.bf16 %v1355_v11, %v1353_v9 }
 0x259   :  { %1723 = vst [vmem:[%s2727_s12 + $0x18] sm:$0xff] %v1699_v21  }
 0x25a   :  { %v1889_v10 = vld [vmem:[%s2719_s0 + $0x30] sm:$0xff] }
 0x25b   :  { %v1383_v43 = vadd.f32 %v1889_v10, %v1353_v9 }
 0x25c   :  { %v1357_v51 = vpop.f32.mrf.mxu0 }
 0x25d   :  { %1399 = vst [vmem:[%s2726_s11 + $0x30] sm:$0xff] %v1383_v43  ;;  %v1358_v14 = vadd.f32 %v2577_v46, %v1357_v51 }
 0x264   :  { %v1890_v12 = vld [vmem:[%s2719_s0 + $0x38] sm:$0xff]  ;;  %v1359_v18 = vpop.f32.mrf.mxu0 }
 0x265   :  { %v1384_v13 = vadd.f32 %v1890_v12, %v1355_v11  ;;  %v1360_v19 = vadd.f32 %v2577_v46, %v1359_v18 }
 0x267   :  { %1400 = vst [vmem:[%s2726_s11 + $0x38] sm:$0xff] %v1384_v13  ;;  %v1704_v54 = vpack.c.bf16 %v1360_v19, %v1358_v14 }
 0x269   :  { %1724 = vst [vmem:[%s2727_s12 + $0x20] sm:$0xff] %v1704_v54  }
 0x26c   :  { %v1362_v23 = vpop.f32.mrf.mxu0 }
 0x26d   :  { %v1363_v24 = vadd.f32 %v2577_v46, %v1362_v23 }
 0x26e   :  { %v1891_v16 = vld [vmem:[%s2719_s0 + $0x40] sm:$0xff] }
 0x26f   :  { %v1385_v17 = vadd.f32 %v1891_v16, %v1358_v14 }
 0x271   :  { %1401 = vst [vmem:[%s2726_s11 + $0x40] sm:$0xff] %v1385_v17 }
 0x274   :  { %v1364_v32 = vpop.f32.mrf.mxu0 }
 0x275   :  { %v1365_v0 = vadd.f32 %v2577_v46, %v1364_v32 }
 0x277   :  { %v1709_v8 = vpack.c.bf16 %v1365_v0, %v1363_v24 }
 0x278   :  { %v1892_v36 = vld [vmem:[%s2719_s0 + $0x48] sm:$0xff] }
 0x279   :  { %v1386_v59 = vadd.f32 %v1892_v36, %v1360_v19  ;;  %1725 = vst [vmem:[%s2727_s12 + $0x28] sm:$0xff] %v1709_v8  }
 0x27b   :  { %1402 = vst [vmem:[%s2726_s11 + $0x48] sm:$0xff] %v1386_v59 }
 0x27c   :  { %v1367_v35 = vpop.f32.mrf.mxu0 }
 0x27d   :  { %v1368_v22 = vadd.f32 %v2577_v46, %v1367_v35 }
 0x282   :  { %v1893_v31 = vld [vmem:[%s2719_s0 + $0x50] sm:$0xff] }
 0x283   :  { %v1387_v33 = vadd.f32 %v1893_v31, %v1363_v24 }
 0x284   :  { %v1369_v48 = vpop.f32.mrf.mxu0 }
 0x285   :  { %1403 = vst [vmem:[%s2726_s11 + $0x50] sm:$0xff] %v1387_v33  ;;  %v1370_v28 = vadd.f32 %v2577_v46, %v1369_v48 }
 0x287   :  { %v1714_v45 = vpack.c.bf16 %v1370_v28, %v1368_v22 }
 0x289   :  { %1726 = vst [vmem:[%s2727_s12 + $0x30] sm:$0xff] %v1714_v45  }
 0x28c   :  { %v1894_v6 = vld [vmem:[%s2719_s0 + $0x58] sm:$0xff]  ;;  %v1372_v47 = vpop.f32.mrf.mxu0 }
 0x28d   :  { %v1388_v26 = vadd.f32 %v1894_v6, %v1365_v0  ;;  %v1373_v50 = vadd.f32 %v2577_v46, %v1372_v47 }
 0x28f   :  { %1404 = vst [vmem:[%s2726_s11 + $0x58] sm:$0xff] %v1388_v26 }
 0x294   :  { %v1374_v42 = vpop.f32.mrf.mxu0 }
 0x295   :  { %v1375_v40 = vadd.f32 %v2577_v46, %v1374_v42 }
 0x296   :  { %v1895_v37 = vld [vmem:[%s2719_s0 + $0x60] sm:$0xff] }
 0x297   :  { %v1389_v49 = vadd.f32 %v1895_v37, %v1368_v22  ;;  %v1719_v34 = vpack.c.bf16 %v1375_v40, %v1373_v50 }
 0x299   :  { %1405 = vst [vmem:[%s2726_s11 + $0x60] sm:$0xff] %v1389_v49 }
 0x29a   :  { %1727 = vst [vmem:[%s2727_s12 + $0x38] sm:$0xff] %v1719_v34  }
 0x2a0   :  { %v1896_v39 = vld [vmem:[%s2719_s0 + $0x68] sm:$0xff] }
 0x2a1   :  { %v1390_v44 = vadd.f32 %v1896_v39, %v1370_v28 }
 0x2a3   :  { %1406 = vst [vmem:[%s2726_s11 + $0x68] sm:$0xff] %v1390_v44 }
 0x2aa   :  { %v1897_v52 = vld [vmem:[%s2719_s0 + $0x70] sm:$0xff] }
 0x2ab   :  { %v1391_v55 = vadd.f32 %v1897_v52, %v1373_v50 }
 0x2ad   :  { %1407 = vst [vmem:[%s2726_s11 + $0x70] sm:$0xff] %v1391_v55 }
 0x2b4   :  { %v1898_v56 = vld [vmem:[%s2719_s0 + $0x78] sm:$0xff] }
 0x2b5   :  { %v1392_v57 = vadd.f32 %v1898_v56, %v1375_v40 }
 0x2b7   :  { %1408 = vst [vmem:[%s2726_s11 + $0x78] sm:$0xff] %v1392_v57 }

// kernel: node_movement_corrector_forward.10
= control target key start
LH: loop header
LB: loop body
LE: loop exit
PB: predicated region body
PF: predicated region fallthrough
CT: control target
= control target key end

     0   :  { %vm1365_vm0 = vmmov 1   ;;  %v49_v44 = vlaneseq  ;;  %s1826_s0 = inlined_call_operand.vmem [shape: bf16[128,128], index: 0, kind: input, shape index: {}]   ;;  %s1827_s1 = inlined_call_operand.vmem [shape: s32[1,128], index: 1, kind: input, shape index: {}]   ;;  %s1828_s3 = inlined_call_operand.vmem [shape: bf16[128,128], index: 3, kind: input, shape index: {}]   ;;  %s1829_s4 = inlined_call_operand.vmem [shape: bf16[128,128], index: 4, kind: input, shape index: {}]   ;;  %s1830_s2 = inlined_call_operand.vmem [shape: f32[64,128], index: 2, kind: input, shape index: {}, may-alias: {2,10}]   ;;  %s1831_s5 = inlined_call_operand.vmem [shape: f32[1,128], index: 5, kind: input, shape index: {}]   ;;  %s1832_s7 = inlined_call_operand.vmem [shape: f32[1,128], index: 7, kind: input, shape index: {}]   ;;  %s1833_s6 = inlined_call_operand.vmem [shape: bf16[128,128], index: 6, kind: input, shape index: {}]   ;;  %s1834_s9 = inlined_call_operand.vmem [shape: f32[1,128], index: 9, kind: input, shape index: {}]   ;;  %s1835_s8 = inlined_call_operand.vmem [shape: bf16[128,128], index: 8, kind: input, shape index: {}]   ;;  %s1836_s10 = inlined_call_operand.vmem [shape: f32[64,128], index: 10, kind: output, shape index: {}, may-alias: {2,10}]  }
   0x1   :  { %v113_v0 = vld [vmem:[%s1826_s0 + $0x38] sm:$0xf]  ;;  %v114_v1 = vld [vmem:[%s1826_s0 + $0x3c] sm:$0xf]  ;;  %vm1428_vm1 = vmpackc.low %vm1365_vm0, %vm1365_vm0 }
   0x2   :  { %v177_v3 = vsel %vm1428_vm1, %v113_v0, 0  ;;  %v178_v4 = vsel %vm1428_vm1, %v114_v1, 0  ;;  %v111_v5 = vld [vmem:[%s1826_s0 + $0x30] sm:$0xf]  ;;  %v112_v6 = vld [vmem:[%s1826_s0 + $0x34] sm:$0xf] }
   0x3   :  { %v257_v7 = vunpack.c.l.b16 %v177_v3  ;;  %v258_v8 = vunpack.c.l.b16 %v178_v4  ;;  %v175_v9 = vsel %vm1428_vm1, %v111_v5, 0  ;;  %v176_v10 = vsel %vm1428_vm1, %v112_v6, 0  ;;  %v109_v11 = vld [vmem:[%s1826_s0 + $0x28] sm:$0xf]  ;;  %v110_v12 = vld [vmem:[%s1826_s0 + $0x2c] sm:$0xf] }
   0x4   :  { %v255_v13 = vunpack.c.l.b16 %v175_v9  ;;  %v256_v14 = vunpack.c.l.b16 %v176_v10  ;;  %v173_v15 = vsel %vm1428_vm1, %v109_v11, 0  ;;  %v174_v16 = vsel %vm1428_vm1, %v110_v12, 0  ;;  %v107_v18 = vld [vmem:[%s1826_s0 + $0x20] sm:$0xf]  ;;  %v108_v19 = vld [vmem:[%s1826_s0 + $0x24] sm:$0xf] }
   0x5   :  { %v266_v17 = vpack.c.b16 %v258_v8, %v257_v7  ;;  %v253_v21 = vunpack.c.l.b16 %v173_v15  ;;  %v254_v22 = vunpack.c.l.b16 %v174_v16  ;;  %v171_v23 = vsel %vm1428_vm1, %v107_v18, 0  ;;  %v105_v25 = vld [vmem:[%s1826_s0 + $0x18] sm:$0xf]  ;;  %v106_v26 = vld [vmem:[%s1826_s0 + $0x1c] sm:$0xf]  ;;  %v1253_v56 = vld [vmem:[%s1828_s3 + $0x30] sm:$0xff] }
   0x6   :  { %v265_v20 = vpack.c.b16 %v256_v14, %v255_v13  ;;  %v172_v24 = vsel %vm1428_vm1, %v108_v19, 0  ;;  %v251_v28 = vunpack.c.l.b16 %v171_v23  ;;  %v169_v30 = vsel %vm1428_vm1, %v105_v25, 0  ;;  %v103_v32 = vld [vmem:[%s1826_s0 + $0x10] sm:$0xf]  ;;  %v104_v33 = vld [vmem:[%s1826_s0 + $0x14] sm:$0xf] }
   0x7   :  { %275 = vmatpush.bf16.msra.mxu0 %v266_v17  ;;  %1279 = vmatpush.bf16.msra.mxu1 %v266_v17  ;;  %v264_v27 = vpack.c.b16 %v254_v22, %v253_v21  ;;  %v252_v29 = vunpack.c.l.b16 %v172_v24  ;;  %v170_v31 = vsel %vm1428_vm1, %v106_v26, 0  ;;  %v249_v35 = vunpack.c.l.b16 %v169_v30  ;;  %v101_v39 = vld [vmem:[%s1826_s0 + $0x8] sm:$0xf]  ;;  %v102_v40 = vld [vmem:[%s1826_s0 + $0xc] sm:$0xf]  ;;  %v1254_v49 = vld [vmem:[%s1828_s3 + $0x38] sm:$0xff] }
   0x8   :  { %v250_v36 = vunpack.c.l.b16 %v170_v31  ;;  %v167_v37 = vsel %vm1428_vm1, %v103_v32, 0  ;;  %v168_v38 = vsel %vm1428_vm1, %v104_v33, 0  ;;  %v165_v45 = vsel %vm1428_vm1, %v101_v39, 0  ;;  %v99_v47 = vld [vmem:[%s1826_s0] sm:$0xf]  ;;  %504 = vmatpush.bf16.msra.mxu2 %v1254_v49  ;;  %v1252_v0 = vld [vmem:[%s1828_s3 + $0x28] sm:$0xff] }
   0x9   :  { %v263_v34 = vpack.c.b16 %v252_v29, %v251_v28  ;;  %v247_v42 = vunpack.c.l.b16 %v167_v37  ;;  %v248_v43 = vunpack.c.l.b16 %v168_v38  ;;  %v166_v46 = vsel %vm1428_vm1, %v102_v40, 0  ;;  %v100_v48 = vld [vmem:[%s1826_s0 + $0x4] sm:$0xf]  ;;  %v1297_v61 = vld [vmem:[%s1827_s1] ss:$0 sm:$0xff]  ;;  %v1262_v3 = vld [vmem:[%s1829_s4 + $0x38] sm:$0xff] }
   0xa   :  { %v262_v41 = vpack.c.b16 %v250_v36, %v249_v35  ;;  %v245_v51 = vunpack.c.l.b16 %v165_v45  ;;  %v246_v52 = vunpack.c.l.b16 %v166_v46  ;;  %v50_v53 = vshrl.u32 %v49_v44, 7  ;;  %v1251_v2 = vld [vmem:[%s1828_s3 + $0x20] sm:$0xff]  ;;  %v1250_v4 = vld [vmem:[%s1828_s3 + $0x18] sm:$0xff]  ;;  %v1261_v5 = vld [vmem:[%s1829_s4 + $0x30] sm:$0xff] }
   0xb   :  { %276 = vmatpush.bf16.msra.mxu0 %v265_v20  ;;  %1280 = vmatpush.bf16.msra.mxu1 %v265_v20  ;;  %v261_v50 = vpack.c.b16 %v248_v43, %v247_v42  ;;  %v163_v54 = vsel %vm1428_vm1, %v99_v47, 0  ;;  %v164_v55 = vsel %vm1428_vm1, %v100_v48, 0  ;;  %v1366_v6 = vmov 1.0|1.0   ;;  %v1249_v7 = vld [vmem:[%s1828_s3 + $0x10] sm:$0xff]  ;;  %v1260_v8 = vld [vmem:[%s1829_s4 + $0x28] sm:$0xff] }
   0xc   :  { %v260_v57 = vpack.c.b16 %v246_v52, %v245_v51  ;;  %v243_v58 = vunpack.c.l.b16 %v163_v54  ;;  %v244_v59 = vunpack.c.l.b16 %v164_v55  ;;  %v51_v60 = vadd.s32 8, %v50_v53  ;;  %505 = vmatpush.bf16.msra.mxu2 %v1253_v56  ;;  %v1248_v13 = vld [vmem:[%s1828_s3 + $0x8] sm:$0xff]  ;;  %v1259_v14 = vld [vmem:[%s1829_s4 + $0x20] sm:$0xff]  ;;  %v1258_v16 = vld [vmem:[%s1829_s4 + $0x18] sm:$0xff] }
   0xd   :  { %v54_v62 = vadd.s32 32, %v50_v53  ;;  %v55_v63 = vadd.s32 40, %v50_v53  ;;  %vm191_vm2 = vcmp.eq.s32.totalorder %v50_v53, %v1297_v61  ;;  %v52_v9 = vadd.s32 16, %v50_v53  ;;  %v1247_v15 = vld [vmem:[%s1828_s3] sm:$0xff]  ;;  %v1556_v18 = vld [vmem:[%s1830_s2 + $0x8] sm:$0xff]  ;;  %v1257_v20 = vld [vmem:[%s1829_s4 + $0x10] sm:$0xff] }
   0xe   :  { %v259_v1 = vpack.c.b16 %v244_v59, %v243_v58  ;;  %vm192_vm3 = vcmp.eq.s32.totalorder %v51_v60, %v1297_v61  ;;  %v53_v10 = vadd.s32 24, %v50_v53  ;;  %v56_v11 = vadd.s32 48, %v50_v53  ;;  %v1551_v17 = vld [vmem:[%s1830_s2] sm:$0xff]  ;;  %v1256_v21 = vld [vmem:[%s1829_s4 + $0x8] sm:$0xff]  ;;  %v1572_v23 = vld [vmem:[%s1830_s2 + $0x10] sm:$0xff] }
   0xf   :  { %277 = vmatpush.bf16.msra.mxu0 %v264_v27  ;;  %1281 = vmatpush.bf16.msra.mxu1 %v264_v27  ;;  %vm195_vm4 = vcmp.eq.s32.totalorder %v54_v62, %v1297_v61  ;;  %vm196_vm5 = vcmp.eq.s32.totalorder %v55_v63, %v1297_v61  ;;  %vm1095_vm6 = vmpackc.low %vm192_vm3, %vm191_vm2  ;;  %v57_v12 = vadd.s32 56, %v50_v53  ;;  %vm193_vm8 = vcmp.eq.s32.totalorder %v52_v9, %v1297_v61  ;;  %v1255_v22 = vld [vmem:[%s1829_s4] sm:$0xff]  ;;  %v1577_v24 = vld [vmem:[%s1830_s2 + $0x18] sm:$0xff] }
  0x10   :  { %506 = vmatpush.bf16.msra.mxu2 %v1252_v0  ;;  %vm1099_vm7 = vmpackc.low %vm196_vm5, %vm195_vm4  ;;  %vm194_vm9 = vcmp.eq.s32.totalorder %v53_v10, %v1297_v61  ;;  %vm197_vm10 = vcmp.eq.s32.totalorder %v56_v11, %v1297_v61  ;;  %v331_v19 = vpack.c.bf16 %v1556_v18, %v1551_v17  ;;  %v332_v25 = vpack.c.bf16 %v1577_v24, %v1572_v23  ;;  %v1584_v26 = vld [vmem:[%s1830_s2 + $0x20] sm:$0xff]  ;;  %v1589_v27 = vld [vmem:[%s1830_s2 + $0x28] sm:$0xff] }
  0x11   :  { %vm198_vm11 = vcmp.eq.s32.totalorder %v57_v12, %v1297_v61  ;;  %vm1097_vm12 = vmpackc.low %vm194_vm9, %vm193_vm8  ;;  %v333_v28 = vpack.c.bf16 %v1589_v27, %v1584_v26  ;;  %v1596_v32 = vld [vmem:[%s1830_s2 + $0x30] sm:$0xff]  ;;  %v1601_v33 = vld [vmem:[%s1830_s2 + $0x38] sm:$0xff] }
  0x12   :  { %vm1101_vm13 = vmpackc.low %vm198_vm11, %vm197_vm10  ;;  %v1270_v44 = vld [vmem:[%s1833_s6 + $0x38] sm:$0xff]  ;;  %v1269_v45 = vld [vmem:[%s1833_s6 + $0x30] sm:$0xff] }
  0x13   :  { %278 = vmatpush.bf16.msra.mxu0 %v263_v34  ;;  %1282 = vmatpush.bf16.msra.mxu1 %v263_v34  ;;  %v334_v34 = vpack.c.bf16 %v1601_v33, %v1596_v32  ;;  %v1268_v47 = vld [vmem:[%s1833_s6 + $0x28] sm:$0xff]  ;;  %v1267_v48 = vld [vmem:[%s1833_s6 + $0x20] sm:$0xff]  ;;  %v1265_v53 = vld [vmem:[%s1833_s6 + $0x10] sm:$0xff] }
  0x14   :  { %507 = vmatpush.bf16.msra.mxu2 %v1251_v2  ;;  %777 = vmatpush.bf16.msra.mxu3 %v1270_v44  ;;  %v1623_v51 = vld [vmem:[%s1831_s5] ss:$0 sm:$0xff]  ;;  %v1264_v56 = vld [vmem:[%s1833_s6 + $0x8] sm:$0xff] }
  0x15   :  { %v1263_v60 = vld [vmem:[%s1833_s6] sm:$0xff] }
  0x17   :  { %279 = vmatpush.bf16.msra.mxu0 %v262_v41  ;;  %1283 = vmatpush.bf16.msra.mxu1 %v262_v41 }
  0x18   :  { %508 = vmatpush.bf16.msra.mxu2 %v1250_v4  ;;  %778 = vmatpush.bf16.msra.mxu3 %v1269_v45 }
  0x1b   :  { %280 = vmatpush.bf16.msra.mxu0 %v261_v50  ;;  %1284 = vmatpush.bf16.msra.mxu1 %v261_v50  ;;  %v1266_v50 = vld [vmem:[%s1833_s6 + $0x18] sm:$0xff] }
  0x1c   :  { %509 = vmatpush.bf16.msra.mxu2 %v1249_v7  ;;  %779 = vmatpush.bf16.msra.mxu3 %v1268_v47 }
  0x1f   :  { %281 = vmatpush.bf16.msra.mxu0 %v260_v57  ;;  %1285 = vmatpush.bf16.msra.mxu1 %v260_v57 }
  0x20   :  { %510 = vmatpush.bf16.msra.mxu2 %v1248_v13  ;;  %780 = vmatpush.bf16.msra.mxu3 %v1267_v48 }
  0x23   :  { %282 = vmatpush.bf16.msra.mxu0 %v259_v1  ;;  %1286 = vmatpush.bf16.msra.mxu1 %v259_v1 }
  0x24   :  { %511 = vmatpush.bf16.msra.mxu2 %v1247_v15  ;;  %781 = vmatpush.bf16.msra.mxu3 %v1266_v50 }
  0x26   :  { %1096 = vmatmul.msk.bf16.vlgmr.msra.gmra.mxu0 %vm1095_vm6, %v1366_v6  ;;  %1100 = vmatmul.msk.bf16.vlgmr.msra.gmra.mxu1 %vm1099_vm7, %v1366_v6 }
  0x27   :  { %427 = vmatpush.bf16.msrb.mxu1 %v1262_v3  ;;  %512 = vmatmul.bf16.vlgmr.msra.gmra.mxu2 %v331_v19 }
  0x28   :  { %782 = vmatpush.bf16.msra.mxu3 %v1265_v53 }
  0x2b   :  { %428 = vmatpush.bf16.msrb.mxu1 %v1261_v5 }
  0x2c   :  { %783 = vmatpush.bf16.msra.mxu3 %v1264_v56 }
  0x2f   :  { %429 = vmatpush.bf16.msrb.mxu1 %v1260_v8 }
  0x30   :  { %784 = vmatpush.bf16.msra.mxu3 %v1263_v60 }
  0x33   :  { %430 = vmatpush.bf16.msrb.mxu1 %v1259_v14 }
  0x36   :  { %1098 = vmatmul.msk.bf16.gmra.mxu0 %vm1097_vm12, %v1366_v6  ;;  %1102 = vmatmul.msk.bf16.gmra.mxu1 %vm1101_vm13, %v1366_v6 }
  0x37   :  { %431 = vmatpush.bf16.msrb.mxu1 %v1258_v16  ;;  %517 = vmatmul.bf16.gmra.mxu2 %v332_v25 }
  0x3b   :  { %432 = vmatpush.bf16.msrb.mxu1 %v1257_v20 }
  0x3f   :  { %433 = vmatpush.bf16.msrb.mxu1 %v1256_v21 }
  0x43   :  { %434 = vmatpush.bf16.msrb.mxu1 %v1255_v22 }
  0x47   :  { %522 = vmatmul.bf16.gmra.mxu2 %v333_v28 }
  0x57   :  { %527 = vmatmul.bf16.gmra.mxu2 %v334_v34 }
  0xa3   :  { %v284_v29 = vpop.f32.mrf.mxu0  ;;  %v294_v37 = vpop.f32.mrf.mxu1 }
  0xaa   :  { %v513_v46 = vpop.f32.mrf.mxu2 }
  0xab   :  { %v286_v30 = vpop.f32.mrf.mxu0  ;;  %v296_v39 = vpop.f32.mrf.mxu1 }
  0xac   :  { %v359_v31 = vpack.c.bf16 %v286_v30, %v284_v29  ;;  %v361_v40 = vpack.c.bf16 %v296_v39, %v294_v37 }
  0xae   :  { %435 = vmatmul.bf16.vlgmr.msrb.gmra.mxu1 %v359_v31 }
  0xb2   :  { %v515_v49 = vpop.f32.mrf.mxu2 }
  0xb3   :  { %v289_v35 = vpop.f32.mrf.mxu0  ;;  %v299_v41 = vpop.f32.mrf.mxu1 }
  0xba   :  { %v518_v58 = vpop.f32.mrf.mxu2 }
  0xbb   :  { %v291_v36 = vpop.f32.mrf.mxu0  ;;  %v301_v42 = vpop.f32.mrf.mxu1 }
  0xbc   :  { %v360_v38 = vpack.c.bf16 %v291_v36, %v289_v35  ;;  %v362_v43 = vpack.c.bf16 %v301_v42, %v299_v41 }
  0xbe   :  { %440 = vmatmul.bf16.gmra.mxu1 %v360_v38 }
  0xc2   :  { %v520_v3 = vpop.f32.mrf.mxu2 }
  0xca   :  { %v523_v14 = vpop.f32.mrf.mxu2 }
  0xce   :  { %445 = vmatmul.bf16.gmra.mxu1 %v361_v40 }
  0xd2   :  { %v525_v42 = vpop.f32.mrf.mxu2 }
  0xde   :  { %450 = vmatmul.bf16.gmra.mxu1 %v362_v43 }
 0x12b   :  { %v436_v52 = vpop.f32.mrf.mxu1 }
 0x12c   :  { %v514_v54 = vadd.f32 %v513_v46, %v436_v52 }
 0x12e   :  { %v1629_v55 = vadd.f32 %v1623_v51, %v514_v54 }
 0x130   :  { %v1167_v57 = vmul.f32 -1.442695, %v1629_v55 }
 0x132   :  { %1301 = vpow2.f32 %v1167_v57 }
 0x133   :  { %v438_v59 = vpop.f32.mrf.mxu1 }
 0x134   :  { %v516_v61 = vadd.f32 %v515_v49, %v438_v59 }
 0x136   :  { %v1639_v62 = vadd.f32 %v1623_v51, %v516_v61 }
 0x138   :  { %v1302_v63 = vpop.eup %1301  ;;  %v1168_v0 = vmul.f32 -1.442695, %v1639_v62 }
 0x139   :  { %v569_v1 = vadd.f32 1.0, %v1302_v63 }
 0x13a   :  { %1303 = vpow2.f32 %v1168_v0 }
 0x13b   :  { %1305 = vrcp.f32 %v569_v1  ;;  %v441_v2 = vpop.f32.mrf.mxu1  ;;  %v588_v30 = vand.u32 2147483648, %v569_v1  ;;  %vm582_vm15 = vweird.f32 %v569_v1  ;;  %v586_v34 = vand.u32 2147483647, %v569_v1 }
 0x13c   :  { %v519_v4 = vadd.f32 %v518_v58, %v441_v2 }
 0x13d   :  { %v589_v43 = vor.u32 1.1754944e-38, %v588_v30  ;;  %vm587_vm2 = vcmp.eq.f32.partialorder %v586_v34, 8.507059e+37 }
 0x13e   :  { %v1643_v5 = vadd.f32 %v1623_v51, %v519_v4 }
 0x140   :  { %v1304_v6 = vpop.eup %1303  ;;  %v1169_v7 = vmul.f32 -1.442695, %v1643_v5 }
 0x141   :  { %v1306_v8 = vpop.eup %1305  ;;  %v570_v9 = vadd.f32 1.0, %v1304_v6  ;;  %v528_v6 = vpop.f32.mrf.mxu2 }
 0x142   :  { %1307 = vpow2.f32 %v1169_v7  ;;  %v578_v10 = vmul.f32 %v1306_v8, %v569_v1  ;;  %vm583_vm14 = vweird.f32 %v1306_v8 }
 0x143   :  { %1309 = vrcp.f32 %v570_v9  ;;  %v443_v11 = vpop.f32.mrf.mxu1  ;;  %vm1653_vm0 = vmor %vm582_vm15, %vm583_vm14  ;;  %v601_v37 = vand.u32 2147483647, %v570_v9  ;;  %v603_v38 = vand.u32 2147483648, %v570_v9  ;;  %vm597_vm3 = vweird.f32 %v570_v9 }
 0x144   :  { %v521_v12 = vadd.f32 %v520_v3, %v443_v11  ;;  %v579_v13 = vsub.f32 1.0, %v578_v10 }
 0x145   :  { %v604_v50 = vor.u32 1.1754944e-38, %v603_v38  ;;  %vm602_vm5 = vcmp.eq.f32.partialorder %v601_v37, 8.507059e+37 }
 0x146   :  { %v1647_v15 = vadd.f32 %v1623_v51, %v521_v12  ;;  %v580_v16 = vmul.f32 %v1306_v8, %v579_v13 }
 0x148   :  { %v1308_v19 = vpop.eup %1307  ;;  %v1170_v20 = vmul.f32 -1.442695, %v1647_v15  ;;  %v581_v25 = vadd.f32 %v1306_v8, %v580_v16 }
 0x149   :  { %v1310_v21 = vpop.eup %1309  ;;  %v1650_v22 = vadd.f32 1.0, %v1308_v19  ;;  %v530_v37 = vpop.f32.mrf.mxu2 }
 0x14a   :  { %1311 = vpow2.f32 %v1170_v20  ;;  %v593_v28 = vmul.f32 %v1310_v21, %v570_v9  ;;  %v585_v40 = vsel %vm1653_vm0, %v1306_v8, %v581_v25  ;;  %vm598_vm1 = vweird.f32 %v1310_v21 }
 0x14b   :  { %1313 = vrcp.f32 %v1650_v22  ;;  %v446_v29 = vpop.f32.mrf.mxu1  ;;  %v590_v49 = vsel %vm587_vm2, %v589_v43, %v585_v40  ;;  %vm599_vm4 = vmor %vm597_vm3, %vm598_vm1  ;;  %v618_v8 = vand.u32 2147483648, %v1650_v22  ;;  %vm612_vm7 = vweird.f32 %v1650_v22 }
 0x14c   :  { %v524_v31 = vadd.f32 %v523_v14, %v446_v29  ;;  %v594_v35 = vsub.f32 1.0, %v593_v28  ;;  %v697_v58 = vmul.f32 %v590_v49, %v1629_v55  ;;  %v616_v10 = vand.u32 2147483647, %v1650_v22 }
 0x14e   :  { %v1658_v39 = vadd.f32 %v1623_v51, %v524_v31  ;;  %v595_v41 = vmul.f32 %v1310_v21, %v594_v35  ;;  %vm617_vm10 = vcmp.eq.f32.partialorder %v616_v10, 8.507059e+37 }
 0x150   :  { %v1312_v44 = vpop.eup %1311  ;;  %v1171_v45 = vmul.f32 -1.442695, %v1658_v39  ;;  %v596_v46 = vadd.f32 %v1310_v21, %v595_v41 }
 0x151   :  { %v1314_v47 = vpop.eup %1313  ;;  %v572_v48 = vadd.f32 1.0, %v1312_v44 }
 0x152   :  { %1315 = vpow2.f32 %v1171_v45  ;;  %v600_v52 = vsel %vm599_vm4, %v1310_v21, %v596_v46  ;;  %v608_v53 = vmul.f32 %v1314_v47, %v1650_v22  ;;  %vm613_vm6 = vweird.f32 %v1314_v47 }
 0x153   :  { %1317 = vrcp.f32 %v572_v48  ;;  %v448_v54 = vpop.f32.mrf.mxu1  ;;  %v605_v56 = vsel %vm602_vm5, %v604_v50, %v600_v52  ;;  %vm1676_vm8 = vmor %vm612_vm7, %vm613_vm6  ;;  %v631_v13 = vand.u32 2147483647, %v572_v48  ;;  %v633_v14 = vand.u32 2147483648, %v572_v48 }
 0x154   :  { %v526_v57 = vadd.f32 %v525_v42, %v448_v54  ;;  %v698_v59 = vmul.f32 %v605_v56, %v1639_v62  ;;  %v609_v60 = vsub.f32 1.0, %v608_v53  ;;  %v619_v21 = vor.u32 1.1754944e-38, %v618_v8 }
 0x155   :  { %vm627_vm11 = vweird.f32 %v572_v48  ;;  %v634_v34 = vor.u32 1.1754944e-38, %v633_v14  ;;  %vm632_vm13 = vcmp.eq.f32.partialorder %v631_v13, 8.507059e+37 }
 0x156   :  { %v1667_v61 = vadd.f32 %v1623_v51, %v526_v57  ;;  %v722_v63 = vpack.c.bf16 %v698_v59, %v697_v58  ;;  %v610_v0 = vmul.f32 %v1314_v47, %v609_v60 }
 0x158   :  { %v1316_v1 = vpop.eup %1315  ;;  %v1172_v2 = vmul.f32 -1.442695, %v1667_v61  ;;  %785 = vmatmul.bf16.vlgmr.msra.gmra.mxu3 %v722_v63  ;;  %v611_v7 = vadd.f32 %v1314_v47, %v610_v0 }
 0x159   :  { %v1318_v3 = vpop.eup %1317  ;;  %v1670_v4 = vadd.f32 1.0, %v1316_v1 }
 0x15a   :  { %1319 = vpow2.f32 %v1172_v2  ;;  %v623_v55 = vmul.f32 %v1318_v3, %v572_v48  ;;  %v615_v19 = vsel %vm1676_vm8, %v1314_v47, %v611_v7  ;;  %vm628_vm9 = vweird.f32 %v1318_v3 }
 0x15b   :  { %1321 = vrcp.f32 %v1670_v4  ;;  %v451_v62 = vpop.f32.mrf.mxu1  ;;  %v620_v31 = vsel %vm617_vm10, %v619_v21, %v615_v19  ;;  %vm629_vm12 = vmor %vm627_vm11, %vm628_vm9  ;;  %vm642_vm15 = vweird.f32 %v1670_v4 }
 0x15c   :  { %v529_v9 = vadd.f32 %v528_v6, %v451_v62  ;;  %v624_v11 = vsub.f32 1.0, %v623_v55  ;;  %v699_v42 = vmul.f32 %v620_v31, %v1643_v5  ;;  %v648_v5 = vand.u32 2147483648, %v1670_v4 }
 0x15e   :  { %v1681_v16 = vadd.f32 %v1623_v51, %v529_v9  ;;  %v625_v20 = vmul.f32 %v1318_v3, %v624_v11  ;;  %v649_v60 = vor.u32 1.1754944e-38, %v648_v5 }
 0x160   :  { %v1320_v25 = vpop.eup %1319  ;;  %v1173_v28 = vmul.f32 -1.442695, %v1681_v16  ;;  %v626_v22 = vadd.f32 %v1318_v3, %v625_v20 }
 0x161   :  { %v1322_v29 = vpop.eup %1321  ;;  %v574_v30 = vadd.f32 1.0, %v1320_v25 }
 0x162   :  { %1323 = vpow2.f32 %v1173_v28  ;;  %v630_v35 = vsel %vm629_vm12, %v1318_v3, %v626_v22  ;;  %v638_v36 = vmul.f32 %v1322_v29, %v1670_v4  ;;  %vm643_vm14 = vweird.f32 %v1322_v29 }
 0x163   :  { %1325 = vrcp.f32 %v574_v30  ;;  %v453_v38 = vpop.f32.mrf.mxu1  ;;  %v635_v40 = vsel %vm632_vm13, %v634_v34, %v630_v35  ;;  %vm644_vm0 = vmor %vm642_vm15, %vm643_vm14  ;;  %v663_v56 = vand.u32 2147483648, %v574_v30  ;;  %v661_v59 = vand.u32 2147483647, %v574_v30 }
 0x164   :  { %v531_v41 = vadd.f32 %v530_v37, %v453_v38  ;;  %v700_v43 = vmul.f32 %v635_v40, %v1647_v15  ;;  %v639_v44 = vsub.f32 1.0, %v638_v36  ;;  %vm657_vm3 = vweird.f32 %v574_v30  ;;  %v1278_v40 = vld [vmem:[%s1835_s8 + $0x38] sm:$0xff] }
 0x165   :  { %v664_v6 = vor.u32 1.1754944e-38, %v663_v56  ;;  %vm662_vm5 = vcmp.eq.f32.partialorder %v661_v59, 8.507059e+37  ;;  %1038 = vmatpush.bf16.msrb.mxu0 %v1278_v40  ;;  %1287 = vmatpush.bf16.msrb.mxu2 %v1278_v40 }
 0x166   :  { %v1690_v45 = vadd.f32 %v1623_v51, %v531_v41  ;;  %v723_v46 = vpack.c.bf16 %v700_v43, %v699_v42  ;;  %v640_v47 = vmul.f32 %v1322_v29, %v639_v44  ;;  %v646_v51 = vand.u32 2147483647, %v1670_v4  ;;  %v1277_v41 = vld [vmem:[%s1835_s8 + $0x30] sm:$0xff]  ;;  %v1275_v42 = vld [vmem:[%s1835_s8 + $0x20] sm:$0xff]  ;;  %v1274_v43 = vld [vmem:[%s1835_s8 + $0x18] sm:$0xff] }
 0x167   :  { %v1718_v44 = vld [vmem:[%s1832_s7] ss:$0 sm:$0xff] }
 0x168   :  { %v1324_v48 = vpop.eup %1323  ;;  %v1174_v49 = vmul.f32 -1.442695, %v1690_v45  ;;  %790 = vmatmul.bf16.gmra.mxu3 %v723_v46  ;;  %v641_v53 = vadd.f32 %v1322_v29, %v640_v47  ;;  %vm647_vm2 = vcmp.eq.f32.partialorder %v646_v51, 8.507059e+37 }
 0x169   :  { %v1326_v50 = vpop.eup %1325  ;;  %v575_v52 = vadd.f32 1.0, %v1324_v48  ;;  %1039 = vmatpush.bf16.msrb.mxu0 %v1277_v41  ;;  %1288 = vmatpush.bf16.msrb.mxu2 %v1277_v41 }
 0x16a   :  { %1327 = vpow2.f32 %v1174_v49  ;;  %v653_v54 = vmul.f32 %v1326_v50, %v574_v30  ;;  %v645_v57 = vsel %vm644_vm0, %v1322_v29, %v641_v53  ;;  %vm658_vm1 = vweird.f32 %v1326_v50  ;;  %v1272_v49 = vld [vmem:[%s1835_s8 + $0x8] sm:$0xff] }
 0x16b   :  { %1329 = vrcp.f32 %v575_v52  ;;  %v650_v3 = vsel %vm647_vm2, %v649_v60, %v645_v57  ;;  %vm659_vm4 = vmor %vm657_vm3, %vm658_vm1  ;;  %v678_v19 = vand.u32 2147483648, %v575_v52  ;;  %vm672_vm7 = vweird.f32 %v575_v52 }
 0x16c   :  { %v654_v15 = vsub.f32 1.0, %v653_v54  ;;  %v701_v62 = vmul.f32 %v650_v3, %v1658_v39  ;;  %v676_v20 = vand.u32 2147483647, %v575_v52 }
 0x16d   :  { %v679_v29 = vor.u32 1.1754944e-38, %v678_v19 }
 0x16e   :  { %v655_v58 = vmul.f32 %v1326_v50, %v654_v15  ;;  %vm677_vm10 = vcmp.eq.f32.partialorder %v676_v20, 8.507059e+37 }
 0x170   :  { %v1328_v63 = vpop.eup %1327  ;;  %v656_v0 = vadd.f32 %v1326_v50, %v655_v58 }
 0x171   :  { %v1330_v1 = vpop.eup %1329  ;;  %v576_v2 = vadd.f32 1.0, %v1328_v63 }
 0x172   :  { %v660_v7 = vsel %vm659_vm4, %v1326_v50, %v656_v0  ;;  %v668_v4 = vmul.f32 %v1330_v1, %v575_v52  ;;  %vm673_vm6 = vweird.f32 %v1330_v1  ;;  %v1271_v50 = vld [vmem:[%s1835_s8] sm:$0xff] }
 0x173   :  { %1331 = vrcp.f32 %v576_v2  ;;  %v665_v55 = vsel %vm662_vm5, %v664_v6, %v660_v7  ;;  %vm674_vm8 = vmor %vm672_vm7, %vm673_vm6  ;;  %v693_v25 = vand.u32 2147483648, %v576_v2  ;;  %v691_v39 = vand.u32 2147483647, %v576_v2 }
 0x174   :  { %v702_v8 = vmul.f32 %v665_v55, %v1667_v61  ;;  %v669_v9 = vsub.f32 1.0, %v668_v4  ;;  %vm687_vm11 = vweird.f32 %v576_v2 }
 0x175   :  { %v694_v31 = vor.u32 1.1754944e-38, %v693_v25  ;;  %vm692_vm13 = vcmp.eq.f32.partialorder %v691_v39, 8.507059e+37 }
 0x176   :  { %v724_v10 = vpack.c.bf16 %v702_v8, %v701_v62  ;;  %v670_v11 = vmul.f32 %v1330_v1, %v669_v9 }
 0x178   :  { %795 = vmatmul.bf16.gmra.mxu3 %v724_v10  ;;  %v671_v13 = vadd.f32 %v1330_v1, %v670_v11 }
 0x179   :  { %v1332_v12 = vpop.eup %1331 }
 0x17a   :  { %v683_v14 = vmul.f32 %v1332_v12, %v576_v2  ;;  %v675_v28 = vsel %vm674_vm8, %v1330_v1, %v671_v13  ;;  %vm688_vm9 = vweird.f32 %v1332_v12 }
 0x17b   :  { %v680_v30 = vsel %vm677_vm10, %v679_v29, %v675_v28  ;;  %vm689_vm12 = vmor %vm687_vm11, %vm688_vm9 }
 0x17c   :  { %v684_v21 = vsub.f32 1.0, %v683_v14  ;;  %v703_v36 = vmul.f32 %v680_v30, %v1681_v16  ;;  %v1276_v16 = vld [vmem:[%s1835_s8 + $0x28] sm:$0xff] }
 0x17d   :  { %1040 = vmatpush.bf16.msrb.mxu0 %v1276_v16  ;;  %1289 = vmatpush.bf16.msrb.mxu2 %v1276_v16 }
 0x17e   :  { %v685_v22 = vmul.f32 %v1332_v12, %v684_v21 }
 0x180   :  { %v686_v61 = vadd.f32 %v1332_v12, %v685_v22 }
 0x181   :  { %1041 = vmatpush.bf16.msrb.mxu0 %v1275_v42  ;;  %1290 = vmatpush.bf16.msrb.mxu2 %v1275_v42 }
 0x182   :  { %v690_v34 = vsel %vm689_vm12, %v1332_v12, %v686_v61 }
 0x183   :  { %v695_v35 = vsel %vm692_vm13, %v694_v31, %v690_v34 }
 0x184   :  { %v704_v37 = vmul.f32 %v695_v35, %v1690_v45  ;;  %v1273_v45 = vld [vmem:[%s1835_s8 + $0x10] sm:$0xff] }
 0x185   :  { %1042 = vmatpush.bf16.msrb.mxu0 %v1274_v43  ;;  %1291 = vmatpush.bf16.msrb.mxu2 %v1274_v43 }
 0x186   :  { %v725_v38 = vpack.c.bf16 %v704_v37, %v703_v36 }
 0x188   :  { %800 = vmatmul.bf16.gmra.mxu3 %v725_v38 }
 0x189   :  { %1043 = vmatpush.bf16.msrb.mxu0 %v1273_v45  ;;  %1292 = vmatpush.bf16.msrb.mxu2 %v1273_v45 }
 0x18d   :  { %1044 = vmatpush.bf16.msrb.mxu0 %v1272_v49  ;;  %1293 = vmatpush.bf16.msrb.mxu2 %v1272_v49 }
 0x191   :  { %1045 = vmatpush.bf16.msrb.mxu0 %v1271_v50  ;;  %1294 = vmatpush.bf16.msrb.mxu2 %v1271_v50 }
 0x1db   :  { %v786_v46 = vpop.f32.mrf.mxu3 }
 0x1dc   :  { %v1724_v47 = vadd.f32 %v1718_v44, %v786_v46 }
 0x1de   :  { %v1207_v48 = vmul.f32 -1.442695, %v1724_v47 }
 0x1e0   :  { %1333 = vpow2.f32 %v1207_v48 }
 0x1e3   :  { %v788_v52 = vpop.f32.mrf.mxu3 }
 0x1e4   :  { %v789_v53 = vadd.f32 %v1718_v44, %v788_v52 }
 0x1e6   :  { %v1334_v54 = vpop.eup %1333  ;;  %v1208_v5 = vmul.f32 -1.442695, %v789_v53 }
 0x1e7   :  { %v830_v51 = vadd.f32 1.0, %v1334_v54 }
 0x1e8   :  { %1335 = vpow2.f32 %v1208_v5 }
 0x1e9   :  { %1337 = vrcp.f32 %v830_v51  ;;  %v849_v9 = vand.u32 2147483648, %v830_v51  ;;  %vm843_vm15 = vweird.f32 %v830_v51  ;;  %v847_v10 = vand.u32 2147483647, %v830_v51 }
 0x1eb   :  { %v791_v15 = vpop.f32.mrf.mxu3  ;;  %v850_v28 = vor.u32 1.1754944e-38, %v849_v9  ;;  %vm848_vm2 = vcmp.eq.f32.partialorder %v847_v10, 8.507059e+37 }
 0x1ec   :  { %v1735_v56 = vadd.f32 %v1718_v44, %v791_v15 }
 0x1ee   :  { %v1336_v57 = vpop.eup %1335  ;;  %v1209_v58 = vmul.f32 -1.442695, %v1735_v56 }
 0x1ef   :  { %v1338_v59 = vpop.eup %1337  ;;  %v831_v60 = vadd.f32 1.0, %v1336_v57 }
 0x1f0   :  { %v839_v63 = vmul.f32 %v1338_v59, %v830_v51  ;;  %1339 = vpow2.f32 %v1209_v58  ;;  %vm844_vm14 = vweird.f32 %v1338_v59 }
 0x1f1   :  { %1341 = vrcp.f32 %v831_v60  ;;  %vm1745_vm0 = vmor %vm843_vm15, %vm844_vm14  ;;  %v862_v13 = vand.u32 2147483647, %v831_v60  ;;  %v864_v14 = vand.u32 2147483648, %v831_v60  ;;  %vm858_vm3 = vweird.f32 %v831_v60 }
 0x1f2   :  { %v840_v0 = vsub.f32 1.0, %v839_v63 }
 0x1f3   :  { %v793_v1 = vpop.f32.mrf.mxu3  ;;  %v865_v31 = vor.u32 1.1754944e-38, %v864_v14  ;;  %vm863_vm5 = vcmp.eq.f32.partialorder %v862_v13, 8.507059e+37 }
 0x1f4   :  { %v841_v2 = vmul.f32 %v1338_v59, %v840_v0  ;;  %v1739_v3 = vadd.f32 %v1718_v44, %v793_v1 }
 0x1f6   :  { %v1340_v6 = vpop.eup %1339  ;;  %v1210_v7 = vmul.f32 -1.442695, %v1739_v3  ;;  %v842_v62 = vadd.f32 %v1338_v59, %v841_v2 }
 0x1f7   :  { %v1342_v4 = vpop.eup %1341  ;;  %v1742_v55 = vadd.f32 1.0, %v1340_v6 }
 0x1f8   :  { %v854_v8 = vmul.f32 %v1342_v4, %v831_v60  ;;  %1343 = vpow2.f32 %v1210_v7  ;;  %v846_v20 = vsel %vm1745_vm0, %v1338_v59, %v842_v62  ;;  %vm859_vm1 = vweird.f32 %v1342_v4 }
 0x1f9   :  { %1345 = vrcp.f32 %v1742_v55  ;;  %v851_v30 = vsel %vm848_vm2, %v850_v28, %v846_v20  ;;  %vm860_vm4 = vmor %vm858_vm3, %vm859_vm1  ;;  %vm873_vm7 = vweird.f32 %v1742_v55 }
 0x1fa   :  { %v855_v11 = vsub.f32 1.0, %v854_v8  ;;  %v958_v38 = vmul.f32 %v851_v30, %v1724_v47  ;;  %v879_v47 = vand.u32 2147483648, %v1742_v55 }
 0x1fb   :  { %v796_v19 = vpop.f32.mrf.mxu3 }
 0x1fc   :  { %v856_v21 = vmul.f32 %v1342_v4, %v855_v11  ;;  %v1752_v25 = vadd.f32 %v1718_v44, %v796_v19  ;;  %v880_v0 = vor.u32 1.1754944e-38, %v879_v47 }
 0x1fe   :  { %v1344_v22 = vpop.eup %1343  ;;  %v857_v39 = vadd.f32 %v1342_v4, %v856_v21  ;;  %v1211_v29 = vmul.f32 -1.442695, %v1752_v25 }
 0x1ff   :  { %v1346_v61 = vpop.eup %1345  ;;  %v833_v34 = vadd.f32 1.0, %v1344_v22 }
 0x200   :  { %v861_v35 = vsel %vm860_vm4, %v1342_v4, %v857_v39  ;;  %v869_v36 = vmul.f32 %v1346_v61, %v1742_v55  ;;  %1347 = vpow2.f32 %v1211_v29  ;;  %vm874_vm6 = vweird.f32 %v1346_v61 }
 0x201   :  { %v866_v37 = vsel %vm863_vm5, %v865_v31, %v861_v35  ;;  %1349 = vrcp.f32 %v833_v34  ;;  %vm1767_vm8 = vmor %vm873_vm7, %vm874_vm6  ;;  %v892_v15 = vand.u32 2147483647, %v833_v34  ;;  %v894_v57 = vand.u32 2147483648, %v833_v34 }
 0x202   :  { %v959_v40 = vmul.f32 %v866_v37, %v789_v53  ;;  %v870_v41 = vsub.f32 1.0, %v869_v36  ;;  %v877_v53 = vand.u32 2147483647, %v1742_v55  ;;  %vm888_vm11 = vweird.f32 %v833_v34 }
 0x203   :  { %v798_v16 = vpop.f32.mrf.mxu3  ;;  %v895_v55 = vor.u32 1.1754944e-38, %v894_v57  ;;  %vm893_vm13 = vcmp.eq.f32.partialorder %v892_v15, 8.507059e+37 }
 0x204   :  { %v871_v42 = vmul.f32 %v1346_v61, %v870_v41  ;;  %v1758_v43 = vadd.f32 %v1718_v44, %v798_v16  ;;  %v983_v45 = vpack.c.bf16 %v959_v40, %v958_v38  ;;  %vm878_vm10 = vcmp.eq.f32.partialorder %v877_v53, 8.507059e+37 }
 0x206   :  { %v1348_v46 = vpop.eup %1347  ;;  %v1212_v48 = vmul.f32 -1.442695, %v1758_v43  ;;  %1046 = vmatmul.bf16.vlgmr.msrb.gmra.mxu0 %v983_v45  ;;  %v872_v52 = vadd.f32 %v1346_v61, %v871_v42 }
 0x207   :  { %v1350_v49 = vpop.eup %1349  ;;  %v1761_v50 = vadd.f32 1.0, %v1348_v46 }
 0x208   :  { %v884_v54 = vmul.f32 %v1350_v49, %v833_v34  ;;  %1351 = vpow2.f32 %v1212_v48  ;;  %v876_v59 = vsel %vm1767_vm8, %v1346_v61, %v872_v52  ;;  %vm889_vm9 = vweird.f32 %v1350_v49 }
 0x209   :  { %1353 = vrcp.f32 %v1761_v50  ;;  %v881_v4 = vsel %vm878_vm10, %v880_v0, %v876_v59  ;;  %vm890_vm12 = vmor %vm888_vm11, %vm889_vm9  ;;  %vm903_vm15 = vweird.f32 %v1761_v50 }
 0x20a   :  { %v885_v5 = vsub.f32 1.0, %v884_v54  ;;  %v960_v11 = vmul.f32 %v881_v4, %v1735_v56  ;;  %v909_v56 = vand.u32 2147483648, %v1761_v50 }
 0x20b   :  { %v801_v58 = vpop.f32.mrf.mxu3 }
 0x20c   :  { %v886_v60 = vmul.f32 %v1350_v49, %v885_v5  ;;  %v1774_v63 = vadd.f32 %v1718_v44, %v801_v58  ;;  %v910_v37 = vor.u32 1.1754944e-38, %v909_v56 }
 0x20e   :  { %v1352_v1 = vpop.eup %1351  ;;  %v887_v2 = vadd.f32 %v1350_v49, %v886_v60  ;;  %v1213_v6 = vmul.f32 -1.442695, %v1774_v63 }
 0x20f   :  { %v1354_v7 = vpop.eup %1353  ;;  %v835_v62 = vadd.f32 1.0, %v1352_v1 }
 0x210   :  { %v891_v8 = vsel %vm890_vm12, %v1350_v49, %v887_v2  ;;  %v899_v9 = vmul.f32 %v1354_v7, %v1761_v50  ;;  %1355 = vpow2.f32 %v1213_v6  ;;  %vm904_vm14 = vweird.f32 %v1354_v7 }
 0x211   :  { %v896_v10 = vsel %vm893_vm13, %v895_v55, %v891_v8  ;;  %1357 = vrcp.f32 %v835_v62  ;;  %vm905_vm0 = vmor %vm903_vm15, %vm904_vm14  ;;  %v924_v31 = vand.u32 2147483648, %v835_v62  ;;  %v922_v36 = vand.u32 2147483647, %v835_v62 }
 0x212   :  { %v961_v12 = vmul.f32 %v896_v10, %v1739_v3  ;;  %v900_v13 = vsub.f32 1.0, %v899_v9  ;;  %v907_v3 = vand.u32 2147483647, %v1761_v50  ;;  %vm918_vm3 = vweird.f32 %v835_v62  ;;  %v1300_v10 = vld [vmem:[%s1834_s9] ss:$0 sm:$0xff] }
 0x213   :  { %v803_v14 = vpop.f32.mrf.mxu3  ;;  %v925_v42 = vor.u32 1.1754944e-38, %v924_v31  ;;  %vm923_vm5 = vcmp.eq.f32.partialorder %v922_v36, 8.507059e+37 }
 0x214   :  { %v901_v19 = vmul.f32 %v1354_v7, %v900_v13  ;;  %v1781_v20 = vadd.f32 %v1718_v44, %v803_v14  ;;  %v984_v21 = vpack.c.bf16 %v961_v12, %v960_v11  ;;  %vm908_vm2 = vcmp.eq.f32.partialorder %v907_v3, 8.507059e+37 }
 0x216   :  { %v1356_v28 = vpop.eup %1355  ;;  %v1214_v22 = vmul.f32 -1.442695, %v1781_v20  ;;  %1051 = vmatmul.bf16.gmra.mxu0 %v984_v21  ;;  %v902_v61 = vadd.f32 %v1354_v7, %v901_v19 }
 0x217   :  { %v1358_v39 = vpop.eup %1357  ;;  %v836_v29 = vadd.f32 1.0, %v1356_v28 }
 0x218   :  { %v914_v30 = vmul.f32 %v1358_v39, %v835_v62  ;;  %1359 = vpow2.f32 %v1214_v22  ;;  %v906_v34 = vsel %vm905_vm0, %v1354_v7, %v902_v61  ;;  %vm919_vm1 = vweird.f32 %v1358_v39 }
 0x219   :  { %1361 = vrcp.f32 %v836_v29  ;;  %v911_v16 = vsel %vm908_vm2, %v910_v37, %v906_v34  ;;  %vm920_vm4 = vmor %vm918_vm3, %vm919_vm1  ;;  %v939_v57 = vand.u32 2147483648, %v836_v29  ;;  %vm933_vm7 = vweird.f32 %v836_v29 }
 0x21a   :  { %v915_v44 = vsub.f32 1.0, %v914_v30  ;;  %v962_v50 = vmul.f32 %v911_v16, %v1752_v25  ;;  %v937_v58 = vand.u32 2147483647, %v836_v29 }
 0x21b   :  { %v940_v2 = vor.u32 1.1754944e-38, %v939_v57 }
 0x21c   :  { %v916_v35 = vmul.f32 %v1358_v39, %v915_v44  ;;  %vm938_vm10 = vcmp.eq.f32.partialorder %v937_v58, 8.507059e+37 }
 0x21e   :  { %v1360_v38 = vpop.eup %1359  ;;  %v917_v40 = vadd.f32 %v1358_v39, %v916_v35 }
 0x21f   :  { %v1362_v41 = vpop.eup %1361  ;;  %v837_v45 = vadd.f32 1.0, %v1360_v38 }
 0x220   :  { %v921_v46 = vsel %vm920_vm4, %v1358_v39, %v917_v40  ;;  %v929_v48 = vmul.f32 %v1362_v41, %v836_v29  ;;  %vm934_vm6 = vweird.f32 %v1362_v41 }
 0x221   :  { %v926_v49 = vsel %vm923_vm5, %v925_v42, %v921_v46  ;;  %1363 = vrcp.f32 %v837_v45  ;;  %vm935_vm8 = vmor %vm933_vm7, %vm934_vm6  ;;  %v954_v60 = vand.u32 2147483648, %v837_v45  ;;  %v952_v25 = vand.u32 2147483647, %v837_v45 }
 0x222   :  { %v963_v52 = vmul.f32 %v926_v49, %v1758_v43  ;;  %v930_v54 = vsub.f32 1.0, %v929_v48  ;;  %vm948_vm11 = vweird.f32 %v837_v45 }
 0x223   :  { %v955_v7 = vor.u32 1.1754944e-38, %v954_v60  ;;  %vm953_vm13 = vcmp.eq.f32.partialorder %v952_v25, 8.507059e+37 }
 0x224   :  { %v931_v47 = vmul.f32 %v1362_v41, %v930_v54  ;;  %v985_v53 = vpack.c.bf16 %v963_v52, %v962_v50 }
 0x226   :  { %1056 = vmatmul.bf16.gmra.mxu0 %v985_v53  ;;  %v932_v51 = vadd.f32 %v1362_v41, %v931_v47 }
 0x227   :  { %v1364_v5 = vpop.eup %1363 }
 0x228   :  { %v944_v15 = vmul.f32 %v1364_v5, %v837_v45  ;;  %v936_v0 = vsel %vm935_vm8, %v1362_v41, %v932_v51  ;;  %vm949_vm9 = vweird.f32 %v1364_v5 }
 0x229   :  { %v941_v6 = vsel %vm938_vm10, %v940_v2, %v936_v0  ;;  %vm950_vm12 = vmor %vm948_vm11, %vm949_vm9 }
 0x22a   :  { %v945_v59 = vsub.f32 1.0, %v944_v15  ;;  %v964_v62 = vmul.f32 %v941_v6, %v1774_v63 }
 0x22c   :  { %v946_v1 = vmul.f32 %v1364_v5, %v945_v59 }
 0x22e   :  { %v947_v43 = vadd.f32 %v1364_v5, %v946_v1 }
 0x230   :  { %v951_v4 = vsel %vm950_vm12, %v1364_v5, %v947_v43 }
 0x231   :  { %v956_v55 = vsel %vm953_vm13, %v955_v7, %v951_v4 }
 0x232   :  { %v965_v8 = vmul.f32 %v956_v55, %v1781_v20 }
 0x234   :  { %v986_v9 = vpack.c.bf16 %v965_v8, %v964_v62 }
 0x236   :  { %1061 = vmatmul.bf16.vlgmr.msrb.gmra.mxu2 %v986_v9 }
 0x283   :  { %v1047_v11 = vpop.f32.mrf.mxu0 }
 0x284   :  { %v1048_v12 = vadd.f32 %v1300_v10, %v1047_v11 }
 0x286   :  { %v1067_v13 = vadd.f32 %v1048_v12, %v1551_v17 }
 0x288   :  { %1075 = vst [vmem:[%s1836_s10] sm:$0xff] %v1067_v13 }
 0x28b   :  { %v1049_v14 = vpop.f32.mrf.mxu0 }
 0x28c   :  { %v1050_v19 = vadd.f32 %v1300_v10, %v1049_v14 }
 0x28e   :  { %v1068_v63 = vadd.f32 %v1050_v19, %v1556_v18 }
 0x290   :  { %1076 = vst [vmem:[%s1836_s10 + $0x8] sm:$0xff] %v1068_v63 }
 0x293   :  { %v1052_v20 = vpop.f32.mrf.mxu0 }
 0x294   :  { %v1053_v21 = vadd.f32 %v1300_v10, %v1052_v20 }
 0x296   :  { %v1069_v28 = vadd.f32 %v1053_v21, %v1572_v23 }
 0x298   :  { %1077 = vst [vmem:[%s1836_s10 + $0x10] sm:$0xff] %v1069_v28 }
 0x29b   :  { %v1054_v17 = vpop.f32.mrf.mxu0 }
 0x29c   :  { %v1055_v22 = vadd.f32 %v1300_v10, %v1054_v17 }
 0x29e   :  { %v1070_v39 = vadd.f32 %v1055_v22, %v1577_v24 }
 0x2a0   :  { %1078 = vst [vmem:[%s1836_s10 + $0x18] sm:$0xff] %v1070_v39 }
 0x2a3   :  { %v1057_v18 = vpop.f32.mrf.mxu0 }
 0x2a4   :  { %v1058_v29 = vadd.f32 %v1300_v10, %v1057_v18 }
 0x2a6   :  { %v1071_v61 = vadd.f32 %v1058_v29, %v1584_v26 }
 0x2a8   :  { %1079 = vst [vmem:[%s1836_s10 + $0x20] sm:$0xff] %v1071_v61 }
 0x2ab   :  { %v1059_v23 = vpop.f32.mrf.mxu0 }
 0x2ac   :  { %v1060_v30 = vadd.f32 %v1300_v10, %v1059_v23 }
 0x2ae   :  { %v1072_v56 = vadd.f32 %v1060_v30, %v1589_v27 }
 0x2b0   :  { %1080 = vst [vmem:[%s1836_s10 + $0x28] sm:$0xff] %v1072_v56 }
 0x2b9   :  { %v1062_v24 = vpop.f32.mrf.mxu2 }
 0x2ba   :  { %v1063_v3 = vadd.f32 %v1300_v10, %v1062_v24 }
 0x2bc   :  { %v1073_v44 = vadd.f32 %v1063_v3, %v1596_v32 }
 0x2be   :  { %1081 = vst [vmem:[%s1836_s10 + $0x30] sm:$0xff] %v1073_v44 }
 0x2c1   :  { %v1064_v26 = vpop.f32.mrf.mxu2 }
 0x2c2   :  { %v1065_v31 = vadd.f32 %v1300_v10, %v1064_v26 }
 0x2c4   :  { %v1074_v34 = vadd.f32 %v1065_v31, %v1601_v33 }
 0x2c6   :  { %1082 = vst [vmem:[%s1836_s10 + $0x38] sm:$0xff] %v1074_v34 }

// kernel: node_movement_corrector_forward.13
= control target key start
LH: loop header
LB: loop body
LE: loop exit
PB: predicated region body
PF: predicated region fallthrough
CT: control target
= control target key end

     0   :  { %s1203_s1 = inlined_call_operand.vmem [shape: bf16[128,128], index: 1, kind: input, shape index: {}]   ;;  %s1204_s2 = inlined_call_operand.vmem [shape: f32[1,128], index: 2, kind: input, shape index: {}]   ;;  %s1205_s0 = inlined_call_operand.vmem [shape: f32[64,128], index: 0, kind: input, shape index: {}]   ;;  %s1206_s4 = inlined_call_operand.vmem [shape: f32[1,128], index: 4, kind: input, shape index: {}]   ;;  %s1207_s3 = inlined_call_operand.vmem [shape: bf16[128,128], index: 3, kind: input, shape index: {}]   ;;  %s1208_s6 = inlined_call_operand.vmem [shape: f32[1,128], index: 6, kind: input, shape index: {}]   ;;  %s1209_s5 = inlined_call_operand.vmem [shape: bf16[128,128], index: 5, kind: input, shape index: {}]   ;;  %s1210_s7 = inlined_call_operand.vmem [shape: f32[64,128], index: 7, kind: output, shape index: {}]  }
   0x1   :  { %v788_v0 = vld [vmem:[%s1203_s1 + $0x38] sm:$0xff]  ;;  %v787_v1 = vld [vmem:[%s1203_s1 + $0x30] sm:$0xff]  ;;  %v786_v2 = vld [vmem:[%s1203_s1 + $0x28] sm:$0xff] }
   0x2   :  { %106 = vmatpush.bf16.msra.mxu0 %v788_v0  ;;  %805 = vmatpush.bf16.msra.mxu3 %v788_v0  ;;  %v785_v3 = vld [vmem:[%s1203_s1 + $0x20] sm:$0xff]  ;;  %v784_v4 = vld [vmem:[%s1203_s1 + $0x18] sm:$0xff]  ;;  %v783_v5 = vld [vmem:[%s1203_s1 + $0x10] sm:$0xff] }
   0x3   :  { %v782_v6 = vld [vmem:[%s1203_s1 + $0x8] sm:$0xff]  ;;  %v781_v7 = vld [vmem:[%s1203_s1] sm:$0xff]  ;;  %v28_v10 = vld [vmem:[%s1205_s0 + $0x10] sm:$0xff] }
   0x4   :  { %v26_v8 = vld [vmem:[%s1205_s0] sm:$0xff]  ;;  %v27_v9 = vld [vmem:[%s1205_s0 + $0x8] sm:$0xff]  ;;  %v29_v11 = vld [vmem:[%s1205_s0 + $0x18] sm:$0xff] }
   0x5   :  { %v51_v12 = vpack.c.bf16 %v27_v9, %v26_v8  ;;  %v52_v13 = vpack.c.bf16 %v29_v11, %v28_v10  ;;  %v30_v14 = vld [vmem:[%s1205_s0 + $0x20] sm:$0xff]  ;;  %v31_v15 = vld [vmem:[%s1205_s0 + $0x28] sm:$0xff]  ;;  %v32_v17 = vld [vmem:[%s1205_s0 + $0x30] sm:$0xff] }
   0x6   :  { %107 = vmatpush.bf16.msra.mxu0 %v787_v1  ;;  %806 = vmatpush.bf16.msra.mxu3 %v787_v1  ;;  %v53_v16 = vpack.c.bf16 %v31_v15, %v30_v14  ;;  %v33_v18 = vld [vmem:[%s1205_s0 + $0x38] sm:$0xff]  ;;  %v795_v21 = vld [vmem:[%s1207_s3 + $0x30] sm:$0xff]  ;;  %v794_v22 = vld [vmem:[%s1207_s3 + $0x28] sm:$0xff] }
   0x7   :  { %v54_v19 = vpack.c.bf16 %v33_v18, %v32_v17  ;;  %v796_v20 = vld [vmem:[%s1207_s3 + $0x38] sm:$0xff]  ;;  %v793_v23 = vld [vmem:[%s1207_s3 + $0x20] sm:$0xff]  ;;  %v791_v27 = vld [vmem:[%s1207_s3 + $0x10] sm:$0xff] }
   0x8   :  { %367 = vmatpush.bf16.msra.mxu1 %v796_v20  ;;  %v792_v24 = vld [vmem:[%s1207_s3 + $0x18] sm:$0xff]  ;;  %v986_v25 = vld [vmem:[%s1204_s2] ss:$0 sm:$0xff]  ;;  %v790_v30 = vld [vmem:[%s1207_s3 + $0x8] sm:$0xff] }
   0x9   :  { %v789_v34 = vld [vmem:[%s1207_s3] sm:$0xff] }
   0xa   :  { %108 = vmatpush.bf16.msra.mxu0 %v786_v2  ;;  %807 = vmatpush.bf16.msra.mxu3 %v786_v2 }
   0xc   :  { %368 = vmatpush.bf16.msra.mxu1 %v795_v21 }
   0xe   :  { %109 = vmatpush.bf16.msra.mxu0 %v785_v3  ;;  %808 = vmatpush.bf16.msra.mxu3 %v785_v3 }
  0x10   :  { %369 = vmatpush.bf16.msra.mxu1 %v794_v22 }
  0x12   :  { %110 = vmatpush.bf16.msra.mxu0 %v784_v4  ;;  %809 = vmatpush.bf16.msra.mxu3 %v784_v4 }
  0x14   :  { %370 = vmatpush.bf16.msra.mxu1 %v793_v23 }
  0x16   :  { %111 = vmatpush.bf16.msra.mxu0 %v783_v5  ;;  %810 = vmatpush.bf16.msra.mxu3 %v783_v5 }
  0x18   :  { %371 = vmatpush.bf16.msra.mxu1 %v792_v24 }
  0x1a   :  { %112 = vmatpush.bf16.msra.mxu0 %v782_v6  ;;  %811 = vmatpush.bf16.msra.mxu3 %v782_v6 }
  0x1c   :  { %372 = vmatpush.bf16.msra.mxu1 %v791_v27 }
  0x1e   :  { %113 = vmatpush.bf16.msra.mxu0 %v781_v7  ;;  %812 = vmatpush.bf16.msra.mxu3 %v781_v7 }
  0x20   :  { %373 = vmatpush.bf16.msra.mxu1 %v790_v30 }
  0x21   :  { %114 = vmatmul.bf16.vlgmr.msra.gmra.mxu0 %v51_v12  ;;  %119 = vmatmul.bf16.vlgmr.msra.gmra.mxu3 %v52_v13 }
  0x24   :  { %374 = vmatpush.bf16.msra.mxu1 %v789_v34 }
  0x31   :  { %124 = vmatmul.bf16.gmra.mxu3 %v53_v16 }
  0x41   :  { %129 = vmatmul.bf16.gmra.mxu3 %v54_v19 }
  0x9e   :  { %v115_v26 = vpop.f32.mrf.mxu0 }
  0x9f   :  { %v992_v28 = vadd.f32 %v986_v25, %v115_v26 }
  0xa1   :  { %v701_v29 = vmul.f32 -1.442695, %v992_v28 }
  0xa3   :  { %816 = vpow2.f32 %v701_v29 }
  0xa4   :  { %v120_v31 = vpop.f32.mrf.mxu3 }
  0xa5   :  { %v999_v32 = vadd.f32 %v986_v25, %v120_v31 }
  0xa6   :  { %v117_v33 = vpop.f32.mrf.mxu0 }
  0xa7   :  { %v703_v35 = vmul.f32 -1.442695, %v999_v32  ;;  %v1006_v36 = vadd.f32 %v986_v25, %v117_v33 }
  0xa9   :  { %v817_v37 = vpop.eup %816  ;;  %v702_v38 = vmul.f32 -1.442695, %v1006_v36  ;;  %818 = vpow2.f32 %v703_v35 }
  0xaa   :  { %v159_v39 = vadd.f32 1.0, %v817_v37 }
  0xab   :  { %820 = vpow2.f32 %v702_v38 }
  0xac   :  { %822 = vrcp.f32 %v159_v39  ;;  %v122_v40 = vpop.f32.mrf.mxu3  ;;  %v178_v61 = vand.u32 2147483648, %v159_v39  ;;  %vm172_vm1 = vweird.f32 %v159_v39  ;;  %v176_v63 = vand.u32 2147483647, %v159_v39 }
  0xad   :  { %v1010_v41 = vadd.f32 %v986_v25, %v122_v40 }
  0xae   :  { %v179_v10 = vor.u32 1.1754944e-38, %v178_v61  ;;  %vm177_vm4 = vcmp.eq.f32.partialorder %v176_v63, 8.507059e+37 }
  0xaf   :  { %v704_v42 = vmul.f32 -1.442695, %v1010_v41  ;;  %v819_v43 = vpop.eup %818 }
  0xb0   :  { %v1013_v47 = vadd.f32 1.0, %v819_v43 }
  0xb1   :  { %v821_v44 = vpop.eup %820  ;;  %824 = vpow2.f32 %v704_v42 }
  0xb2   :  { %v823_v45 = vpop.eup %822  ;;  %v160_v48 = vadd.f32 1.0, %v821_v44  ;;  %vm202_vm9 = vweird.f32 %v1013_v47  ;;  %v208_v38 = vand.u32 2147483648, %v1013_v47  ;;  %v206_v40 = vand.u32 2147483647, %v1013_v47 }
  0xb3   :  { %v168_v46 = vmul.f32 %v823_v45, %v159_v39  ;;  %vm173_vm0 = vweird.f32 %v823_v45 }
  0xb4   :  { %v125_v49 = vpop.f32.mrf.mxu3  ;;  %826 = vrcp.f32 %v160_v48  ;;  %vm1028_vm2 = vmor %vm172_vm1, %vm173_vm0  ;;  %v191_v2 = vand.u32 2147483647, %v160_v48  ;;  %v193_v3 = vand.u32 2147483648, %v160_v48  ;;  %vm187_vm5 = vweird.f32 %v160_v48 }
  0xb5   :  { %v169_v50 = vsub.f32 1.0, %v168_v46  ;;  %v1016_v51 = vadd.f32 %v986_v25, %v125_v49  ;;  %828 = vrcp.f32 %v1013_v47  ;;  %vm207_vm15 = vcmp.eq.f32.partialorder %v206_v40, 8.507059e+37  ;;  %v802_v40 = vld [vmem:[%s1209_s5 + $0x28] sm:$0xff] }
  0xb6   :  { %v194_v14 = vor.u32 1.1754944e-38, %v193_v3  ;;  %vm192_vm7 = vcmp.eq.f32.partialorder %v191_v2, 8.507059e+37 }
  0xb7   :  { %v825_v52 = vpop.eup %824  ;;  %v170_v53 = vmul.f32 %v823_v45, %v169_v50  ;;  %v705_v55 = vmul.f32 -1.442695, %v1016_v51  ;;  %v209_v50 = vor.u32 1.1754944e-38, %v208_v38  ;;  %v803_v38 = vld [vmem:[%s1209_s5 + $0x30] sm:$0xff] }
  0xb8   :  { %v1019_v54 = vadd.f32 1.0, %v825_v52 }
  0xb9   :  { %v171_v57 = vadd.f32 %v823_v45, %v170_v53 }
  0xba   :  { %830 = vrcp.f32 %v1019_v54  ;;  %v827_v56 = vpop.eup %826  ;;  %vm217_vm11 = vweird.f32 %v1019_v54  ;;  %v221_v35 = vand.u32 2147483647, %v1019_v54 }
  0xbb   :  { %832 = vpow2.f32 %v705_v55  ;;  %v183_v58 = vmul.f32 %v827_v56, %v160_v48  ;;  %v1023_v60 = vpop.eup %828  ;;  %v175_v6 = vsel %vm1028_vm2, %v823_v45, %v171_v57  ;;  %vm188_vm3 = vweird.f32 %v827_v56 }
  0xbc   :  { %v127_v59 = vpop.f32.mrf.mxu3  ;;  %v198_v7 = vmul.f32 %v1023_v60, %v1013_v47  ;;  %v180_v13 = vsel %vm177_vm4, %v179_v10, %v175_v6  ;;  %vm189_vm6 = vmor %vm187_vm5, %vm188_vm3  ;;  %vm203_vm10 = vweird.f32 %v1023_v60  ;;  %vm222_vm14 = vcmp.eq.f32.partialorder %v221_v35, 8.507059e+37 }
  0xbd   :  { %v1026_v62 = vadd.f32 %v986_v25, %v127_v59  ;;  %v184_v0 = vsub.f32 1.0, %v183_v58  ;;  %v287_v22 = vmul.f32 %v180_v13, %v992_v28  ;;  %v223_v28 = vand.u32 2147483648, %v1019_v54  ;;  %vm204_vm13 = vmor %vm202_vm9, %vm203_vm10 }
  0xbe   :  { %v199_v17 = vsub.f32 1.0, %v198_v7 }
  0xbf   :  { %v706_v4 = vmul.f32 -1.442695, %v1026_v62  ;;  %v185_v8 = vmul.f32 %v827_v56, %v184_v0  ;;  %v224_v44 = vor.u32 1.1754944e-38, %v223_v28 }
  0xc0   :  { %v831_v5 = vpop.eup %830  ;;  %v200_v29 = vmul.f32 %v1023_v60, %v199_v17 }
  0xc1   :  { %v833_v9 = vpop.eup %832  ;;  %v213_v11 = vmul.f32 %v831_v5, %v1019_v54  ;;  %834 = vpow2.f32 %v706_v4  ;;  %v186_v12 = vadd.f32 %v827_v56, %v185_v8  ;;  %vm218_vm8 = vweird.f32 %v831_v5 }
  0xc2   :  { %v1038_v16 = vadd.f32 1.0, %v833_v9  ;;  %v201_v34 = vadd.f32 %v1023_v60, %v200_v29  ;;  %vm219_vm12 = vmor %vm217_vm11, %vm218_vm8 }
  0xc3   :  { %v214_v15 = vsub.f32 1.0, %v213_v11  ;;  %v190_v18 = vsel %vm189_vm6, %v827_v56, %v186_v12 }
  0xc4   :  { %v130_v19 = vpop.f32.mrf.mxu3  ;;  %v195_v20 = vsel %vm192_vm7, %v194_v14, %v190_v18  ;;  %836 = vrcp.f32 %v1038_v16  ;;  %v205_v48 = vsel %vm204_vm13, %v1023_v60, %v201_v34  ;;  %vm232_vm1 = vweird.f32 %v1038_v16 }
  0xc5   :  { %v1041_v21 = vadd.f32 %v986_v25, %v130_v19  ;;  %v288_v23 = vmul.f32 %v195_v20, %v1006_v36  ;;  %v215_v24 = vmul.f32 %v831_v5, %v214_v15  ;;  %v238_v3 = vand.u32 2147483648, %v1038_v16 }
  0xc6   :  { %v236_v4 = vand.u32 2147483647, %v1038_v16 }
  0xc7   :  { %v835_v26 = vpop.eup %834  ;;  %v707_v27 = vmul.f32 -1.442695, %v1041_v21  ;;  %v312_v31 = vpack.c.bf16 %v288_v23, %v287_v22  ;;  %v216_v33 = vadd.f32 %v831_v5, %v215_v24  ;;  %v239_v10 = vor.u32 1.1754944e-38, %v238_v3 }
  0xc8   :  { %v1048_v30 = vadd.f32 1.0, %v835_v26  ;;  %vm237_vm7 = vcmp.eq.f32.partialorder %v236_v4, 8.507059e+37 }
  0xc9   :  { %838 = vpow2.f32 %v707_v27  ;;  %375 = vmatmul.bf16.vlgmr.msra.gmra.mxu1 %v312_v31  ;;  %v220_v42 = vsel %vm219_vm12, %v831_v5, %v216_v33 }
  0xca   :  { %840 = vrcp.f32 %v1048_v30  ;;  %v837_v37 = vpop.eup %836  ;;  %v225_v52 = vsel %vm222_vm14, %v224_v44, %v220_v42  ;;  %v253_v1 = vand.u32 2147483648, %v1048_v30  ;;  %vm247_vm3 = vweird.f32 %v1048_v30  ;;  %v1103_v42 = vld [vmem:[%s1206_s4] ss:$0 sm:$0xff] }
  0xcb   :  { %v228_v49 = vmul.f32 %v837_v37, %v1038_v16  ;;  %v290_v55 = vmul.f32 %v225_v52, %v1010_v41  ;;  %vm233_vm2 = vweird.f32 %v837_v37 }
  0xcc   :  { %v132_v36 = vpop.f32.mrf.mxu3  ;;  %vm234_vm5 = vmor %vm232_vm1, %vm233_vm2  ;;  %v254_v6 = vor.u32 1.1754944e-38, %v253_v1 }
  0xcd   :  { %v1059_v39 = vadd.f32 %v986_v25, %v132_v36  ;;  %v210_v25 = vsel %vm207_vm15, %v209_v50, %v205_v48  ;;  %v229_v56 = vsub.f32 1.0, %v228_v49  ;;  %v798_v48 = vld [vmem:[%s1209_s5 + $0x8] sm:$0xff]  ;;  %v797_v49 = vld [vmem:[%s1209_s5] sm:$0xff] }
  0xce   :  { %v289_v57 = vmul.f32 %v210_v25, %v999_v32  ;;  %v251_v32 = vand.u32 2147483647, %v1048_v30 }
  0xcf   :  { %v839_v43 = vpop.eup %838  ;;  %v708_v45 = vmul.f32 -1.442695, %v1059_v39  ;;  %v230_v60 = vmul.f32 %v837_v37, %v229_v56 }
  0xd0   :  { %v841_v46 = vpop.eup %840  ;;  %v1066_v54 = vadd.f32 1.0, %v839_v43  ;;  %v313_v63 = vpack.c.bf16 %v290_v55, %v289_v57  ;;  %vm252_vm6 = vcmp.eq.f32.partialorder %v251_v32, 8.507059e+37  ;;  %v799_v43 = vld [vmem:[%s1209_s5 + $0x10] sm:$0xff] }
  0xd1   :  { %v243_v53 = vmul.f32 %v841_v46, %v1048_v30  ;;  %842 = vpow2.f32 %v708_v45  ;;  %vm248_vm0 = vweird.f32 %v841_v46  ;;  %v231_v2 = vadd.f32 %v837_v37, %v230_v60 }
  0xd2   :  { %844 = vrcp.f32 %v1066_v54  ;;  %vm249_vm4 = vmor %vm247_vm3, %vm248_vm0  ;;  %vm262_vm9 = vweird.f32 %v1066_v54  ;;  %v268_v27 = vand.u32 2147483648, %v1066_v54 }
  0xd3   :  { %v244_v47 = vsub.f32 1.0, %v243_v53  ;;  %v235_v8 = vsel %vm234_vm5, %v837_v37, %v231_v2  ;;  %v804_v37 = vld [vmem:[%s1209_s5 + $0x38] sm:$0xff] }
  0xd4   :  { %v240_v13 = vsel %vm237_vm7, %v239_v10, %v235_v8  ;;  %v269_v31 = vor.u32 1.1754944e-38, %v268_v27  ;;  %628 = vmatpush.bf16.msra.mxu2 %v804_v37 }
  0xd5   :  { %v245_v58 = vmul.f32 %v841_v46, %v244_v47  ;;  %v291_v18 = vmul.f32 %v240_v13, %v1016_v51 }
  0xd7   :  { %v843_v59 = vpop.eup %842  ;;  %v246_v0 = vadd.f32 %v841_v46, %v245_v58 }
  0xd8   :  { %v166_v61 = vadd.f32 1.0, %v843_v59  ;;  %v845_v41 = vpop.eup %844  ;;  %629 = vmatpush.bf16.msra.mxu2 %v803_v38 }
  0xd9   :  { %380 = vmatmul.bf16.gmra.mxu1 %v313_v63  ;;  %v250_v5 = vsel %vm249_vm4, %v841_v46, %v246_v0  ;;  %v258_v9 = vmul.f32 %v845_v41, %v1066_v54  ;;  %vm263_vm10 = vweird.f32 %v845_v41 }
  0xda   :  { %846 = vrcp.f32 %v166_v61  ;;  %v255_v11 = vsel %vm252_vm6, %v254_v6, %v250_v5  ;;  %v283_v23 = vand.u32 2147483648, %v166_v61  ;;  %vm277_vm11 = vweird.f32 %v166_v61  ;;  %vm264_vm13 = vmor %vm262_vm9, %vm263_vm10 }
  0xdb   :  { %v292_v15 = vmul.f32 %v255_v11, %v1026_v62  ;;  %v259_v17 = vsub.f32 1.0, %v258_v9  ;;  %v281_v26 = vand.u32 2147483647, %v166_v61  ;;  %v266_v62 = vand.u32 2147483647, %v1066_v54 }
  0xdc   :  { %v284_v51 = vor.u32 1.1754944e-38, %v283_v23  ;;  %630 = vmatpush.bf16.msra.mxu2 %v802_v40 }
  0xdd   :  { %v260_v19 = vmul.f32 %v845_v41, %v259_v17  ;;  %v314_v20 = vpack.c.bf16 %v292_v15, %v291_v18  ;;  %vm282_vm14 = vcmp.eq.f32.partialorder %v281_v26, 8.507059e+37  ;;  %vm267_vm15 = vcmp.eq.f32.partialorder %v266_v62, 8.507059e+37 }
  0xdf   :  { %v261_v24 = vadd.f32 %v845_v41, %v260_v19 }
  0xe0   :  { %v847_v7 = vpop.eup %846 }
  0xe1   :  { %v273_v12 = vmul.f32 %v847_v7, %v166_v61  ;;  %vm278_vm8 = vweird.f32 %v847_v7  ;;  %v265_v30 = vsel %vm264_vm13, %v845_v41, %v261_v24 }
  0xe2   :  { %vm279_vm12 = vmor %vm277_vm11, %vm278_vm8  ;;  %v270_v28 = vsel %vm267_vm15, %v269_v31, %v265_v30 }
  0xe3   :  { %v274_v14 = vsub.f32 1.0, %v273_v12  ;;  %v293_v35 = vmul.f32 %v270_v28, %v1041_v21  ;;  %v801_v21 = vld [vmem:[%s1209_s5 + $0x20] sm:$0xff] }
  0xe4   :  { %631 = vmatpush.bf16.msra.mxu2 %v801_v21 }
  0xe5   :  { %v275_v16 = vmul.f32 %v847_v7, %v274_v14 }
  0xe7   :  { %v276_v22 = vadd.f32 %v847_v7, %v275_v16 }
  0xe9   :  { %385 = vmatmul.bf16.gmra.mxu1 %v314_v20  ;;  %v280_v29 = vsel %vm279_vm12, %v847_v7, %v276_v22 }
  0xea   :  { %v285_v33 = vsel %vm282_vm14, %v284_v51, %v280_v29 }
  0xeb   :  { %v294_v34 = vmul.f32 %v285_v33, %v1059_v39  ;;  %v800_v39 = vld [vmem:[%s1209_s5 + $0x18] sm:$0xff] }
  0xec   :  { %632 = vmatpush.bf16.msra.mxu2 %v800_v39 }
  0xed   :  { %v315_v36 = vpack.c.bf16 %v294_v34, %v293_v35 }
  0xf0   :  { %633 = vmatpush.bf16.msra.mxu2 %v799_v43 }
  0xf4   :  { %634 = vmatpush.bf16.msra.mxu2 %v798_v48 }
  0xf8   :  { %635 = vmatpush.bf16.msra.mxu2 %v797_v49 }
  0xf9   :  { %390 = vmatmul.bf16.gmra.mxu1 %v315_v36 }
 0x146   :  { %v376_v44 = vpop.f32.mrf.mxu1 }
 0x147   :  { %v1109_v45 = vadd.f32 %v1103_v42, %v376_v44 }
 0x149   :  { %v741_v46 = vmul.f32 -1.442695, %v1109_v45 }
 0x14b   :  { %848 = vpow2.f32 %v741_v46 }
 0x14e   :  { %v378_v50 = vpop.f32.mrf.mxu1 }
 0x14f   :  { %v379_v52 = vadd.f32 %v1103_v42, %v378_v50 }
 0x151   :  { %v849_v53 = vpop.eup %848  ;;  %v742_v25 = vmul.f32 -1.442695, %v379_v52 }
 0x152   :  { %v420_v47 = vadd.f32 1.0, %v849_v53 }
 0x153   :  { %850 = vpow2.f32 %v742_v25 }
 0x154   :  { %852 = vrcp.f32 %v420_v47  ;;  %v439_v6 = vand.u32 2147483648, %v420_v47  ;;  %vm433_vm1 = vweird.f32 %v420_v47  ;;  %v437_v7 = vand.u32 2147483647, %v420_v47 }
 0x156   :  { %v381_v54 = vpop.f32.mrf.mxu1  ;;  %v440_v17 = vor.u32 1.1754944e-38, %v439_v6  ;;  %vm438_vm4 = vcmp.eq.f32.partialorder %v437_v7, 8.507059e+37 }
 0x157   :  { %v1120_v55 = vadd.f32 %v1103_v42, %v381_v54 }
 0x159   :  { %v851_v56 = vpop.eup %850  ;;  %v743_v57 = vmul.f32 -1.442695, %v1120_v55 }
 0x15a   :  { %v853_v58 = vpop.eup %852  ;;  %v421_v59 = vadd.f32 1.0, %v851_v56 }
 0x15b   :  { %v429_v60 = vmul.f32 %v853_v58, %v420_v47  ;;  %854 = vpow2.f32 %v743_v57  ;;  %vm434_vm0 = vweird.f32 %v853_v58 }
 0x15c   :  { %856 = vrcp.f32 %v421_v59  ;;  %vm1130_vm2 = vmor %vm433_vm1, %vm434_vm0  ;;  %v452_v10 = vand.u32 2147483647, %v421_v59  ;;  %v454_v11 = vand.u32 2147483648, %v421_v59  ;;  %vm448_vm5 = vweird.f32 %v421_v59 }
 0x15d   :  { %v430_v61 = vsub.f32 1.0, %v429_v60 }
 0x15e   :  { %v383_v63 = vpop.f32.mrf.mxu1  ;;  %v455_v23 = vor.u32 1.1754944e-38, %v454_v11  ;;  %vm453_vm7 = vcmp.eq.f32.partialorder %v452_v10, 8.507059e+37 }
 0x15f   :  { %v431_v0 = vmul.f32 %v853_v58, %v430_v61  ;;  %v1124_v1 = vadd.f32 %v1103_v42, %v383_v63 }
 0x161   :  { %v855_v2 = vpop.eup %854  ;;  %v744_v32 = vmul.f32 -1.442695, %v1124_v1  ;;  %v432_v4 = vadd.f32 %v853_v58, %v431_v0 }
 0x162   :  { %v857_v41 = vpop.eup %856  ;;  %v1127_v3 = vadd.f32 1.0, %v855_v2 }
 0x163   :  { %v444_v5 = vmul.f32 %v857_v41, %v421_v59  ;;  %858 = vpow2.f32 %v744_v32  ;;  %v436_v13 = vsel %vm1130_vm2, %v853_v58, %v432_v4  ;;  %vm449_vm3 = vweird.f32 %v857_v41 }
 0x164   :  { %860 = vrcp.f32 %v1127_v3  ;;  %v441_v22 = vsel %vm438_vm4, %v440_v17, %v436_v13  ;;  %vm450_vm6 = vmor %vm448_vm5, %vm449_vm3  ;;  %v469_v39 = vand.u32 2147483648, %v1127_v3  ;;  %vm463_vm9 = vweird.f32 %v1127_v3 }
 0x165   :  { %v445_v8 = vsub.f32 1.0, %v444_v5  ;;  %v548_v29 = vmul.f32 %v441_v22, %v1109_v45  ;;  %v467_v43 = vand.u32 2147483647, %v1127_v3 }
 0x166   :  { %v386_v12 = vpop.f32.mrf.mxu1  ;;  %v470_v25 = vor.u32 1.1754944e-38, %v469_v39 }
 0x167   :  { %v446_v14 = vmul.f32 %v857_v41, %v445_v8  ;;  %v1137_v15 = vadd.f32 %v1103_v42, %v386_v12  ;;  %vm468_vm12 = vcmp.eq.f32.partialorder %v467_v43, 8.507059e+37 }
 0x169   :  { %v859_v18 = vpop.eup %858  ;;  %v447_v16 = vadd.f32 %v857_v41, %v446_v14  ;;  %v745_v19 = vmul.f32 -1.442695, %v1137_v15 }
 0x16a   :  { %v861_v20 = vpop.eup %860  ;;  %v423_v24 = vadd.f32 1.0, %v859_v18 }
 0x16b   :  { %v451_v26 = vsel %vm450_vm6, %v857_v41, %v447_v16  ;;  %v459_v27 = vmul.f32 %v861_v20, %v1127_v3  ;;  %862 = vpow2.f32 %v745_v19  ;;  %vm464_vm8 = vweird.f32 %v861_v20 }
 0x16c   :  { %v456_v62 = vsel %vm453_vm7, %v455_v23, %v451_v26  ;;  %864 = vrcp.f32 %v423_v24  ;;  %vm1152_vm10 = vmor %vm463_vm9, %vm464_vm8  ;;  %v482_v46 = vand.u32 2147483647, %v423_v24  ;;  %v484_v48 = vand.u32 2147483648, %v423_v24 }
 0x16d   :  { %v549_v51 = vmul.f32 %v456_v62, %v379_v52  ;;  %v460_v30 = vsub.f32 1.0, %v459_v27  ;;  %vm478_vm13 = vweird.f32 %v423_v24 }
 0x16e   :  { %v388_v31 = vpop.f32.mrf.mxu1  ;;  %v485_v59 = vor.u32 1.1754944e-38, %v484_v48  ;;  %vm483_vm15 = vcmp.eq.f32.partialorder %v482_v46, 8.507059e+37 }
 0x16f   :  { %v461_v33 = vmul.f32 %v861_v20, %v460_v30  ;;  %v1143_v28 = vadd.f32 %v1103_v42, %v388_v31  ;;  %v573_v34 = vpack.c.bf16 %v549_v51, %v548_v29 }
 0x171   :  { %v863_v35 = vpop.eup %862  ;;  %v746_v36 = vmul.f32 -1.442695, %v1143_v28  ;;  %636 = vmatmul.bf16.vlgmr.msra.gmra.mxu2 %v573_v34  ;;  %v462_v40 = vadd.f32 %v861_v20, %v461_v33 }
 0x172   :  { %v865_v37 = vpop.eup %864  ;;  %v1146_v38 = vadd.f32 1.0, %v863_v35 }
 0x173   :  { %v474_v21 = vmul.f32 %v865_v37, %v423_v24  ;;  %866 = vpow2.f32 %v746_v36  ;;  %v466_v50 = vsel %vm1152_vm10, %v861_v20, %v462_v40  ;;  %vm479_vm11 = vweird.f32 %v865_v37 }
 0x174   :  { %868 = vrcp.f32 %v1146_v38  ;;  %v471_v58 = vsel %vm468_vm12, %v470_v25, %v466_v50  ;;  %vm480_vm14 = vmor %vm478_vm13, %vm479_vm11  ;;  %vm493_vm1 = vweird.f32 %v1146_v38 }
 0x175   :  { %v475_v44 = vsub.f32 1.0, %v474_v21  ;;  %v550_v2 = vmul.f32 %v471_v58, %v1120_v55  ;;  %v499_v55 = vand.u32 2147483648, %v1146_v38 }
 0x176   :  { %v391_v49 = vpop.f32.mrf.mxu1 }
 0x177   :  { %v476_v52 = vmul.f32 %v865_v37, %v475_v44  ;;  %v1159_v53 = vadd.f32 %v1103_v42, %v391_v49  ;;  %v500_v16 = vor.u32 1.1754944e-38, %v499_v55 }
 0x179   :  { %v867_v47 = vpop.eup %866  ;;  %v477_v54 = vadd.f32 %v865_v37, %v476_v52  ;;  %v747_v56 = vmul.f32 -1.442695, %v1159_v53 }
 0x17a   :  { %v869_v57 = vpop.eup %868  ;;  %v425_v60 = vadd.f32 1.0, %v867_v47 }
 0x17b   :  { %v481_v61 = vsel %vm480_vm14, %v865_v37, %v477_v54  ;;  %v489_v63 = vmul.f32 %v869_v57, %v1146_v38  ;;  %870 = vpow2.f32 %v747_v56  ;;  %vm494_vm0 = vweird.f32 %v869_v57  ;;  %v815_v54 = vld [vmem:[%s1208_s6] ss:$0 sm:$0xff] }
 0x17c   :  { %v486_v0 = vsel %vm483_vm15, %v485_v59, %v481_v61  ;;  %872 = vrcp.f32 %v425_v60  ;;  %vm495_vm2 = vmor %vm493_vm1, %vm494_vm0  ;;  %v514_v13 = vand.u32 2147483648, %v425_v60  ;;  %v512_v18 = vand.u32 2147483647, %v425_v60 }
 0x17d   :  { %v551_v32 = vmul.f32 %v486_v0, %v1124_v1  ;;  %v490_v41 = vsub.f32 1.0, %v489_v63  ;;  %v497_v1 = vand.u32 2147483647, %v1146_v38  ;;  %vm508_vm5 = vweird.f32 %v425_v60 }
 0x17e   :  { %v393_v3 = vpop.f32.mrf.mxu1  ;;  %v515_v24 = vor.u32 1.1754944e-38, %v514_v13  ;;  %vm513_vm7 = vcmp.eq.f32.partialorder %v512_v18, 8.507059e+37 }
 0x17f   :  { %v491_v4 = vmul.f32 %v869_v57, %v490_v41  ;;  %v1166_v5 = vadd.f32 %v1103_v42, %v393_v3  ;;  %v574_v6 = vpack.c.bf16 %v551_v32, %v550_v2  ;;  %vm498_vm4 = vcmp.eq.f32.partialorder %v497_v1, 8.507059e+37 }
 0x181   :  { %v871_v7 = vpop.eup %870  ;;  %v748_v8 = vmul.f32 -1.442695, %v1166_v5  ;;  %641 = vmatmul.bf16.gmra.mxu2 %v574_v6  ;;  %v492_v11 = vadd.f32 %v869_v57, %v491_v4 }
 0x182   :  { %v873_v9 = vpop.eup %872  ;;  %v426_v10 = vadd.f32 1.0, %v871_v7 }
 0x183   :  { %v504_v12 = vmul.f32 %v873_v9, %v425_v60  ;;  %874 = vpow2.f32 %v748_v8  ;;  %v496_v14 = vsel %vm495_vm2, %v869_v57, %v492_v11  ;;  %vm509_vm3 = vweird.f32 %v873_v9 }
 0x184   :  { %876 = vrcp.f32 %v426_v10  ;;  %v501_v23 = vsel %vm498_vm4, %v500_v16, %v496_v14  ;;  %vm510_vm6 = vmor %vm508_vm5, %vm509_vm3  ;;  %v529_v38 = vand.u32 2147483648, %v426_v10  ;;  %vm523_vm9 = vweird.f32 %v426_v10 }
 0x185   :  { %v505_v42 = vsub.f32 1.0, %v504_v12  ;;  %v552_v51 = vmul.f32 %v501_v23, %v1137_v15  ;;  %v527_v40 = vand.u32 2147483647, %v426_v10 }
 0x186   :  { %v530_v45 = vor.u32 1.1754944e-38, %v529_v38 }
 0x187   :  { %v506_v17 = vmul.f32 %v873_v9, %v505_v42  ;;  %vm528_vm12 = vcmp.eq.f32.partialorder %v527_v40, 8.507059e+37 }
 0x189   :  { %v875_v19 = vpop.eup %874  ;;  %v507_v20 = vadd.f32 %v873_v9, %v506_v17 }
 0x18a   :  { %v877_v22 = vpop.eup %876  ;;  %v427_v26 = vadd.f32 1.0, %v875_v19 }
 0x18b   :  { %v511_v27 = vsel %vm510_vm6, %v873_v9, %v507_v20  ;;  %v519_v62 = vmul.f32 %v877_v22, %v426_v10  ;;  %vm524_vm8 = vweird.f32 %v877_v22 }
 0x18c   :  { %v516_v29 = vsel %vm513_vm7, %v515_v24, %v511_v27  ;;  %878 = vrcp.f32 %v427_v26  ;;  %vm525_vm10 = vmor %vm523_vm9, %vm524_vm8  ;;  %v544_v39 = vand.u32 2147483648, %v427_v26  ;;  %v542_v15 = vand.u32 2147483647, %v427_v26 }
 0x18d   :  { %v553_v30 = vmul.f32 %v516_v29, %v1143_v28  ;;  %v520_v31 = vsub.f32 1.0, %v519_v62  ;;  %vm538_vm13 = vweird.f32 %v427_v26 }
 0x18e   :  { %v545_v48 = vor.u32 1.1754944e-38, %v544_v39  ;;  %vm543_vm15 = vcmp.eq.f32.partialorder %v542_v15, 8.507059e+37 }
 0x18f   :  { %v521_v33 = vmul.f32 %v877_v22, %v520_v31  ;;  %v575_v34 = vpack.c.bf16 %v553_v30, %v552_v51 }
 0x191   :  { %646 = vmatmul.bf16.gmra.mxu2 %v575_v34  ;;  %v522_v36 = vadd.f32 %v877_v22, %v521_v33 }
 0x192   :  { %v879_v35 = vpop.eup %878 }
 0x193   :  { %v534_v37 = vmul.f32 %v879_v35, %v427_v26  ;;  %v526_v43 = vsel %vm525_vm10, %v877_v22, %v522_v36  ;;  %vm539_vm11 = vweird.f32 %v879_v35 }
 0x194   :  { %v531_v46 = vsel %vm528_vm12, %v530_v45, %v526_v43  ;;  %vm540_vm14 = vmor %vm538_vm13, %vm539_vm11 }
 0x195   :  { %v535_v21 = vsub.f32 1.0, %v534_v37  ;;  %v554_v52 = vmul.f32 %v531_v46, %v1159_v53 }
 0x197   :  { %v536_v44 = vmul.f32 %v879_v35, %v535_v21 }
 0x199   :  { %v537_v28 = vadd.f32 %v879_v35, %v536_v44 }
 0x19b   :  { %v541_v49 = vsel %vm540_vm14, %v879_v35, %v537_v28 }
 0x19c   :  { %v546_v50 = vsel %vm543_vm15, %v545_v48, %v541_v49 }
 0x19d   :  { %v555_v25 = vmul.f32 %v546_v50, %v1166_v5 }
 0x19f   :  { %v576_v47 = vpack.c.bf16 %v555_v25, %v554_v52 }
 0x1a1   :  { %651 = vmatmul.bf16.gmra.mxu2 %v576_v47 }
 0x1f4   :  { %v637_v56 = vpop.f32.mrf.mxu2 }
 0x1f5   :  { %v638_v57 = vadd.f32 %v815_v54, %v637_v56 }
 0x1f7   :  { %657 = vst [vmem:[%s1210_s7] sm:$0xff] %v638_v57 }
 0x1fc   :  { %v639_v58 = vpop.f32.mrf.mxu2 }
 0x1fd   :  { %v640_v59 = vadd.f32 %v815_v54, %v639_v58 }
 0x1ff   :  { %658 = vst [vmem:[%s1210_s7 + $0x8] sm:$0xff] %v640_v59 }
 0x204   :  { %v642_v53 = vpop.f32.mrf.mxu2 }
 0x205   :  { %v643_v60 = vadd.f32 %v815_v54, %v642_v53 }
 0x207   :  { %659 = vst [vmem:[%s1210_s7 + $0x10] sm:$0xff] %v643_v60 }
 0x20c   :  { %v644_v61 = vpop.f32.mrf.mxu2 }
 0x20d   :  { %v645_v63 = vadd.f32 %v815_v54, %v644_v61 }
 0x20f   :  { %660 = vst [vmem:[%s1210_s7 + $0x18] sm:$0xff] %v645_v63 }
 0x214   :  { %v647_v0 = vpop.f32.mrf.mxu2 }
 0x215   :  { %v648_v2 = vadd.f32 %v815_v54, %v647_v0 }
 0x217   :  { %661 = vst [vmem:[%s1210_s7 + $0x20] sm:$0xff] %v648_v2 }
 0x21c   :  { %v649_v32 = vpop.f32.mrf.mxu2 }
 0x21d   :  { %v650_v41 = vadd.f32 %v815_v54, %v649_v32 }
 0x21f   :  { %662 = vst [vmem:[%s1210_s7 + $0x28] sm:$0xff] %v650_v41 }
 0x224   :  { %v652_v3 = vpop.f32.mrf.mxu2 }
 0x225   :  { %v653_v4 = vadd.f32 %v815_v54, %v652_v3 }
 0x227   :  { %663 = vst [vmem:[%s1210_s7 + $0x30] sm:$0xff] %v653_v4 }
 0x22c   :  { %v654_v5 = vpop.f32.mrf.mxu2 }
 0x22d   :  { %v655_v6 = vadd.f32 %v815_v54, %v654_v5 }
 0x22f   :  { %664 = vst [vmem:[%s1210_s7 + $0x38] sm:$0xff] %v655_v6 }

</bundles_post_ra>
